<compile_context>
chip_gen: v7x
topology: tpu7x:2x2x1
jax: 0.10.0
libtpu: 0.0.40
codegen_flags: <defaults>
</compile_context>

<pallas_src>
import functools

import jax
import jax.numpy as jnp
import numpy as np
from jax.experimental import pallas as pl
from jax.experimental.pallas import tpu as pltpu


def _transformer_block_kernel(
    x_ref,
    wqkv_ref, bqkv_ref,
    wfc_ref, bfc_ref,
    w1_ref, b1_ref,
    w2_ref, b2_ref,
    out_ref,
    *, n_heads, head_dim, n_seq, n_emb,
):
    f32, bf16 = jnp.float32, jnp.bfloat16
    bt = x_ref.shape[0]                    # batch elements in this grid step
    rows = bt * n_seq

    x = x_ref[...].reshape(rows, n_emb)    # leading-dim collapse (free), f32
    x_bf = x.astype(bf16)

    # --- Fused Q/K/V projection: bf16 operands on the MXU, f32 accumulation.
    #     The attention scale is pre-folded into the Q weight/bias columns.
    qkv = jnp.dot(x_bf, wqkv_ref[...], preferred_element_type=f32) + bqkv_ref[...]
    qkv = qkv.astype(bf16)                 # (rows, 3*n_emb)

    # --- Head-major gather: static lane slices + one leading-dim concat
    #     (moves exactly one copy of qkv; keeps every op in forms Mosaic lowers).
    def to_heads(col0):
        parts = [
            qkv[:, col0 + h * head_dim: col0 + (h + 1) * head_dim]
            .reshape(bt, n_seq, head_dim)
            for h in range(n_heads)
        ]
        return jnp.concatenate(parts, axis=0)     # (n_heads*bt, n_seq, head_dim)

    q = to_heads(0)
    k = to_heads(n_emb)
    v = to_heads(2 * n_emb)

    # --- Scores / softmax / context: one batched contraction each (all heads).
    s = jnp.einsum("bqd,bkd->bqk", q, k, preferred_element_type=f32)
    s = s - jnp.max(s, axis=-1, keepdims=True)
    p = jnp.exp(s)
    p = p * pl.reciprocal(jnp.sum(p, axis=-1, keepdims=True), approx=True)
    ctx = jnp.einsum("bqk,bkd->bqd", p.astype(bf16), v, preferred_element_type=f32)

    # --- Attention output projection with the head-merge folded into per-head
    #     weight blocks:  fc(concat_h ctx_h) == sum_h ctx_h @ WfcT[h]
    #     (no lane concatenate needed).
    ctx_h = ctx.reshape(n_heads, rows, head_dim).astype(bf16)
    fc = jnp.einsum("hrd,hde->hre", ctx_h, wfc_ref[...], preferred_element_type=f32)
    y = jnp.sum(fc, axis=0) + bfc_ref[...] + x     # residual add in f32
    # adaptivenorm1 skipped (see TODO); dropout1 = identity (eval mode).

    # --- Feed-forward: l1 -> ReLU -> l2, plus residual.
    h1 = jnp.dot(y.astype(bf16), w1_ref[...], preferred_element_type=f32) + b1_ref[...]
    h1 = jnp.maximum(h1, 0.0)
    z = jnp.dot(h1.astype(bf16), w2_ref[...], preferred_element_type=f32) + b2_ref[...] + y
    # adaptivenorm2 skipped (see TODO); dropout2 = identity (eval mode).

    out_ref[...] = z.reshape(bt, n_seq, n_emb).astype(out_ref.dtype)


def _tpu_generation_defaults():
    """(target_rows, keep_two_grid_steps) per TPU generation."""
    try:
        kind = jax.devices()[0].device_kind.lower()
    except Exception:
        kind = ""
    if "v5" in kind:      # 128-wide MXU, single TensorCore
        return 128, False
    if "v7" in kind:      # 256-wide MXU, 2 TensorCores -> keep >= 2 parallel steps
        return 256, True
    return 256, False     # v6e / default: 256-wide MXU, single TensorCore


def _pick_batch_tile(n_batch, n_seq, target_rows, keep_two_steps):
    """Batch tile giving ~target_rows rows/step; pad batch to a multiple of it."""
    bt = max(1, -(-target_rows // n_seq))             # ceil(target_rows / n_seq)
    if keep_two_steps and n_batch >= 2:
        bt = min(bt, -(-n_batch // 2))
    bt = max(1, min(bt, n_batch))
    n_padded = -(-n_batch // bt) * bt
    return bt, n_padded


def _estimate_vmem_limit_bytes(b_tile, n_seq, n_emb, n_heads, weights):
    """Generous scoped-VMEM budget from actual tile/weight sizes, capped at 64 MiB
    (<= physical on all generations, >= the default scoped limit everywhere)."""
    rows = b_tile * n_seq
    hd = n_emb // n_heads
    w_bytes = sum(int(np.prod(w.shape)) * w.dtype.itemsize for w in weights)
    io_bytes = 2 * 2 * b_tile * n_seq * n_emb * 4                 # in+out, double-buffered f32
    act_bytes = (rows * 3 * n_emb * 6                             # qkv (f32 + bf16 copies)
                 + 3 * rows * n_heads * hd * 2                    # head-major q/k/v (bf16)
                 + 2 * n_heads * b_tile * n_seq * n_seq * 4       # scores + probs (f32)
                 + n_heads * rows * n_emb * 4                     # per-head fc partials (f32)
                 + rows * 7 * n_emb * 4)                          # y / h1 / z temporaries
    needed = 2 * w_bytes + io_bytes + act_bytes
    return int(min(64 * 1024 * 1024, max(32 * 1024 * 1024, 2 * needed)))


@functools.partial(
    jax.jit,
    static_argnames=("n_seq", "n_emb", "n_heads", "b_tile", "n_padded",
                     "single_buffer_weights"),
)
def _run_block(x, params, *, n_seq, n_emb, n_heads, b_tile, n_padded,
               single_buffer_weights):
    n_batch = x.shape[0]
    head_dim = n_emb // n_heads
    scale = float(1.0 / np.sqrt(n_emb / n_heads))
    f32, bf16 = jnp.float32, jnp.bfloat16

    # Host-side prep: transpose to (in, out), fuse Q/K/V, fold the attention
    # scale into Q, split fc's input dim per head, cast weights to bf16.
    wqkv = jnp.concatenate(
        [params["wq"].T * scale, params["wk"].T, params["wv"].T], axis=1).astype(bf16)
    bqkv = jnp.concatenate(
        [params["bq"] * scale, params["bk"], params["bv"]], axis=1).astype(f32)
    wfc_h = params["wfc"].T.reshape(n_heads, head_dim, n_emb).astype(bf16)
    bfc = params["bfc"].astype(f32)
    w1, b1 = params["w1"].T.astype(bf16), params["b1"].astype(f32)
    w2, b2 = params["w2"].T.astype(bf16), params["b2"].astype(f32)
    weights = [wqkv, bqkv, wfc_h, bfc, w1, b1, w2, b2]

    xp = x
    if n_padded != n_batch:
        xp = jnp.pad(x, ((0, n_padded - n_batch), (0, 0), (0, 0)))

    kernel = functools.partial(
        _transformer_block_kernel,
        n_heads=n_heads, head_dim=head_dim, n_seq=n_seq, n_emb=n_emb)

    x_spec = pl.BlockSpec((b_tile, n_seq, n_emb), lambda b: (b, 0, 0))

    def weight_spec(w):
        index_map = lambda b, _nd=w.ndim: (0,) * _nd
        if single_buffer_weights:
            # Constant block index -> one resident VMEM copy is enough; default
            # double-buffering would pointlessly duplicate every weight.
            return pl.BlockSpec(w.shape, index_map, pipeline_mode=pl.Buffered(1))
        return pl.BlockSpec(w.shape, index_map)

    in_specs = [x_spec] + [weight_spec(w) for w in weights]

    aux = pl.pallas_call(
        kernel,
        grid=(n_padded // b_tile,),
        in_specs=in_specs,
        out_specs=x_spec,
        out_shape=jax.ShapeDtypeStruct((n_padded, n_seq, n_emb), x.dtype),
        compiler_params=pltpu.CompilerParams(
            dimension_semantics=("parallel",),
            vmem_limit_bytes=_estimate_vmem_limit_bytes(
                b_tile, n_seq, n_emb, n_heads, weights),
        ),
    )(xp, *weights)
    return aux[:n_batch]


def transformer_block(x, params, *, n_seq, n_emb, n_heads):
    """x: (N, N_s, N_e) float32.  Returns (res, aux); res == x per the module."""
    assert n_emb % n_heads == 0, "n_emb must be divisible by n_heads"
    n_batch = x.shape[0]
    target_rows, keep_two = _tpu_generation_defaults()
    b_tile, n_padded = _pick_batch_tile(n_batch, n_seq, target_rows, keep_two)
    kwargs = dict(n_seq=n_seq, n_emb=n_emb, n_heads=n_heads,
                  b_tile=b_tile, n_padded=n_padded)
    try:
        aux = _run_block(x, params, single_buffer_weights=True, **kwargs)
    except Exception:
        # Fallback for jax builds without BlockSpec(pipeline_mode=pl.Buffered(1)):
        # default (double-buffered) resident weights.
        aux = _run_block(x, params, single_buffer_weights=False, **kwargs)
    # The module's forward() returns `res` == its input; no kernel copy needed.
    return x, aux


def _init_params(key, n_emb):
    """Deterministic synthetic parameters (PyTorch Linear shapes: W=(out, in))."""
    keys = jax.random.split(key, 12)
    u = lambda k, shape, fan_in: jax.random.uniform(
        k, shape, jnp.float32, -1.0 / np.sqrt(fan_in), 1.0 / np.sqrt(fan_in))
    return {
        "wq": u(keys[0], (n_emb, n_emb), n_emb),
        "bq": u(keys[1], (1, n_emb), n_emb),
        "wk": u(keys[2], (n_emb, n_emb), n_emb),
        "bk": u(keys[3], (1, n_emb), n_emb),
        "wv": u(keys[4], (n_emb, n_emb), n_emb),
        "bv": u(keys[5], (1, n_emb), n_emb),
        "wfc": u(keys[6], (n_emb, n_emb), n_emb),
        "bfc": u(keys[7], (1, n_emb), n_emb),
        "w1": u(keys[8], (2 * n_emb, n_emb), n_emb),
        "b1": u(keys[9], (1, 2 * n_emb), n_emb),
        "w2": u(keys[10], (n_emb, 2 * n_emb), 2 * n_emb),
        "b2": u(keys[11], (1, n_emb), 2 * n_emb),
    }


def _reference_jax(x, params, *, n_heads):
    """Pure-JAX f32 reference of the (computed-but-discarded) block path."""
    n, n_s, n_e = x.shape
    d = n_e // n_heads
    scale = 1.0 / np.sqrt(n_e / n_heads)
    lin = lambda t, w, b: jnp.einsum("...i,oi->...o", t, w) + b[0]
    q = lin(x, params["wq"], params["bq"]).reshape(n, n_s, n_heads, d)
    k = lin(x, params["wk"], params["bk"]).reshape(n, n_s, n_heads, d)
    v = lin(x, params["wv"], params["bv"]).reshape(n, n_s, n_heads, d)
    s = jnp.einsum("bshd,bthd->bhst", q, k) * scale
    p = jax.nn.softmax(s, axis=-1)
    o = jnp.einsum("bhst,bthd->bshd", p, v).reshape(n, n_s, n_e)
    attn = lin(o, params["wfc"], params["bfc"])
    y = attn + x
    h1 = jax.nn.relu(lin(y, params["w1"], params["b1"]))
    return lin(h1, params["w2"], params["b2"]) + y


if __name__ == "__main__":
    N, N_s, N_e, N_h = 4, 8, 32, 4

    key = jax.random.PRNGKey(0)
    k_x, k_p = jax.random.split(key)
    x = jax.random.normal(k_x, (N, N_s, N_e), dtype=jnp.float32)
    params = _init_params(k_p, N_e)

    res, aux = transformer_block(x, params, n_seq=N_s, n_emb=N_e, n_heads=N_h)
    res = jax.block_until_ready(res)
    aux = jax.block_until_ready(aux)

    # The module's forward returns its input (`res`).
    np.testing.assert_array_equal(np.asarray(res), np.asarray(x))
    # Check the in-kernel attention+FFN compute against the f32 reference.
    # Tolerance accounts for bf16 matmul operands (f32 accumulation).
    ref_aux = _reference_jax(x, params, n_heads=N_h)
    np.testing.assert_allclose(np.asarray(aux), np.asarray(ref_aux), rtol=5e-2, atol=5e-2)

    print("KERNEL_OK")
</pallas_src>

<mosaic_0001>
module attributes {stable_mosaic.version = 11 : i64} {
  func.func @_transformer_block_kernel(%arg0: i32, %arg1: memref<4x8x32xf32, #tpu.memory_space<vmem>>, %arg2: memref<32x96xbf16, #tpu.memory_space<vmem>>, %arg3: memref<1x96xf32, #tpu.memory_space<vmem>>, %arg4: memref<4x8x32xbf16, #tpu.memory_space<vmem>>, %arg5: memref<1x32xf32, #tpu.memory_space<vmem>>, %arg6: memref<32x64xbf16, #tpu.memory_space<vmem>>, %arg7: memref<1x64xf32, #tpu.memory_space<vmem>>, %arg8: memref<64x32xbf16, #tpu.memory_space<vmem>>, %arg9: memref<1x32xf32, #tpu.memory_space<vmem>>, %arg10: memref<4x8x32xf32, #tpu.memory_space<vmem>>) attributes {dimension_semantics = [#tpu.dimension_semantics<parallel>], iteration_bounds = array<i64: 1>, scalar_prefetch = 0 : i64, scratch_operands = 0 : i64, tpu.core_type = #tpu.core_type<tc>, window_params = [{transform_indices = @transform_0, window_bounds = array<i64: 4, 8, 32>}, {pipeline_mode = #tpu.pipeline_mode<synchronous>, transform_indices = @transform_1, window_bounds = array<i64: 32, 96>}, {pipeline_mode = #tpu.pipeline_mode<synchronous>, transform_indices = @transform_2, window_bounds = array<i64: 1, 96>}, {pipeline_mode = #tpu.pipeline_mode<synchronous>, transform_indices = @transform_3, window_bounds = array<i64: 4, 8, 32>}, {pipeline_mode = #tpu.pipeline_mode<synchronous>, transform_indices = @transform_4, window_bounds = array<i64: 1, 32>}, {pipeline_mode = #tpu.pipeline_mode<synchronous>, transform_indices = @transform_5, window_bounds = array<i64: 32, 64>}, {pipeline_mode = #tpu.pipeline_mode<synchronous>, transform_indices = @transform_6, window_bounds = array<i64: 1, 64>}, {pipeline_mode = #tpu.pipeline_mode<synchronous>, transform_indices = @transform_7, window_bounds = array<i64: 64, 32>}, {pipeline_mode = #tpu.pipeline_mode<synchronous>, transform_indices = @transform_8, window_bounds = array<i64: 1, 32>}, {transform_indices = @transform_9, window_bounds = array<i64: 4, 8, 32>}]} {
    %c0 = arith.constant 0 : index
    %c0_0 = arith.constant 0 : index
    %c0_1 = arith.constant 0 : index
    %0 = vector.load %arg1[%c0, %c0_0, %c0_1] : memref<4x8x32xf32, #tpu.memory_space<vmem>>, vector<4x8x32xf32>
    %1 = vector.shape_cast %0 : vector<4x8x32xf32> to vector<32x32xf32>
    %2 = arith.truncf %1 : vector<32x32xf32> to vector<32x32xbf16>
    %c0_2 = arith.constant 0 : index
    %c0_3 = arith.constant 0 : index
    %3 = vector.load %arg2[%c0_2, %c0_3] : memref<32x96xbf16, #tpu.memory_space<vmem>>, vector<32x96xbf16>
    %cst = arith.constant dense<0.000000e+00> : vector<32x96xf32>
    %4 = tpu.matmul %2, %3, %cst {dimension_numbers = #tpu.dot_dimension_numbers<[1], [0], [0], [1], [0, 0, 1, 1], [], []>} : vector<32x32xbf16>, vector<32x96xbf16>, vector<32x96xf32> -> vector<32x96xf32>
    %c0_4 = arith.constant 0 : index
    %c0_5 = arith.constant 0 : index
    %5 = vector.load %arg3[%c0_4, %c0_5] : memref<1x96xf32, #tpu.memory_space<vmem>>, vector<1x96xf32>
    %6 = vector.broadcast %5 : vector<1x96xf32> to vector<32x96xf32>
    %7 = arith.addf %4, %6 : vector<32x96xf32>
    %8 = arith.truncf %7 : vector<32x96xf32> to vector<32x96xbf16>
    %9 = vector.extract_strided_slice %8 {offsets = [0, 0], sizes = [32, 8], strides = [1, 1]} : vector<32x96xbf16> to vector<32x8xbf16>
    %10 = vector.shape_cast %9 : vector<32x8xbf16> to vector<4x8x8xbf16>
    %11 = vector.extract_strided_slice %8 {offsets = [0, 8], sizes = [32, 8], strides = [1, 1]} : vector<32x96xbf16> to vector<32x8xbf16>
    %12 = vector.shape_cast %11 : vector<32x8xbf16> to vector<4x8x8xbf16>
    %13 = vector.extract_strided_slice %8 {offsets = [0, 16], sizes = [32, 8], strides = [1, 1]} : vector<32x96xbf16> to vector<32x8xbf16>
    %14 = vector.shape_cast %13 : vector<32x8xbf16> to vector<4x8x8xbf16>
    %15 = vector.extract_strided_slice %8 {offsets = [0, 24], sizes = [32, 8], strides = [1, 1]} : vector<32x96xbf16> to vector<32x8xbf16>
    %16 = vector.shape_cast %15 : vector<32x8xbf16> to vector<4x8x8xbf16>
    %17 = tpu.concatenate %10, %12, %14, %16 in 0 : vector<4x8x8xbf16>, vector<4x8x8xbf16>, vector<4x8x8xbf16>, vector<4x8x8xbf16> -> vector<16x8x8xbf16>
    %18 = vector.extract_strided_slice %8 {offsets = [0, 32], sizes = [32, 8], strides = [1, 1]} : vector<32x96xbf16> to vector<32x8xbf16>
    %19 = vector.shape_cast %18 : vector<32x8xbf16> to vector<4x8x8xbf16>
    %20 = vector.extract_strided_slice %8 {offsets = [0, 40], sizes = [32, 8], strides = [1, 1]} : vector<32x96xbf16> to vector<32x8xbf16>
    %21 = vector.shape_cast %20 : vector<32x8xbf16> to vector<4x8x8xbf16>
    %22 = vector.extract_strided_slice %8 {offsets = [0, 48], sizes = [32, 8], strides = [1, 1]} : vector<32x96xbf16> to vector<32x8xbf16>
    %23 = vector.shape_cast %22 : vector<32x8xbf16> to vector<4x8x8xbf16>
    %24 = vector.extract_strided_slice %8 {offsets = [0, 56], sizes = [32, 8], strides = [1, 1]} : vector<32x96xbf16> to vector<32x8xbf16>
    %25 = vector.shape_cast %24 : vector<32x8xbf16> to vector<4x8x8xbf16>
    %26 = tpu.concatenate %19, %21, %23, %25 in 0 : vector<4x8x8xbf16>, vector<4x8x8xbf16>, vector<4x8x8xbf16>, vector<4x8x8xbf16> -> vector<16x8x8xbf16>
    %27 = vector.extract_strided_slice %8 {offsets = [0, 64], sizes = [32, 8], strides = [1, 1]} : vector<32x96xbf16> to vector<32x8xbf16>
    %28 = vector.shape_cast %27 : vector<32x8xbf16> to vector<4x8x8xbf16>
    %29 = vector.extract_strided_slice %8 {offsets = [0, 72], sizes = [32, 8], strides = [1, 1]} : vector<32x96xbf16> to vector<32x8xbf16>
    %30 = vector.shape_cast %29 : vector<32x8xbf16> to vector<4x8x8xbf16>
    %31 = vector.extract_strided_slice %8 {offsets = [0, 80], sizes = [32, 8], strides = [1, 1]} : vector<32x96xbf16> to vector<32x8xbf16>
    %32 = vector.shape_cast %31 : vector<32x8xbf16> to vector<4x8x8xbf16>
    %33 = vector.extract_strided_slice %8 {offsets = [0, 88], sizes = [32, 8], strides = [1, 1]} : vector<32x96xbf16> to vector<32x8xbf16>
    %34 = vector.shape_cast %33 : vector<32x8xbf16> to vector<4x8x8xbf16>
    %35 = tpu.concatenate %28, %30, %32, %34 in 0 : vector<4x8x8xbf16>, vector<4x8x8xbf16>, vector<4x8x8xbf16>, vector<4x8x8xbf16> -> vector<16x8x8xbf16>
    "tpu.trace_start"() <{level = 10 : i32, message = "bqd,bkd->bqk"}> : () -> ()
    %cst_6 = arith.constant dense<0.000000e+00> : vector<16x8x8xf32>
    %36 = tpu.matmul %17, %26, %cst_6 {dimension_numbers = #tpu.dot_dimension_numbers<[2], [2], [1], [1], [0, 0, 0, 1, 1, 1], [0], [0]>} : vector<16x8x8xbf16>, vector<16x8x8xbf16>, vector<16x8x8xf32> -> vector<16x8x8xf32>
    "tpu.trace_stop"() : () -> ()
    %cst_7 = arith.constant dense<0xFF800000> : vector<16x8xf32>
    %37 = vector.multi_reduction <maximumf>, %36, %cst_7 [2] : vector<16x8x8xf32> to vector<16x8xf32>
    %38 = vector.shape_cast %37 : vector<16x8xf32> to vector<16x8x1xf32>
    %39 = vector.broadcast %38 : vector<16x8x1xf32> to vector<16x8x8xf32>
    %40 = arith.subf %36, %39 : vector<16x8x8xf32>
    %41 = math.exp %40 : vector<16x8x8xf32>
    %cst_8 = arith.constant dense<0.000000e+00> : vector<16x8xf32>
    %42 = vector.multi_reduction <add>, %41, %cst_8 [2] : vector<16x8x8xf32> to vector<16x8xf32>
    %43 = vector.shape_cast %42 : vector<16x8xf32> to vector<16x8x1xf32>
    %44 = tpu.reciprocal %43 {approx = true} : vector<16x8x1xf32> -> vector<16x8x1xf32>
    %45 = vector.broadcast %44 : vector<16x8x1xf32> to vector<16x8x8xf32>
    %46 = arith.mulf %41, %45 : vector<16x8x8xf32>
    %47 = arith.truncf %46 : vector<16x8x8xf32> to vector<16x8x8xbf16>
    "tpu.trace_start"() <{level = 10 : i32, message = "bqk,bkd->bqd"}> : () -> ()
    %cst_9 = arith.constant dense<0.000000e+00> : vector<16x8x8xf32>
    %48 = tpu.matmul %47, %35, %cst_9 {dimension_numbers = #tpu.dot_dimension_numbers<[2], [1], [1], [2], [0, 0, 0, 1, 1, 2], [0], [0]>} : vector<16x8x8xbf16>, vector<16x8x8xbf16>, vector<16x8x8xf32> -> vector<16x8x8xf32>
    "tpu.trace_stop"() : () -> ()
    %49 = vector.shape_cast %48 : vector<16x8x8xf32> to vector<4x32x8xf32>
    %50 = arith.truncf %49 : vector<4x32x8xf32> to vector<4x32x8xbf16>
    %c0_10 = arith.constant 0 : index
    %c0_11 = arith.constant 0 : index
    %c0_12 = arith.constant 0 : index
    %51 = vector.load %arg4[%c0_10, %c0_11, %c0_12] : memref<4x8x32xbf16, #tpu.memory_space<vmem>>, vector<4x8x32xbf16>
    "tpu.trace_start"() <{level = 10 : i32, message = "hrd,hde->hre"}> : () -> ()
    %cst_13 = arith.constant dense<0.000000e+00> : vector<4x32x32xf32>
    %52 = tpu.matmul %50, %51, %cst_13 {dimension_numbers = #tpu.dot_dimension_numbers<[2], [1], [1], [2], [0, 0, 0, 1, 1, 2], [0], [0]>} : vector<4x32x8xbf16>, vector<4x8x32xbf16>, vector<4x32x32xf32> -> vector<4x32x32xf32>
    "tpu.trace_stop"() : () -> ()
    %cst_14 = arith.constant dense<0.000000e+00> : vector<32x32xf32>
    %53 = vector.multi_reduction <add>, %52, %cst_14 [0] : vector<4x32x32xf32> to vector<32x32xf32>
    %c0_15 = arith.constant 0 : index
    %c0_16 = arith.constant 0 : index
    %54 = vector.load %arg5[%c0_15, %c0_16] : memref<1x32xf32, #tpu.memory_space<vmem>>, vector<1x32xf32>
    %55 = vector.broadcast %54 : vector<1x32xf32> to vector<32x32xf32>
    %56 = arith.addf %53, %55 : vector<32x32xf32>
    %57 = arith.addf %56, %1 : vector<32x32xf32>
    %58 = arith.truncf %57 : vector<32x32xf32> to vector<32x32xbf16>
    %c0_17 = arith.constant 0 : index
    %c0_18 = arith.constant 0 : index
    %59 = vector.load %arg6[%c0_17, %c0_18] : memref<32x64xbf16, #tpu.memory_space<vmem>>, vector<32x64xbf16>
    %cst_19 = arith.constant dense<0.000000e+00> : vector<32x64xf32>
    %60 = tpu.matmul %58, %59, %cst_19 {dimension_numbers = #tpu.dot_dimension_numbers<[1], [0], [0], [1], [0, 0, 1, 1], [], []>} : vector<32x32xbf16>, vector<32x64xbf16>, vector<32x64xf32> -> vector<32x64xf32>
    %c0_20 = arith.constant 0 : index
    %c0_21 = arith.constant 0 : index
    %61 = vector.load %arg7[%c0_20, %c0_21] : memref<1x64xf32, #tpu.memory_space<vmem>>, vector<1x64xf32>
    %62 = vector.broadcast %61 : vector<1x64xf32> to vector<32x64xf32>
    %63 = arith.addf %60, %62 : vector<32x64xf32>
    %cst_22 = arith.constant 0.000000e+00 : f32
    %64 = vector.broadcast %cst_22 : f32 to vector<32x64xf32>
    %65 = arith.maximumf %63, %64 : vector<32x64xf32>
    %66 = arith.truncf %65 : vector<32x64xf32> to vector<32x64xbf16>
    %c0_23 = arith.constant 0 : index
    %c0_24 = arith.constant 0 : index
    %67 = vector.load %arg8[%c0_23, %c0_24] : memref<64x32xbf16, #tpu.memory_space<vmem>>, vector<64x32xbf16>
    %cst_25 = arith.constant dense<0.000000e+00> : vector<32x32xf32>
    %68 = tpu.matmul %66, %67, %cst_25 {dimension_numbers = #tpu.dot_dimension_numbers<[1], [0], [0], [1], [0, 0, 1, 1], [], []>} : vector<32x64xbf16>, vector<64x32xbf16>, vector<32x32xf32> -> vector<32x32xf32>
    %c0_26 = arith.constant 0 : index
    %c0_27 = arith.constant 0 : index
    %69 = vector.load %arg9[%c0_26, %c0_27] : memref<1x32xf32, #tpu.memory_space<vmem>>, vector<1x32xf32>
    %70 = vector.broadcast %69 : vector<1x32xf32> to vector<32x32xf32>
    %71 = arith.addf %68, %70 : vector<32x32xf32>
    %72 = arith.addf %71, %57 : vector<32x32xf32>
    %73 = vector.shape_cast %72 : vector<32x32xf32> to vector<4x8x32xf32>
    %c0_28 = arith.constant 0 : index
    %c0_29 = arith.constant 0 : index
    %c0_30 = arith.constant 0 : index
    %74 = vector.load %arg10[%c0_28, %c0_29, %c0_30] : memref<4x8x32xf32, #tpu.memory_space<vmem>>, vector<4x8x32xf32>
    tpu.vector_store %arg10[%c0_28, %c0_29, %c0_30], %73 {strides = array<i32>} : memref<4x8x32xf32, #tpu.memory_space<vmem>>, vector<4x8x32xf32>,
    return
  }
  func.func @transform_0(%arg0: i32) -> (i32, i32, i32) {
    %c0_i32 = arith.constant 0 : i32
    %c0_i32_0 = arith.constant 0 : i32
    %c0_i32_1 = arith.constant 0 : i32
    return %arg0, %c0_i32, %c0_i32_0 : i32, i32, i32
  }
  func.func @transform_1(%arg0: i32) -> (i32, i32) {
    %c0_i32 = arith.constant 0 : i32
    %c0_i32_0 = arith.constant 0 : i32
    %c0_i32_1 = arith.constant 0 : i32
    return %c0_i32, %c0_i32_0 : i32, i32
  }
  func.func @transform_2(%arg0: i32) -> (i32, i32) {
    %c0_i32 = arith.constant 0 : i32
    %c0_i32_0 = arith.constant 0 : i32
    %c0_i32_1 = arith.constant 0 : i32
    return %c0_i32, %c0_i32_0 : i32, i32
  }
  func.func @transform_3(%arg0: i32) -> (i32, i32, i32) {
    %c0_i32 = arith.constant 0 : i32
    %c0_i32_0 = arith.constant 0 : i32
    %c0_i32_1 = arith.constant 0 : i32
    %c0_i32_2 = arith.constant 0 : i32
    return %c0_i32, %c0_i32_0, %c0_i32_1 : i32, i32, i32
  }
  func.func @transform_4(%arg0: i32) -> (i32, i32) {
    %c0_i32 = arith.constant 0 : i32
    %c0_i32_0 = arith.constant 0 : i32
    %c0_i32_1 = arith.constant 0 : i32
    return %c0_i32, %c0_i32_0 : i32, i32
  }
  func.func @transform_5(%arg0: i32) -> (i32, i32) {
    %c0_i32 = arith.constant 0 : i32
    %c0_i32_0 = arith.constant 0 : i32
    %c0_i32_1 = arith.constant 0 : i32
    return %c0_i32, %c0_i32_0 : i32, i32
  }
  func.func @transform_6(%arg0: i32) -> (i32, i32) {
    %c0_i32 = arith.constant 0 : i32
    %c0_i32_0 = arith.constant 0 : i32
    %c0_i32_1 = arith.constant 0 : i32
    return %c0_i32, %c0_i32_0 : i32, i32
  }
  func.func @transform_7(%arg0: i32) -> (i32, i32) {
    %c0_i32 = arith.constant 0 : i32
    %c0_i32_0 = arith.constant 0 : i32
    %c0_i32_1 = arith.constant 0 : i32
    return %c0_i32, %c0_i32_0 : i32, i32
  }
  func.func @transform_8(%arg0: i32) -> (i32, i32) {
    %c0_i32 = arith.constant 0 : i32
    %c0_i32_0 = arith.constant 0 : i32
    %c0_i32_1 = arith.constant 0 : i32
    return %c0_i32, %c0_i32_0 : i32, i32
  }
  func.func @transform_9(%arg0: i32) -> (i32, i32, i32) {
    %c0_i32 = arith.constant 0 : i32
    %c0_i32_0 = arith.constant 0 : i32
    %c0_i32_1 = arith.constant 0 : i32
    return %arg0, %c0_i32, %c0_i32_0 : i32, i32, i32
  }
}

module attributes {stable_mosaic.version = 11 : i64} {
  func.func @_transformer_block_kernel(%arg0: i32, %arg1: memref<4x8x32xf32, #tpu.memory_space<vmem>>, %arg2: memref<32x96xbf16, #tpu.memory_space<vmem>>, %arg3: memref<1x96xf32, #tpu.memory_space<vmem>>, %arg4: memref<4x8x32xbf16, #tpu.memory_space<vmem>>, %arg5: memref<1x32xf32, #tpu.memory_space<vmem>>, %arg6: memref<32x64xbf16, #tpu.memory_space<vmem>>, %arg7: memref<1x64xf32, #tpu.memory_space<vmem>>, %arg8: memref<64x32xbf16, #tpu.memory_space<vmem>>, %arg9: memref<1x32xf32, #tpu.memory_space<vmem>>, %arg10: memref<4x8x32xf32, #tpu.memory_space<vmem>>) attributes {dimension_semantics = [#tpu.dimension_semantics<parallel>], iteration_bounds = array<i64: 1>, scalar_prefetch = 0 : i64, scratch_operands = 0 : i64, tpu.core_type = #tpu.core_type<tc>, window_params = [{transform_indices = @transform_0, window_bounds = array<i64: 4, 8, 32>}, {pipeline_mode = #tpu.pipeline_mode<synchronous>, transform_indices = @transform_1, window_bounds = array<i64: 32, 96>}, {pipeline_mode = #tpu.pipeline_mode<synchronous>, transform_indices = @transform_2, window_bounds = array<i64: 1, 96>}, {pipeline_mode = #tpu.pipeline_mode<synchronous>, transform_indices = @transform_3, window_bounds = array<i64: 4, 8, 32>}, {pipeline_mode = #tpu.pipeline_mode<synchronous>, transform_indices = @transform_4, window_bounds = array<i64: 1, 32>}, {pipeline_mode = #tpu.pipeline_mode<synchronous>, transform_indices = @transform_5, window_bounds = array<i64: 32, 64>}, {pipeline_mode = #tpu.pipeline_mode<synchronous>, transform_indices = @transform_6, window_bounds = array<i64: 1, 64>}, {pipeline_mode = #tpu.pipeline_mode<synchronous>, transform_indices = @transform_7, window_bounds = array<i64: 64, 32>}, {pipeline_mode = #tpu.pipeline_mode<synchronous>, transform_indices = @transform_8, window_bounds = array<i64: 1, 32>}, {transform_indices = @transform_9, window_bounds = array<i64: 4, 8, 32>}]} {
    %c0 = arith.constant 0 : index
    %c0_0 = arith.constant 0 : index
    %c0_1 = arith.constant 0 : index
    %0 = vector.load %arg1[%c0, %c0_0, %c0_1] : memref<4x8x32xf32, #tpu.memory_space<vmem>>, vector<4x8x32xf32>
    %1 = vector.shape_cast %0 : vector<4x8x32xf32> to vector<32x32xf32>
    %2 = arith.truncf %1 : vector<32x32xf32> to vector<32x32xbf16>
    %c0_2 = arith.constant 0 : index
    %c0_3 = arith.constant 0 : index
    %3 = vector.load %arg2[%c0_2, %c0_3] : memref<32x96xbf16, #tpu.memory_space<vmem>>, vector<32x96xbf16>
    %cst = arith.constant dense<0.000000e+00> : vector<32x96xf32>
    %4 = tpu.matmul %2, %3, %cst {dimension_numbers = #tpu.dot_dimension_numbers<[1], [0], [0], [1], [0, 0, 1, 1], [], []>} : vector<32x32xbf16>, vector<32x96xbf16>, vector<32x96xf32> -> vector<32x96xf32>
    %c0_4 = arith.constant 0 : index
    %c0_5 = arith.constant 0 : index
    %5 = vector.load %arg3[%c0_4, %c0_5] : memref<1x96xf32, #tpu.memory_space<vmem>>, vector<1x96xf32>
    %6 = vector.broadcast %5 : vector<1x96xf32> to vector<32x96xf32>
    %7 = arith.addf %4, %6 : vector<32x96xf32>
    %8 = arith.truncf %7 : vector<32x96xf32> to vector<32x96xbf16>
    %9 = vector.extract_strided_slice %8 {offsets = [0, 0], sizes = [32, 8], strides = [1, 1]} : vector<32x96xbf16> to vector<32x8xbf16>
    %10 = vector.shape_cast %9 : vector<32x8xbf16> to vector<4x8x8xbf16>
    %11 = vector.extract_strided_slice %8 {offsets = [0, 8], sizes = [32, 8], strides = [1, 1]} : vector<32x96xbf16> to vector<32x8xbf16>
    %12 = vector.shape_cast %11 : vector<32x8xbf16> to vector<4x8x8xbf16>
    %13 = vector.extract_strided_slice %8 {offsets = [0, 16], sizes = [32, 8], strides = [1, 1]} : vector<32x96xbf16> to vector<32x8xbf16>
    %14 = vector.shape_cast %13 : vector<32x8xbf16> to vector<4x8x8xbf16>
    %15 = vector.extract_strided_slice %8 {offsets = [0, 24], sizes = [32, 8], strides = [1, 1]} : vector<32x96xbf16> to vector<32x8xbf16>
    %16 = vector.shape_cast %15 : vector<32x8xbf16> to vector<4x8x8xbf16>
    %17 = tpu.concatenate %10, %12, %14, %16 in 0 : vector<4x8x8xbf16>, vector<4x8x8xbf16>, vector<4x8x8xbf16>, vector<4x8x8xbf16> -> vector<16x8x8xbf16>
    %18 = vector.extract_strided_slice %8 {offsets = [0, 32], sizes = [32, 8], strides = [1, 1]} : vector<32x96xbf16> to vector<32x8xbf16>
    %19 = vector.shape_cast %18 : vector<32x8xbf16> to vector<4x8x8xbf16>
    %20 = vector.extract_strided_slice %8 {offsets = [0, 40], sizes = [32, 8], strides = [1, 1]} : vector<32x96xbf16> to vector<32x8xbf16>
    %21 = vector.shape_cast %20 : vector<32x8xbf16> to vector<4x8x8xbf16>
    %22 = vector.extract_strided_slice %8 {offsets = [0, 48], sizes = [32, 8], strides = [1, 1]} : vector<32x96xbf16> to vector<32x8xbf16>
    %23 = vector.shape_cast %22 : vector<32x8xbf16> to vector<4x8x8xbf16>
    %24 = vector.extract_strided_slice %8 {offsets = [0, 56], sizes = [32, 8], strides = [1, 1]} : vector<32x96xbf16> to vector<32x8xbf16>
    %25 = vector.shape_cast %24 : vector<32x8xbf16> to vector<4x8x8xbf16>
    %26 = tpu.concatenate %19, %21, %23, %25 in 0 : vector<4x8x8xbf16>, vector<4x8x8xbf16>, vector<4x8x8xbf16>, vector<4x8x8xbf16> -> vector<16x8x8xbf16>
    %27 = vector.extract_strided_slice %8 {offsets = [0, 64], sizes = [32, 8], strides = [1, 1]} : vector<32x96xbf16> to vector<32x8xbf16>
    %28 = vector.shape_cast %27 : vector<32x8xbf16> to vector<4x8x8xbf16>
    %29 = vector.extract_strided_slice %8 {offsets = [0, 72], sizes = [32, 8], strides = [1, 1]} : vector<32x96xbf16> to vector<32x8xbf16>
    %30 = vector.shape_cast %29 : vector<32x8xbf16> to vector<4x8x8xbf16>
    %31 = vector.extract_strided_slice %8 {offsets = [0, 80], sizes = [32, 8], strides = [1, 1]} : vector<32x96xbf16> to vector<32x8xbf16>
    %32 = vector.shape_cast %31 : vector<32x8xbf16> to vector<4x8x8xbf16>
    %33 = vector.extract_strided_slice %8 {offsets = [0, 88], sizes = [32, 8], strides = [1, 1]} : vector<32x96xbf16> to vector<32x8xbf16>
    %34 = vector.shape_cast %33 : vector<32x8xbf16> to vector<4x8x8xbf16>
    %35 = tpu.concatenate %28, %30, %32, %34 in 0 : vector<4x8x8xbf16>, vector<4x8x8xbf16>, vector<4x8x8xbf16>, vector<4x8x8xbf16> -> vector<16x8x8xbf16>
    "tpu.trace_start"() <{level = 10 : i32, message = "bqd,bkd->bqk"}> : () -> ()
    %cst_6 = arith.constant dense<0.000000e+00> : vector<16x8x8xf32>
    %36 = tpu.matmul %17, %26, %cst_6 {dimension_numbers = #tpu.dot_dimension_numbers<[2], [2], [1], [1], [0, 0, 0, 1, 1, 1], [0], [0]>} : vector<16x8x8xbf16>, vector<16x8x8xbf16>, vector<16x8x8xf32> -> vector<16x8x8xf32>
    "tpu.trace_stop"() : () -> ()
    %cst_7 = arith.constant dense<0xFF800000> : vector<16x8xf32>
    %37 = vector.multi_reduction <maximumf>, %36, %cst_7 [2] : vector<16x8x8xf32> to vector<16x8xf32>
    %38 = vector.shape_cast %37 : vector<16x8xf32> to vector<16x8x1xf32>
    %39 = vector.broadcast %38 : vector<16x8x1xf32> to vector<16x8x8xf32>
    %40 = arith.subf %36, %39 : vector<16x8x8xf32>
    %41 = math.exp %40 : vector<16x8x8xf32>
    %cst_8 = arith.constant dense<0.000000e+00> : vector<16x8xf32>
    %42 = vector.multi_reduction <add>, %41, %cst_8 [2] : vector<16x8x8xf32> to vector<16x8xf32>
    %43 = vector.shape_cast %42 : vector<16x8xf32> to vector<16x8x1xf32>
    %44 = tpu.reciprocal %43 {approx = true} : vector<16x8x1xf32> -> vector<16x8x1xf32>
    %45 = vector.broadcast %44 : vector<16x8x1xf32> to vector<16x8x8xf32>
    %46 = arith.mulf %41, %45 : vector<16x8x8xf32>
    %47 = arith.truncf %46 : vector<16x8x8xf32> to vector<16x8x8xbf16>
    "tpu.trace_start"() <{level = 10 : i32, message = "bqk,bkd->bqd"}> : () -> ()
    %cst_9 = arith.constant dense<0.000000e+00> : vector<16x8x8xf32>
    %48 = tpu.matmul %47, %35, %cst_9 {dimension_numbers = #tpu.dot_dimension_numbers<[2], [1], [1], [2], [0, 0, 0, 1, 1, 2], [0], [0]>} : vector<16x8x8xbf16>, vector<16x8x8xbf16>, vector<16x8x8xf32> -> vector<16x8x8xf32>
    "tpu.trace_stop"() : () -> ()
    %49 = vector.shape_cast %48 : vector<16x8x8xf32> to vector<4x32x8xf32>
    %50 = arith.truncf %49 : vector<4x32x8xf32> to vector<4x32x8xbf16>
    %c0_10 = arith.constant 0 : index
    %c0_11 = arith.constant 0 : index
    %c0_12 = arith.constant 0 : index
    %51 = vector.load %arg4[%c0_10, %c0_11, %c0_12] : memref<4x8x32xbf16, #tpu.memory_space<vmem>>, vector<4x8x32xbf16>
    "tpu.trace_start"() <{level = 10 : i32, message = "hrd,hde->hre"}> : () -> ()
    %cst_13 = arith.constant dense<0.000000e+00> : vector<4x32x32xf32>
    %52 = tpu.matmul %50, %51, %cst_13 {dimension_numbers = #tpu.dot_dimension_numbers<[2], [1], [1], [2], [0, 0, 0, 1, 1, 2], [0], [0]>} : vector<4x32x8xbf16>, vector<4x8x32xbf16>, vector<4x32x32xf32> -> vector<4x32x32xf32>
    "tpu.trace_stop"() : () -> ()
    %cst_14 = arith.constant dense<0.000000e+00> : vector<32x32xf32>
    %53 = vector.multi_reduction <add>, %52, %cst_14 [0] : vector<4x32x32xf32> to vector<32x32xf32>
    %c0_15 = arith.constant 0 : index
    %c0_16 = arith.constant 0 : index
    %54 = vector.load %arg5[%c0_15, %c0_16] : memref<1x32xf32, #tpu.memory_space<vmem>>, vector<1x32xf32>
    %55 = vector.broadcast %54 : vector<1x32xf32> to vector<32x32xf32>
    %56 = arith.addf %53, %55 : vector<32x32xf32>
    %57 = arith.addf %56, %1 : vector<32x32xf32>
    %58 = arith.truncf %57 : vector<32x32xf32> to vector<32x32xbf16>
    %c0_17 = arith.constant 0 : index
    %c0_18 = arith.constant 0 : index
    %59 = vector.load %arg6[%c0_17, %c0_18] : memref<32x64xbf16, #tpu.memory_space<vmem>>, vector<32x64xbf16>
    %cst_19 = arith.constant dense<0.000000e+00> : vector<32x64xf32>
    %60 = tpu.matmul %58, %59, %cst_19 {dimension_numbers = #tpu.dot_dimension_numbers<[1], [0], [0], [1], [0, 0, 1, 1], [], []>} : vector<32x32xbf16>, vector<32x64xbf16>, vector<32x64xf32> -> vector<32x64xf32>
    %c0_20 = arith.constant 0 : index
    %c0_21 = arith.constant 0 : index
    %61 = vector.load %arg7[%c0_20, %c0_21] : memref<1x64xf32, #tpu.memory_space<vmem>>, vector<1x64xf32>
    %62 = vector.broadcast %61 : vector<1x64xf32> to vector<32x64xf32>
    %63 = arith.addf %60, %62 : vector<32x64xf32>
    %cst_22 = arith.constant 0.000000e+00 : f32
    %64 = vector.broadcast %cst_22 : f32 to vector<32x64xf32>
    %65 = arith.maximumf %63, %64 : vector<32x64xf32>
    %66 = arith.truncf %65 : vector<32x64xf32> to vector<32x64xbf16>
    %c0_23 = arith.constant 0 : index
    %c0_24 = arith.constant 0 : index
    %67 = vector.load %arg8[%c0_23, %c0_24] : memref<64x32xbf16, #tpu.memory_space<vmem>>, vector<64x32xbf16>
    %cst_25 = arith.constant dense<0.000000e+00> : vector<32x32xf32>
    %68 = tpu.matmul %66, %67, %cst_25 {dimension_numbers = #tpu.dot_dimension_numbers<[1], [0], [0], [1], [0, 0, 1, 1], [], []>} : vector<32x64xbf16>, vector<64x32xbf16>, vector<32x32xf32> -> vector<32x32xf32>
    %c0_26 = arith.constant 0 : index
    %c0_27 = arith.constant 0 : index
    %69 = vector.load %arg9[%c0_26, %c0_27] : memref<1x32xf32, #tpu.memory_space<vmem>>, vector<1x32xf32>
    %70 = vector.broadcast %69 : vector<1x32xf32> to vector<32x32xf32>
    %71 = arith.addf %68, %70 : vector<32x32xf32>
    %72 = arith.addf %71, %57 : vector<32x32xf32>
    %73 = vector.shape_cast %72 : vector<32x32xf32> to vector<4x8x32xf32>
    %c0_28 = arith.constant 0 : index
    %c0_29 = arith.constant 0 : index
    %c0_30 = arith.constant 0 : index
    %74 = vector.load %arg10[%c0_28, %c0_29, %c0_30] : memref<4x8x32xf32, #tpu.memory_space<vmem>>, vector<4x8x32xf32>
    tpu.vector_store %arg10[%c0_28, %c0_29, %c0_30], %73 {strides = array<i32>} : memref<4x8x32xf32, #tpu.memory_space<vmem>>, vector<4x8x32xf32>,
    return
  }
  func.func @transform_0(%arg0: i32) -> (i32, i32, i32) {
    %c0_i32 = arith.constant 0 : i32
    %c0_i32_0 = arith.constant 0 : i32
    %c0_i32_1 = arith.constant 0 : i32
    return %arg0, %c0_i32, %c0_i32_0 : i32, i32, i32
  }
  func.func @transform_1(%arg0: i32) -> (i32, i32) {
    %c0_i32 = arith.constant 0 : i32
    %c0_i32_0 = arith.constant 0 : i32
    %c0_i32_1 = arith.constant 0 : i32
    return %c0_i32, %c0_i32_0 : i32, i32
  }
  func.func @transform_2(%arg0: i32) -> (i32, i32) {
    %c0_i32 = arith.constant 0 : i32
    %c0_i32_0 = arith.constant 0 : i32
    %c0_i32_1 = arith.constant 0 : i32
    return %c0_i32, %c0_i32_0 : i32, i32
  }
  func.func @transform_3(%arg0: i32) -> (i32, i32, i32) {
    %c0_i32 = arith.constant 0 : i32
    %c0_i32_0 = arith.constant 0 : i32
    %c0_i32_1 = arith.constant 0 : i32
    %c0_i32_2 = arith.constant 0 : i32
    return %c0_i32, %c0_i32_0, %c0_i32_1 : i32, i32, i32
  }
  func.func @transform_4(%arg0: i32) -> (i32, i32) {
    %c0_i32 = arith.constant 0 : i32
    %c0_i32_0 = arith.constant 0 : i32
    %c0_i32_1 = arith.constant 0 : i32
    return %c0_i32, %c0_i32_0 : i32, i32
  }
  func.func @transform_5(%arg0: i32) -> (i32, i32) {
    %c0_i32 = arith.constant 0 : i32
    %c0_i32_0 = arith.constant 0 : i32
    %c0_i32_1 = arith.constant 0 : i32
    return %c0_i32, %c0_i32_0 : i32, i32
  }
  func.func @transform_6(%arg0: i32) -> (i32, i32) {
    %c0_i32 = arith.constant 0 : i32
    %c0_i32_0 = arith.constant 0 : i32
    %c0_i32_1 = arith.constant 0 : i32
    return %c0_i32, %c0_i32_0 : i32, i32
  }
  func.func @transform_7(%arg0: i32) -> (i32, i32) {
    %c0_i32 = arith.constant 0 : i32
    %c0_i32_0 = arith.constant 0 : i32
    %c0_i32_1 = arith.constant 0 : i32
    return %c0_i32, %c0_i32_0 : i32, i32
  }
  func.func @transform_8(%arg0: i32) -> (i32, i32) {
    %c0_i32 = arith.constant 0 : i32
    %c0_i32_0 = arith.constant 0 : i32
    %c0_i32_1 = arith.constant 0 : i32
    return %c0_i32, %c0_i32_0 : i32, i32
  }
  func.func @transform_9(%arg0: i32) -> (i32, i32, i32) {
    %c0_i32 = arith.constant 0 : i32
    %c0_i32_0 = arith.constant 0 : i32
    %c0_i32_1 = arith.constant 0 : i32
    return %arg0, %c0_i32, %c0_i32_0 : i32, i32, i32
  }
}

</mosaic_0001>

<bundles_post_ra>
// kernel: _run_block.1
= control target key start
LH: loop header
LB: loop body
LE: loop exit
PB: predicated region body
PF: predicated region fallthrough
CT: control target
= control target key end

     0   :  { %vm63_vm0 = vcmask 261120   ;;  %s3617_s0 = inlined_call_operand.vmem [shape: f32[4,8,32], index: 0, kind: input, shape index: {}]   ;;  %s3618_s1 = inlined_call_operand.vmem [shape: bf16[32,96], index: 1, kind: input, shape index: {}]   ;;  %s3619_s2 = inlined_call_operand.vmem [shape: f32[1,96], index: 2, kind: input, shape index: {}]   ;;  %s3620_s3 = inlined_call_operand.vmem [shape: bf16[4,8,32], index: 3, kind: input, shape index: {}]   ;;  %s3621_s4 = inlined_call_operand.vmem [shape: f32[1,32], index: 4, kind: input, shape index: {}]   ;;  %s3622_s5 = inlined_call_operand.vmem [shape: bf16[32,64], index: 5, kind: input, shape index: {}]   ;;  %s3623_s6 = inlined_call_operand.vmem [shape: f32[1,64], index: 6, kind: input, shape index: {}]   ;;  %s3624_s7 = inlined_call_operand.vmem [shape: bf16[64,32], index: 7, kind: input, shape index: {}]   ;;  %s3625_s8 = inlined_call_operand.vmem [shape: f32[1,32], index: 8, kind: input, shape index: {}]   ;;  %s3626_s9 = inlined_call_operand.hbm [shape: f32[4,8,32], index: 9, kind: output, shape index: {}]  }
   0x1   :  { %v2827_v0 = vld [vmem:[%s3618_s1] sm:$0xff]   ;;  %v2828_v1 = vld [vmem:[%s3618_s1 + $0x8] sm:$0xff]   ;;  %v36_v4 = vld [vmem:[%s3617_s0 + $0x10] sm:$0xff] }
   0x2   :  { %2569 = vmatprep.subr.bf16.mxu1 %v2827_v0  ;;  %v34_v2 = vld [vmem:[%s3617_s0] sm:$0xff]  ;;  %v35_v3 = vld [vmem:[%s3617_s0 + $0x8] sm:$0xff]  ;;  %v37_v6 = vld [vmem:[%s3617_s0 + $0x18] sm:$0xff] }
   0x3   :  { %2570 = vmatpush3.bf16.msra.mxu1 %v2827_v0  ;;  %v38_v5 = vpack.c.bf16 %v35_v3, %v34_v2  ;;  %v39_v7 = vpack.c.bf16 %v37_v6, %v36_v4 }
   0x4   :  { %2571 = vmatprep.subr.bf16.mxu1 %v2828_v1 }
   0x5   :  { %2573 = vmatprep.mubr.msk.bf16.mxu1 %vm63_vm0, %v38_v5 }
   0x7   :  { %2572 = vmatpush3.bf16.msra.mxu1 %v2828_v1 }
   0x8   :  { %14 = vsyncpa [#allocation3], 0  ;;  %v2401_v8 = vld [vmem:[%s3619_s2] ss:$0 sm:$0xff]  ;;  %s2927_s22 = smov 120   ;;  %s2928_s2 = smov 112  }
   0x9   :  { %v2929_v21 = vmov 0.0   ;;  %s2930_s23 = smov 104   ;;  %vm2931_vm1 = vmmov 0   ;;  %s2932_s24 = smov 96   ;;  %vm157_vm2 = vcmask 64512   ;;  %vm1145_vm3 = vcmask 1043456  }
   0xa   :  { %2574 = vmatmul.mubr.msk.bf16.vlgmr.msra.gmra.mrb[0].mxu1 %vm63_vm0, %v39_v7  ;;  %2583 = vmatprep.subr.bf16.mxu0 %v2929_v21  ;;  %s2933_s25 = smov 64   ;;  %vm2321_vm4 = vcmask 523264  }
   0xb   :  { %2577 = vmatprep.subr.bf16.mxu1 %v2929_v21  ;;  %2585 = vmatprep.mubr.msk.bf16.mxu0 %vm2931_vm1, %v2929_v21 }
   0xc   :  { %2579 = vmatprep.mubr.msk.bf16.mxu1 %vm2931_vm1, %v2929_v21 }
  0xdd   :  { %v2575_v9 = vpop.f32.mrb[0].mxu1 }
  0xde   :  { %v113_v10 = vadd.f32 %v2575_v9, %v2401_v8  ;;  %v104_v11 = vpop.f32.mrb[1].mxu1 }
  0xdf   :  { %v105_v12 = vadd.f32 %v2401_v8, %v104_v11  ;;  %v2576_v13 = vpop.f32.mrb[2].mxu1 }
  0xe0   :  { %v3010_v14 = vpack.c.bf16 %v113_v10, %v113_v10  ;;  %v116_v15 = vadd.f32 %v2576_v13, %v2401_v8  ;;  %v107_v16 = vpop.f32.mrb[3].mxu1 }
  0xe1   :  { %v3012_v17 = vpack.c.bf16 %v105_v12, %v105_v12  ;;  %v108_v18 = vadd.f32 %v2401_v8, %v107_v16 }
  0xe2   :  { %135 = vrot.lane.b32.xlu1 %v3010_v14, %s2927_s22  ;;  %v3016_v19 = vpack.c.bf16 %v116_v15, %v116_v15 }
  0xe3   :  { %131 = vrot.lane.b32.xlu0 %v3012_v17, %s2927_s22  ;;  %v3018_v20 = vpack.c.bf16 %v108_v18, %v108_v18 }
  0xe6   :  { %137 = vrot.lane.b32.xlu1 %v3016_v19, %s2927_s22 }
  0xe7   :  { %133 = vrot.lane.b32.xlu0 %v3018_v20, %s2927_s22 }
  0xea   :  { %141 = vrot.lane.b32.xlu1 %v3018_v20, %s2928_s2 }
  0xeb   :  { %139 = vrot.lane.b32.xlu0 %v3012_v17, %s2928_s2 }
  0xee   :  { %145 = vrot.lane.b32.xlu1 %v3016_v19, %s2928_s2 }
  0xef   :  { %143 = vrot.lane.b32.xlu0 %v3010_v14, %s2928_s2 }
  0xf2   :  { %149 = vrot.lane.b32.xlu1 %v3018_v20, %s2930_s23 }
  0xf3   :  { %147 = vrot.lane.b32.xlu0 %v3012_v17, %s2930_s23 }
  0xf6   :  { %153 = vrot.lane.b32.xlu1 %v3016_v19, %s2930_s23 }
  0xf7   :  { %151 = vrot.lane.b32.xlu0 %v3010_v14, %s2930_s23 }
  0xfa   :  { %204 = vrot.lane.b32.xlu1 %v3018_v20, %s2932_s24 }
  0xfb   :  { %155 = vrot.lane.b32.xlu0 %v3012_v17, %s2932_s24 }
  0xfe   :  { %300 = vrot.lane.b32.xlu1 %v3016_v19, %s2932_s24 }
  0xff   :  { %252 = vrot.lane.b32.xlu0 %v3010_v14, %s2932_s24 }
 0x154   :  { %v3044_v22 = vpop.permute.xlu1 %135 }
 0x155   :  { %v3046_v23 = vpop.permute.xlu0 %131  ;;  %v3057_v27 = vcombine.low %v3044_v22, %v3044_v22 }
 0x156   :  { %v2414_v24 = vcombine.low %v3046_v23, %v3046_v23 }
 0x158   :  { %v3050_v25 = vpop.permute.xlu1 %137  ;;  %350 = vrot.lane.b32.xlu0 %v2414_v24, %s2932_s24 }
 0x159   :  { %v3053_v26 = vpop.permute.xlu0 %133  ;;  %v2420_v31 = vcombine.low %v3050_v25, %v3050_v25 }
 0x15a   :  { %v2416_v28 = vcombine.low %v3053_v26, %v3053_v26 }
 0x15c   :  { %v3061_v29 = vpop.permute.xlu1 %141  ;;  %450 = vrot.lane.b32.xlu0 %v3057_v27, %s2932_s24  ;;  %400 = vrot.lane.b32.xlu1 %v2416_v28, %s2932_s24 }
 0x15d   :  { %v3066_v30 = vpop.permute.xlu0 %139  ;;  %v3080_v35 = vcombine.low %v3061_v29, %v3061_v29 }
 0x15e   :  { %v2422_v32 = vcombine.low %v3066_v30, %v3066_v30 }
 0x160   :  { %v3072_v33 = vpop.permute.xlu1 %145  ;;  %500 = vrot.lane.b32.xlu1 %v2420_v31, %s2932_s24  ;;  %550 = vrot.lane.b32.xlu0 %v2422_v32, %s2932_s24 }
 0x161   :  { %v3076_v34 = vpop.permute.xlu0 %143  ;;  %v3096_v39 = vcombine.low %v3072_v33, %v3072_v33 }
 0x162   :  { %v3084_v36 = vcombine.low %v3076_v34, %v3076_v34 }
 0x164   :  { %v3086_v37 = vpop.permute.xlu1 %149  ;;  %600 = vrot.lane.b32.xlu1 %v3080_v35, %s2932_s24  ;;  %650 = vrot.lane.b32.xlu0 %v3084_v36, %s2932_s24 }
 0x165   :  { %v3092_v38 = vpop.permute.xlu0 %147  ;;  %v3112_v43 = vcombine.low %v3086_v37, %v3086_v37 }
 0x166   :  { %v3100_v40 = vcombine.low %v3092_v38, %v3092_v38 }
 0x168   :  { %v3102_v41 = vpop.permute.xlu1 %153  ;;  %700 = vrot.lane.b32.xlu1 %v3096_v39, %s2932_s24  ;;  %750 = vrot.lane.b32.xlu0 %v3100_v40, %s2932_s24 }
 0x169   :  { %v3108_v42 = vpop.permute.xlu0 %151  ;;  %v3125_v48 = vcombine.low %v3102_v41, %v3102_v41 }
 0x16a   :  { %v3116_v44 = vcombine.low %v3108_v42, %v3108_v42 }
 0x16c   :  { %v205_v45 = vpop.permute.xlu1 %204  ;;  %800 = vrot.lane.b32.xlu1 %v3112_v43, %s2932_s24  ;;  %850 = vrot.lane.b32.xlu0 %v3116_v44, %s2932_s24 }
 0x16d   :  { %v156_v46 = vpop.permute.xlu0 %155  ;;  %v210_v47 = vsel %vm157_vm2, %v205_v45, 0 }
 0x16e   :  { %v162_v49 = vsel %vm157_vm2, %v156_v46, 0  ;;  %2584 = vmatpush3.bf16.xpose.msra.mxu0 %v210_v47 }
 0x16f   :  { %2578 = vmatpush3.bf16.xpose.msra.mxu1 %v162_v49  ;;  %2595 = vmatprep.subr.bf16.mxu0 %v2929_v21 }
 0x170   :  { %900 = vrot.lane.b32.xlu1 %v3125_v48, %s2932_s24  ;;  %1189 = vrot.lane.b32.xlu0 %v3018_v20, %s2933_s25  ;;  %v301_v50 = vpop.permute.xlu1 %300 }
 0x171   :  { %2589 = vmatprep.subr.bf16.mxu1 %v2929_v21  ;;  %v253_v51 = vpop.permute.xlu0 %252  ;;  %v306_v52 = vsel %vm157_vm2, %v301_v50, 0 }
 0x172   :  { %v258_v53 = vsel %vm157_vm2, %v253_v51, 0 }
 0x174   :  { %1140 = vrot.lane.b32.xlu1 %v3012_v17, %s2933_s25  ;;  %1285 = vrot.lane.b32.xlu0 %v3016_v19, %s2933_s25 }
 0x175   :  { %2586 = vmatmul.mubr.msk.bf16.vlgmr.msra.gmra.mrb[0].mxu0 %vm157_vm2, %v3018_v20 }
 0x176   :  { %2580 = vmatmul.mubr.msk.bf16.vlgmr.msra.gmra.mrb[4].mxu1 %vm157_vm2, %v3012_v17  ;;  %2596 = vmatpush3.bf16.xpose.msra.mxu0 %v306_v52 }
 0x177   :  { %2590 = vmatpush3.bf16.xpose.msra.mxu1 %v258_v53  ;;  %2597 = vmatprep.mubr.msk.bf16.mxu0 %vm2931_vm1, %v2929_v21 }
 0x178   :  { %1237 = vrot.lane.b32.xlu1 %v3010_v14, %s2933_s25  ;;  %1477 = vrot.lane.b32.xlu0 %v2420_v31, %s2933_s25 }
 0x179   :  { %2591 = vmatprep.mubr.msk.bf16.mxu1 %vm2931_vm1, %v2929_v21  ;;  %2601 = vmatprep.subr.bf16.mxu1 %v2929_v21 }
 0x17a   :  { %2607 = vmatprep.subr.bf16.mxu0 %v2929_v21 }
 0x17c   :  { %1333 = vrot.lane.b32.xlu1 %v2414_v24, %s2933_s25  ;;  %1381 = vrot.lane.b32.xlu0 %v2416_v28, %s2933_s25 }
 0x17d   :  { %2598 = vmatmul.mubr.msk.bf16.vlgmr.msra.gmra.mrb[4].mxu0 %vm157_vm2, %v3016_v19 }
 0x17e   :  { %2592 = vmatmul.mubr.msk.bf16.vlgmr.msra.gmra.mrb[8].mxu1 %vm157_vm2, %v3010_v14  ;;  %2609 = vmatprep.mubr.msk.bf16.mxu0 %vm2931_vm1, %v2929_v21 }
 0x17f   :  { %2603 = vmatprep.mubr.msk.bf16.mxu1 %vm2931_vm1, %v2929_v21 }
 0x180   :  { %1429 = vrot.lane.b32.xlu1 %v3057_v27, %s2933_s25 }
 0x184   :  { %1525 = vrot.lane.b32.xlu1 %v2422_v32, %s2933_s25 }
 0x1ca   :  { %v351_v54 = vpop.permute.xlu0 %350 }
 0x1cb   :  { %v356_v55 = vsel %vm157_vm2, %v351_v54, 0 }
 0x1cc   :  { %2602 = vmatpush3.bf16.xpose.msra.mxu1 %v356_v55 }
 0x1cd   :  { %2613 = vmatprep.subr.bf16.mxu1 %v2929_v21 }
 0x1ce   :  { %v401_v56 = vpop.permute.xlu1 %400  ;;  %v451_v58 = vpop.permute.xlu0 %450 }
 0x1cf   :  { %v406_v57 = vsel %vm157_vm2, %v401_v56, 0  ;;  %v456_v59 = vsel %vm157_vm2, %v451_v58, 0 }
 0x1d0   :  { %2608 = vmatpush3.bf16.xpose.msra.mxu0 %v406_v57 }
 0x1d1   :  { %2619 = vmatprep.subr.bf16.mxu0 %v2929_v21 }
 0x1d2   :  { %v501_v60 = vpop.permute.xlu1 %500  ;;  %v551_v62 = vpop.permute.xlu0 %550 }
 0x1d3   :  { %2604 = vmatmul.mubr.msk.bf16.vlgmr.msra.gmra.mrb[12].mxu1 %vm157_vm2, %v3046_v23  ;;  %v506_v61 = vsel %vm157_vm2, %v501_v60, 0  ;;  %v556_v63 = vsel %vm157_vm2, %v551_v62, 0 }
 0x1d4   :  { %2614 = vmatpush3.bf16.xpose.msra.mxu1 %v456_v59  ;;  %2615 = vmatprep.mubr.msk.bf16.mxu1 %vm2931_vm1, %v2929_v21 }
 0x1d5   :  { %2625 = vmatprep.subr.bf16.mxu1 %v2929_v21 }
 0x1d6   :  { %v601_v0 = vpop.permute.xlu1 %600  ;;  %v651_v2 = vpop.permute.xlu0 %650 }
 0x1d7   :  { %2610 = vmatmul.mubr.msk.bf16.vlgmr.msra.gmra.mrb[8].mxu0 %vm157_vm2, %v3053_v26  ;;  %v606_v1 = vsel %vm157_vm2, %v601_v0, 0  ;;  %v656_v3 = vsel %vm157_vm2, %v651_v2, 0 }
 0x1d8   :  { %2620 = vmatpush3.bf16.xpose.msra.mxu0 %v506_v61  ;;  %2621 = vmatprep.mubr.msk.bf16.mxu0 %vm2931_vm1, %v2929_v21 }
 0x1d9   :  { %2631 = vmatprep.subr.bf16.mxu0 %v2929_v21 }
 0x1da   :  { %v701_v4 = vpop.permute.xlu1 %700  ;;  %v751_v6 = vpop.permute.xlu0 %750 }
 0x1db   :  { %2616 = vmatmul.mubr.msk.bf16.vlgmr.msra.gmra.mrb[16].mxu1 %vm157_vm2, %v3044_v22  ;;  %v706_v5 = vsel %vm157_vm2, %v701_v4, 0  ;;  %v756_v7 = vsel %vm157_vm2, %v751_v6, 0 }
 0x1dc   :  { %2626 = vmatpush3.bf16.xpose.msra.mxu1 %v556_v63  ;;  %2627 = vmatprep.mubr.msk.bf16.mxu1 %vm2931_vm1, %v2929_v21 }
 0x1dd   :  { %2637 = vmatprep.subr.bf16.mxu1 %v2929_v21 }
 0x1de   :  { %v801_v8 = vpop.permute.xlu1 %800  ;;  %v851_v10 = vpop.permute.xlu0 %850 }
 0x1df   :  { %2622 = vmatmul.mubr.msk.bf16.vlgmr.msra.gmra.mrb[12].mxu0 %vm157_vm2, %v3050_v25  ;;  %v806_v9 = vsel %vm157_vm2, %v801_v8, 0  ;;  %v856_v12 = vsel %vm157_vm2, %v851_v10, 0 }
 0x1e0   :  { %2632 = vmatpush3.bf16.xpose.msra.mxu0 %v606_v1  ;;  %2633 = vmatprep.mubr.msk.bf16.mxu0 %vm2931_vm1, %v2929_v21 }
 0x1e1   :  { %2643 = vmatprep.subr.bf16.mxu0 %v2929_v21 }
 0x1e2   :  { %v901_v11 = vpop.permute.xlu1 %900  ;;  %v1190_v16 = vpop.permute.xlu0 %1189 }
 0x1e3   :  { %2628 = vmatmul.mubr.msk.bf16.vlgmr.msra.gmra.mrb[20].mxu1 %vm157_vm2, %v3066_v30  ;;  %v906_v13 = vsel %vm157_vm2, %v901_v11, 0  ;;  %v1195_v17 = vsel %vm1145_vm3, %v1190_v16, 0 }
 0x1e4   :  { %2638 = vmatpush3.bf16.xpose.msra.mxu1 %v656_v3  ;;  %2639 = vmatprep.mubr.msk.bf16.mxu1 %vm2931_vm1, %v2929_v21 }
 0x1e5   :  { %2649 = vmatprep.subr.bf16.mxu1 %v2929_v21 }
 0x1e6   :  { %v1141_v14 = vpop.permute.xlu1 %1140 }
 0x1e7   :  { %2634 = vmatmul.mubr.msk.bf16.vlgmr.msra.gmra.mrb[16].mxu0 %vm157_vm2, %v3061_v29  ;;  %v1147_v15 = vsel %vm1145_vm3, %v1141_v14, 0 }
 0x1e8   :  { %2644 = vmatpush3.bf16.xpose.msra.mxu0 %v706_v5  ;;  %2645 = vmatprep.mubr.msk.bf16.mxu0 %vm2931_vm1, %v2929_v21 }
 0x1e9   :  { %2655 = vmatprep.subr.bf16.mxu0 %v2929_v21 }
 0x1eb   :  { %2640 = vmatmul.mubr.msk.bf16.vlgmr.msra.gmra.mrb[24].mxu1 %vm157_vm2, %v3076_v34 }
 0x1ec   :  { %2650 = vmatpush3.bf16.xpose.msra.mxu1 %v756_v7  ;;  %2651 = vmatprep.mubr.msk.bf16.mxu1 %vm2931_vm1, %v2929_v21 }
 0x1ed   :  { %2661 = vmatprep.subr.bf16.mxu1 %v2929_v21 }
 0x1ef   :  { %2646 = vmatmul.mubr.msk.bf16.vlgmr.msra.gmra.mrb[20].mxu0 %vm157_vm2, %v3072_v33 }
 0x1f0   :  { %2656 = vmatpush3.bf16.xpose.msra.mxu0 %v806_v9  ;;  %2657 = vmatprep.mubr.msk.bf16.mxu0 %vm2931_vm1, %v2929_v21 }
 0x1f1   :  { %2667 = vmatprep.subr.bf16.mxu0 %v2929_v21 }
 0x1f3   :  { %2652 = vmatmul.mubr.msk.bf16.vlgmr.msra.gmra.mrb[28].mxu1 %vm157_vm2, %v3092_v38 }
 0x1f4   :  { %2662 = vmatpush3.bf16.xpose.msra.mxu1 %v856_v12  ;;  %2663 = vmatprep.mubr.msk.bf16.mxu1 %vm2931_vm1, %v2929_v21 }
 0x1f5   :  { %2673 = vmatprep.subr.bf16.mxu1 %v2929_v21 }
 0x1f7   :  { %2658 = vmatmul.mubr.msk.bf16.vlgmr.msra.gmra.mrb[24].mxu0 %vm157_vm2, %v3086_v37 }
 0x1f8   :  { %2668 = vmatpush3.bf16.xpose.msra.mxu0 %v906_v13  ;;  %2669 = vmatprep.mubr.msk.bf16.mxu0 %vm2931_vm1, %v2929_v21 }
 0x1f9   :  { %2679 = vmatprep.subr.bf16.mxu0 %v2929_v21 }
 0x1fb   :  { %2664 = vmatmul.mubr.msk.bf16.vlgmr.msra.gmra.mrb[32].mxu1 %vm157_vm2, %v3108_v42 }
 0x1fc   :  { %2674 = vmatpush3.bf16.msra.mxu1 %v1147_v15  ;;  %2675 = vmatprep.mubr.msk.bf16.mxu1 %vm2931_vm1, %v2929_v21 }
 0x1fd   :  { %2685 = vmatprep.subr.bf16.mxu1 %v2929_v21 }
 0x1ff   :  { %2670 = vmatmul.mubr.msk.bf16.vlgmr.msra.gmra.mrb[28].mxu0 %vm157_vm2, %v3102_v41 }
 0x200   :  { %2680 = vmatpush3.bf16.msra.mxu0 %v1195_v17  ;;  %2681 = vmatprep.mubr.msk.bf16.mxu0 %vm2931_vm1, %v2929_v21 }
 0x201   :  { %2691 = vmatprep.subr.bf16.mxu0 %v2929_v21 }
 0x248   :  { %v3242_v18 = vpop.f32.mrb[0].mxu0 }
 0x249   :  { %v3244_v19 = vpop.f32.mrb[4].mxu1  ;;  %v2587_v20 = vpop.f32.mrb[1].mxu0  ;;  %v951_v22 = vsel %vm157_vm2, %v3242_v18, -inf }
 0x24a   :  { %v249_v23 = vpop.f32.mrb[2].mxu0  ;;  %952 = vmax.xlane.f32.xlu1 %v951_v22  ;;  %v2581_v24 = vpop.f32.mrb[5].mxu1  ;;  %v948_v25 = vsel %vm157_vm2, %v3244_v19, -inf }
 0x24b   :  { %v2588_v26 = vpop.f32.mrb[3].mxu0  ;;  %949 = vmax.xlane.f32.xlu0 %v948_v25  ;;  %v201_v27 = vpop.f32.mrb[6].mxu1 }
 0x24c   :  { %v2582_v28 = vpop.f32.mrb[7].mxu1 }
 0x24d   :  { %v3294_v28 = vpop.permute.xlu0 %1285 }
 0x250   :  { %v3250_v29 = vpop.f32.mrb[4].mxu0 }
 0x251   :  { %v3252_v30 = vpop.f32.mrb[8].mxu1  ;;  %v2599_v31 = vpop.f32.mrb[5].mxu0  ;;  %v957_v42 = vsel %vm157_vm2, %v3250_v29, -inf }
 0x252   :  { %v2593_v32 = vpop.f32.mrb[9].mxu1  ;;  %v345_v33 = vpop.f32.mrb[6].mxu0  ;;  %v954_v34 = vsel %vm157_vm2, %v3252_v30, -inf }
 0x253   :  { %v2600_v37 = vpop.f32.mrb[7].mxu0  ;;  %955 = vmax.xlane.f32.xlu0 %v954_v34  ;;  %v297_v38 = vpop.f32.mrb[10].mxu1 }
 0x254   :  { %v2594_v41 = vpop.f32.mrb[11].mxu1 }
 0x257   :  { %958 = vmax.xlane.f32.xlu0 %v957_v42  ;;  %v3300_v42 = vpop.permute.xlu0 %1477 }
 0x2a6   :  { %v3258_v45 = vpop.f32.mrb[12].mxu1 }
 0x2a7   :  { %v2605_v46 = vpop.f32.mrb[13].mxu1  ;;  %v960_v47 = vsel %vm157_vm2, %v3258_v45, -inf }
 0x2a8   :  { %961 = vmax.xlane.f32.xlu1 %v960_v47  ;;  %v395_v49 = vpop.f32.mrb[14].mxu1 }
 0x2a9   :  { %v2606_v50 = vpop.f32.mrb[15].mxu1 }
 0x2aa   :  { %v3262_v51 = vpop.f32.mrb[8].mxu0 }
 0x2ab   :  { %v2611_v52 = vpop.f32.mrb[9].mxu0  ;;  %v963_v53 = vsel %vm157_vm2, %v3262_v51, -inf }
 0x2ac   :  { %v445_v54 = vpop.f32.mrb[10].mxu0  ;;  %964 = vmax.xlane.f32.xlu0 %v963_v53 }
 0x2ad   :  { %v2612_v55 = vpop.f32.mrb[11].mxu0 }
 0x2ae   :  { %v3266_v56 = vpop.f32.mrb[16].mxu1 }
 0x2af   :  { %v2617_v57 = vpop.f32.mrb[17].mxu1  ;;  %v966_v58 = vsel %vm157_vm2, %v3266_v56, -inf }
 0x2b0   :  { %967 = vmax.xlane.f32.xlu1 %v966_v58  ;;  %v495_v59 = vpop.f32.mrb[18].mxu1  ;;  %v3310_v57 = vpop.permute.xlu0 %1381 }
 0x2b1   :  { %v2618_v60 = vpop.f32.mrb[19].mxu1 }
 0x2b2   :  { %v3270_v61 = vpop.f32.mrb[12].mxu0 }
 0x2b3   :  { %v2623_v62 = vpop.f32.mrb[13].mxu0  ;;  %v969_v63 = vsel %vm157_vm2, %v3270_v61, -inf }
 0x2b4   :  { %v545_v0 = vpop.f32.mrb[14].mxu0  ;;  %970 = vmax.xlane.f32.xlu0 %v969_v63  ;;  %v3313_v63 = vpop.permute.xlu1 %1237 }
 0x2b5   :  { %v2624_v1 = vpop.f32.mrb[15].mxu0 }
 0x2b6   :  { %v3274_v2 = vpop.f32.mrb[20].mxu1 }
 0x2b7   :  { %v2629_v3 = vpop.f32.mrb[21].mxu1  ;;  %v972_v4 = vsel %vm157_vm2, %v3274_v2, -inf }
 0x2b8   :  { %973 = vmax.xlane.f32.xlu1 %v972_v4  ;;  %v595_v5 = vpop.f32.mrb[22].mxu1  ;;  %v3315_v1 = vpop.permute.xlu1 %1333 }
 0x2b9   :  { %v2630_v6 = vpop.f32.mrb[23].mxu1 }
 0x2ba   :  { %v3278_v7 = vpop.f32.mrb[16].mxu0 }
 0x2bb   :  { %v2635_v8 = vpop.f32.mrb[17].mxu0  ;;  %v975_v9 = vsel %vm157_vm2, %v3278_v7, -inf }
 0x2bc   :  { %v645_v10 = vpop.f32.mrb[18].mxu0  ;;  %976 = vmax.xlane.f32.xlu0 %v975_v9  ;;  %v3317_v3 = vpop.permute.xlu1 %1429 }
 0x2bd   :  { %v2636_v11 = vpop.f32.mrb[19].mxu0 }
 0x2be   :  { %v3282_v12 = vpop.f32.mrb[24].mxu1 }
 0x2bf   :  { %v2641_v13 = vpop.f32.mrb[25].mxu1  ;;  %v978_v14 = vsel %vm157_vm2, %v3282_v12, -inf }
 0x2c0   :  { %979 = vmax.xlane.f32.xlu1 %v978_v14  ;;  %v695_v15 = vpop.f32.mrb[26].mxu1  ;;  %v3325_v6 = vpop.permute.xlu1 %1525 }
 0x2c1   :  { %v2642_v16 = vpop.f32.mrb[27].mxu1 }
 0x2c2   :  { %v3286_v17 = vpop.f32.mrb[20].mxu0 }
 0x2c3   :  { %v2647_v20 = vpop.f32.mrb[21].mxu0  ;;  %v981_v22 = vsel %vm157_vm2, %v3286_v17, -inf }
 0x2c4   :  { %v745_v23 = vpop.f32.mrb[22].mxu0  ;;  %982 = vmax.xlane.f32.xlu0 %v981_v22 }
 0x2c5   :  { %v2648_v24 = vpop.f32.mrb[23].mxu0 }
 0x2c6   :  { %v3290_v25 = vpop.f32.mrb[28].mxu1 }
 0x2c7   :  { %v2653_v26 = vpop.f32.mrb[29].mxu1  ;;  %v984_v27 = vsel %vm157_vm2, %v3290_v25, -inf }
 0x2c8   :  { %985 = vmax.xlane.f32.xlu1 %v984_v27  ;;  %v795_v31 = vpop.f32.mrb[30].mxu1 }
 0x2c9   :  { %v2654_v32 = vpop.f32.mrb[31].mxu1 }
 0x2ca   :  { %v3296_v33 = vpop.f32.mrb[24].mxu0 }
 0x2cb   :  { %v2659_v34 = vpop.f32.mrb[25].mxu0  ;;  %v987_v37 = vsel %vm157_vm2, %v3296_v33, -inf }
 0x2cc   :  { %v845_v38 = vpop.f32.mrb[26].mxu0  ;;  %988 = vmax.xlane.f32.xlu0 %v987_v37 }
 0x2cd   :  { %v2660_v41 = vpop.f32.mrb[27].mxu0 }
 0x2ce   :  { %v3302_v46 = vpop.f32.mrb[32].mxu1 }
 0x2cf   :  { %v2665_v47 = vpop.f32.mrb[33].mxu1  ;;  %v990_v49 = vsel %vm157_vm2, %v3302_v46, -inf }
 0x2d0   :  { %991 = vmax.xlane.f32.xlu1 %v990_v49  ;;  %v895_v50 = vpop.f32.mrb[34].mxu1 }
 0x2d1   :  { %v2666_v52 = vpop.f32.mrb[35].mxu1 }
 0x2d2   :  { %v3306_v53 = vpop.f32.mrb[28].mxu0 }
 0x2d3   :  { %v2671_v54 = vpop.f32.mrb[29].mxu0  ;;  %v993_v55 = vsel %vm157_vm2, %v3306_v53, -inf }
 0x2d4   :  { %v945_v58 = vpop.f32.mrb[30].mxu0  ;;  %994 = vmax.xlane.f32.xlu0 %v993_v55 }
 0x2d5   :  { %v2672_v59 = vpop.f32.mrb[31].mxu0 }
 0x2d7   :  { %v953_v8 = vpop.xlane.xlu1 %952 }
 0x2d8   :  { %v950_v60 = vpop.xlane.xlu0 %949  ;;  %v997_v9 = vsub.f32 %v3242_v18, %v953_v8 }
 0x2d9   :  { %v996_v62 = vsub.f32 %v3244_v19, %v950_v60 }
 0x2da   :  { %v1014_v11 = vmul.f32 1.442695, %v997_v9 }
 0x2db   :  { %v1012_v0 = vmul.f32 1.442695, %v996_v62 }
 0x2dd   :  { %2835 = vpow2.f32 %v1012_v0 }
 0x2de   :  { %2837 = vpow2.f32 %v1014_v11 }
 0x2e0   :  { %v956_v19 = vpop.xlane.xlu0 %955 }
 0x2e1   :  { %v998_v18 = vsub.f32 %v3252_v30, %v956_v19 }
 0x2e4   :  { %v959_v10 = vpop.xlane.xlu0 %958 }
 0x2e5   :  { %v999_v13 = vsub.f32 %v3250_v29, %v959_v10 }
 0x2e7   :  { %v3319_v4 = vpop.eup %2835  ;;  %v1018_v14 = vmul.f32 1.442695, %v999_v13 }
 0x2e8   :  { %v1044_v5 = vsel %vm157_vm2, %v3319_v4, 0.0 }
 0x2e9   :  { %1045 = vadd.xlane.f32.xlu1 %v1044_v5  ;;  %2839 = vpow2.f32 %v1018_v14 }
 0x2ea   :  { %1573 = vrot.lane.b32.xlu0 %v3080_v35, %s2933_s25  ;;  %v3333_v35 = vpop.eup %2837 }
 0x2eb   :  { %v1047_v15 = vsel %vm157_vm2, %v3333_v35, 0.0 }
 0x2f3   :  { %v3337_v16 = vpop.eup %2839 }
 0x2f4   :  { %v1053_v29 = vsel %vm157_vm2, %v3337_v16, 0.0 }
 0x2fa   :  { %1621 = vrot.lane.b32.xlu1 %v3084_v36, %s2933_s25  ;;  %v1016_v36 = vmul.f32 1.442695, %v998_v18 }
 0x2fc   :  { %2841 = vpow2.f32 %v1016_v36 }
 0x2fe   :  { %1669 = vrot.lane.b32.xlu1 %v3096_v39, %s2933_s25 }
 0x306   :  { %v3342_v20 = vpop.eup %2841 }
 0x307   :  { %v1050_v39 = vsel %vm157_vm2, %v3342_v20, 0.0 }
 0x309   :  { %1048 = vadd.xlane.f32.xlu0 %v1047_v15 }
 0x30d   :  { %1054 = vadd.xlane.f32.xlu0 %v1053_v29 }
 0x322   :  { %1051 = vadd.xlane.f32.xlu1 %v1050_v39 }
 0x335   :  { %v962_v22 = vpop.xlane.xlu1 %961 }
 0x336   :  { %v1000_v23 = vsub.f32 %v3258_v45, %v962_v22 }
 0x338   :  { %v1020_v24 = vmul.f32 1.442695, %v1000_v23 }
 0x339   :  { %v965_v26 = vpop.xlane.xlu0 %964 }
 0x33a   :  { %2843 = vpow2.f32 %v1020_v24  ;;  %v1001_v30 = vsub.f32 %v3262_v51, %v965_v26 }
 0x33c   :  { %v1022_v27 = vmul.f32 1.442695, %v1001_v30 }
 0x33d   :  { %v968_v31 = vpop.xlane.xlu1 %967 }
 0x33e   :  { %2845 = vpow2.f32 %v1022_v27  ;;  %v1002_v32 = vsub.f32 %v3266_v56, %v968_v31 }
 0x340   :  { %v1024_v34 = vmul.f32 1.442695, %v1002_v32 }
 0x341   :  { %v971_v37 = vpop.xlane.xlu0 %970 }
 0x342   :  { %2847 = vpow2.f32 %v1024_v34  ;;  %v1003_v38 = vsub.f32 %v3270_v61, %v971_v37 }
 0x344   :  { %v3350_v41 = vpop.eup %2843  ;;  %v1026_v47 = vmul.f32 1.442695, %v1003_v38 }
 0x345   :  { %v974_v49 = vpop.xlane.xlu1 %973  ;;  %v1056_v45 = vsel %vm157_vm2, %v3350_v41, 0.0 }
 0x346   :  { %2849 = vpow2.f32 %v1026_v47  ;;  %v1004_v51 = vsub.f32 %v3274_v2, %v974_v49  ;;  %1057 = vadd.xlane.f32.xlu1 %v1056_v45 }
 0x348   :  { %v3355_v50 = vpop.eup %2845  ;;  %v1028_v52 = vmul.f32 1.442695, %v1004_v51 }
 0x349   :  { %v977_v56 = vpop.xlane.xlu0 %976  ;;  %v1059_v54 = vsel %vm157_vm2, %v3355_v50, 0.0 }
 0x34a   :  { %2851 = vpow2.f32 %v1028_v52  ;;  %v1005_v61 = vsub.f32 %v3278_v7, %v977_v56  ;;  %1060 = vadd.xlane.f32.xlu0 %v1059_v54 }
 0x34c   :  { %v3360_v55 = vpop.eup %2847  ;;  %v1030_v58 = vmul.f32 1.442695, %v1005_v61 }
 0x34d   :  { %v980_v59 = vpop.xlane.xlu1 %979  ;;  %v1062_v60 = vsel %vm157_vm2, %v3360_v55, 0.0 }
 0x34e   :  { %2853 = vpow2.f32 %v1030_v58  ;;  %v1006_v2 = vsub.f32 %v3282_v12, %v980_v59  ;;  %1063 = vadd.xlane.f32.xlu1 %v1062_v60  ;;  %v1291_v60 = vsel %vm1145_vm3, %v3294_v28, 0 }
 0x350   :  { %v3365_v62 = vpop.eup %2849  ;;  %v1032_v0 = vmul.f32 1.442695, %v1006_v2 }
 0x351   :  { %v983_v5 = vpop.xlane.xlu0 %982  ;;  %v1065_v19 = vsel %vm157_vm2, %v3365_v62, 0.0 }
 0x352   :  { %2855 = vpow2.f32 %v1032_v0  ;;  %v1007_v7 = vsub.f32 %v3286_v17, %v983_v5  ;;  %1066 = vadd.xlane.f32.xlu0 %v1065_v19  ;;  %v1387_v5 = vsel %vm1145_vm3, %v3310_v57, 0  ;;  %v1339_v57 = vsel %vm1145_vm3, %v3315_v1, 0 }
 0x354   :  { %v3370_v8 = vpop.eup %2851  ;;  %v1034_v9 = vmul.f32 1.442695, %v1007_v7 }
 0x355   :  { %v1068_v10 = vsel %vm157_vm2, %v3370_v8, 0.0  ;;  %v986_v18 = vpop.xlane.xlu1 %985 }
 0x356   :  { %2857 = vpow2.f32 %v1034_v9  ;;  %1069 = vadd.xlane.f32.xlu1 %v1068_v10  ;;  %v1008_v39 = vsub.f32 %v3290_v25, %v986_v18 }
 0x358   :  { %v3374_v12 = vpop.eup %2853  ;;  %v1036_v26 = vmul.f32 1.442695, %v1008_v39  ;;  %v1483_v39 = vsel %vm1145_vm3, %v3300_v42, 0 }
 0x359   :  { %v1071_v11 = vsel %vm157_vm2, %v3374_v12, 0.0  ;;  %v989_v22 = vpop.xlane.xlu0 %988 }
 0x35a   :  { %1072 = vadd.xlane.f32.xlu0 %v1071_v11  ;;  %v1009_v23 = vsub.f32 %v3296_v33, %v989_v22 }
 0x35c   :  { %v3378_v13 = vpop.eup %2855  ;;  %v1038_v32 = vmul.f32 1.442695, %v1009_v23 }
 0x35d   :  { %v1074_v17 = vsel %vm157_vm2, %v3378_v13, 0.0  ;;  %v992_v29 = vpop.xlane.xlu1 %991 }
 0x35e   :  { %1075 = vadd.xlane.f32.xlu1 %v1074_v17  ;;  %v1010_v30 = vsub.f32 %v3302_v46, %v992_v29 }
 0x360   :  { %v3382_v14 = vpop.eup %2857  ;;  %v1040_v34 = vmul.f32 1.442695, %v1010_v30 }
 0x361   :  { %v1077_v15 = vsel %vm157_vm2, %v3382_v14, 0.0  ;;  %v995_v27 = vpop.xlane.xlu0 %994 }
 0x362   :  { %1078 = vadd.xlane.f32.xlu0 %v1077_v15  ;;  %v1011_v37 = vsub.f32 %v3306_v53, %v995_v27  ;;  %v1435_v15 = vsel %vm1145_vm3, %v3317_v3, 0 }
 0x364   :  { %v1042_v25 = vmul.f32 1.442695, %v1011_v37 }
 0x365   :  { %v3405_v53 = vpop.permute.xlu0 %1573 }
 0x366   :  { %v1579_v27 = vsel %vm1145_vm3, %v3405_v53, 0 }
 0x36f   :  { %1765 = vrot.lane.b32.xlu1 %v3112_v43, %s2933_s25 }
 0x376   :  { %v1046_v36 = vpop.xlane.xlu1 %1045 }
 0x377   :  { %2859 = vrcp.f32 %v1046_v36 }
 0x378   :  { %1717 = vrot.lane.b32.xlu0 %v3100_v40, %s2933_s25  ;;  %2861 = vpow2.f32 %v1036_v26  ;;  %v1243_v40 = vsel %vm1145_vm3, %v3313_v63, 0 }
 0x379   :  { %2863 = vpow2.f32 %v1038_v32 }
 0x37a   :  { %2865 = vpow2.f32 %v1040_v34  ;;  %v3420_v59 = vpop.permute.xlu1 %1621 }
 0x37b   :  { %2867 = vpow2.f32 %v1042_v25 }
 0x381   :  { %v2860_v24 = vpop.eup %2859 }
 0x382   :  { %v1108_v31 = vmul.f32 %v2860_v24, %v3319_v4  ;;  %v3401_v33 = vpop.eup %2861  ;;  %v1531_v24 = vsel %vm1145_vm3, %v3325_v6, 0 }
 0x383   :  { %v3403_v46 = vpop.eup %2863  ;;  %v1080_v63 = vsel %vm157_vm2, %v3401_v33, 0.0 }
 0x384   :  { %v1124_v43 = vpack.c.bf16 %v1108_v31, %v1108_v31  ;;  %v3409_v4 = vpop.eup %2865  ;;  %v1083_v49 = vsel %vm157_vm2, %v3403_v46, 0.0 }
 0x385   :  { %v1086_v47 = vsel %vm157_vm2, %v3409_v4, 0.0  ;;  %v3415_v45 = vpop.eup %2867 }
 0x386   :  { %2676 = vmatmul.mubr.msk.bf16.vlgmr.msra.gmra.mrb[36].mxu1 %vm157_vm2, %v1124_v43  ;;  %v1089_v52 = vsel %vm157_vm2, %v3415_v45, 0.0  ;;  %v1627_v43 = vsel %vm1145_vm3, %v3420_v59, 0 }
 0x387   :  { %2686 = vmatpush3.bf16.msra.mxu1 %v1243_v40  ;;  %2687 = vmatprep.mubr.msk.bf16.mxu1 %vm2931_vm1, %v2929_v21 }
 0x388   :  { %2697 = vmatprep.subr.bf16.mxu1 %v2929_v21 }
 0x393   :  { %1081 = vadd.xlane.f32.xlu1 %v1080_v63 }
 0x396   :  { %v1049_v38 = vpop.xlane.xlu0 %1048 }
 0x397   :  { %2869 = vrcp.f32 %v1049_v38  ;;  %1087 = vadd.xlane.f32.xlu1 %v1086_v47  ;;  %1084 = vadd.xlane.f32.xlu0 %v1083_v49 }
 0x39a   :  { %v1055_v51 = vpop.xlane.xlu0 %1054 }
 0x39b   :  { %2871 = vrcp.f32 %v1055_v51  ;;  %1090 = vadd.xlane.f32.xlu0 %v1089_v52 }
 0x3a1   :  { %v2870_v56 = vpop.eup %2869 }
 0x3a2   :  { %v1109_v54 = vmul.f32 %v2870_v56, %v3333_v35  ;;  %v3431_v35 = vpop.permute.xlu1 %1669 }
 0x3a3   :  { %v1675_v40 = vsel %vm1145_vm3, %v3431_v35, 0  ;;  %v1917_v35 = vld [vmem:[%s3620_s3] sm:$0xf] }
 0x3a4   :  { %v1125_v61 = vpack.c.bf16 %v1109_v54, %v1109_v54 }
 0x3a5   :  { %v2872_v58 = vpop.eup %2871 }
 0x3a6   :  { %2682 = vmatmul.mubr.msk.bf16.vlgmr.msra.gmra.mrb[32].mxu0 %vm157_vm2, %v1125_v61  ;;  %v1111_v2 = vmul.f32 %v2872_v58, %v3337_v16 }
 0x3a7   :  { %2692 = vmatpush3.bf16.msra.mxu0 %v1291_v60  ;;  %2693 = vmatprep.mubr.msk.bf16.mxu0 %vm2931_vm1, %v2929_v21 }
 0x3a8   :  { %1861 = vrot.lane.b32.xlu1 %v3125_v48, %s2933_s25  ;;  %2703 = vmatprep.subr.bf16.mxu0 %v2929_v21  ;;  %v1127_v0 = vpack.c.bf16 %v1111_v2, %v1111_v2 }
 0x3ae   :  { %2694 = vmatmul.mubr.msk.bf16.vlgmr.msra.gmra.mrb[36].mxu0 %vm157_vm2, %v1127_v0 }
 0x3af   :  { %2704 = vmatpush3.bf16.msra.mxu0 %v1387_v5  ;;  %v1052_v28 = vpop.xlane.xlu1 %1051  ;;  %2705 = vmatprep.mubr.msk.bf16.mxu0 %vm2931_vm1, %v2929_v21 }
 0x3b0   :  { %2873 = vrcp.f32 %v1052_v28  ;;  %2715 = vmatprep.subr.bf16.mxu0 %v2929_v21 }
 0x3b1   :  { %1813 = vrot.lane.b32.xlu0 %v3116_v44, %s2933_s25 }
 0x3ba   :  { %v2874_v48 = vpop.eup %2873 }
 0x3bb   :  { %v1110_v16 = vmul.f32 %v2874_v48, %v3342_v20 }
 0x3bd   :  { %v1126_v19 = vpack.c.bf16 %v1110_v16, %v1110_v16 }
 0x3bf   :  { %2688 = vmatmul.mubr.msk.bf16.vlgmr.msra.gmra.mrb[40].mxu1 %vm157_vm2, %v1126_v19 }
 0x3c0   :  { %2698 = vmatpush3.bf16.msra.mxu1 %v1339_v57  ;;  %2699 = vmatprep.mubr.msk.bf16.mxu1 %vm2931_vm1, %v2929_v21 }
 0x3c1   :  { %2709 = vmatprep.subr.bf16.mxu1 %v2929_v21 }
 0x3d3   :  { %v1058_v7 = vpop.xlane.xlu1 %1057 }
 0x3d4   :  { %2875 = vrcp.f32 %v1058_v7 }
 0x3d7   :  { %v1061_v9 = vpop.xlane.xlu0 %1060 }
 0x3d8   :  { %2877 = vrcp.f32 %v1061_v9 }
 0x3db   :  { %v1064_v44 = vpop.xlane.xlu1 %1063 }
 0x3dc   :  { %2879 = vrcp.f32 %v1064_v44  ;;  %v1918_v44 = vld [vmem:[%s3620_s3 + $0x4] sm:$0xf] }
 0x3de   :  { %v2876_v10 = vpop.eup %2875 }
 0x3df   :  { %v1112_v20 = vmul.f32 %v2876_v10, %v3350_v41  ;;  %v1067_v11 = vpop.xlane.xlu0 %1066  ;;  %v1986_v10 = vsel %vm1145_vm3, %v1918_v44, 0 }
 0x3e0   :  { %2881 = vrcp.f32 %v1067_v11 }
 0x3e1   :  { %v1128_v1 = vpack.c.bf16 %v1112_v20, %v1112_v20 }
 0x3e2   :  { %v2878_v17 = vpop.eup %2877 }
 0x3e3   :  { %v1113_v18 = vmul.f32 %v2878_v17, %v3355_v50  ;;  %2700 = vmatmul.mubr.msk.bf16.vlgmr.msra.gmra.mrb[44].mxu1 %vm157_vm2, %v1128_v1  ;;  %v1070_v29 = vpop.xlane.xlu1 %1069 }
 0x3e4   :  { %2710 = vmatpush3.bf16.msra.mxu1 %v1435_v15  ;;  %2883 = vrcp.f32 %v1070_v29  ;;  %2711 = vmatprep.mubr.msk.bf16.mxu1 %vm2931_vm1, %v2929_v21 }
 0x3e5   :  { %v1129_v36 = vpack.c.bf16 %v1113_v18, %v1113_v18  ;;  %2721 = vmatprep.subr.bf16.mxu1 %v2929_v21 }
 0x3e6   :  { %v2880_v41 = vpop.eup %2879 }
 0x3e7   :  { %v1114_v22 = vmul.f32 %v2880_v41, %v3360_v55  ;;  %2706 = vmatmul.mubr.msk.bf16.vlgmr.msra.gmra.mrb[40].mxu0 %vm157_vm2, %v1129_v36  ;;  %v1073_v3 = vpop.xlane.xlu0 %1072 }
 0x3e8   :  { %2716 = vmatpush3.bf16.msra.mxu0 %v1483_v39  ;;  %2885 = vrcp.f32 %v1073_v3  ;;  %2717 = vmatprep.mubr.msk.bf16.mxu0 %vm2931_vm1, %v2929_v21 }
 0x3e9   :  { %v1130_v50 = vpack.c.bf16 %v1114_v22, %v1114_v22  ;;  %2727 = vmatprep.subr.bf16.mxu0 %v2929_v21 }
 0x3ea   :  { %v2882_v23 = vpop.eup %2881 }
 0x3eb   :  { %v1115_v26 = vmul.f32 %v2882_v23, %v3365_v62  ;;  %2712 = vmatmul.mubr.msk.bf16.vlgmr.msra.gmra.mrb[48].mxu1 %vm157_vm2, %v1130_v50  ;;  %v1076_v42 = vpop.xlane.xlu1 %1075  ;;  %v1920_v50 = vld [vmem:[%s3620_s3 + $0xc] sm:$0xf] }
 0x3ec   :  { %2722 = vmatpush3.bf16.msra.mxu1 %v1531_v24  ;;  %2887 = vrcp.f32 %v1076_v42  ;;  %2723 = vmatprep.mubr.msk.bf16.mxu1 %vm2931_vm1, %v2929_v21 }
 0x3ed   :  { %v1131_v55 = vpack.c.bf16 %v1115_v26, %v1115_v26  ;;  %2733 = vmatprep.subr.bf16.mxu1 %v2929_v21 }
 0x3ee   :  { %v2884_v30 = vpop.eup %2883 }
 0x3ef   :  { %v1116_v31 = vmul.f32 %v2884_v30, %v3370_v8  ;;  %2718 = vmatmul.mubr.msk.bf16.vlgmr.msra.gmra.mrb[44].mxu0 %vm157_vm2, %v1131_v55  ;;  %v1079_v6 = vpop.xlane.xlu0 %1078  ;;  %v1766_v49 = vpop.permute.xlu1 %1765 }
 0x3f0   :  { %2728 = vmatpush3.bf16.msra.mxu0 %v1579_v27  ;;  %2889 = vrcp.f32 %v1079_v6  ;;  %2729 = vmatprep.mubr.msk.bf16.mxu0 %vm2931_vm1, %v2929_v21  ;;  %v1771_v51 = vsel %vm1145_vm3, %v1766_v49, 0  ;;  %v2102_v49 = vsel %vm1145_vm3, %v1920_v50, 0 }
 0x3f1   :  { %v1132_v62 = vpack.c.bf16 %v1116_v31, %v1116_v31  ;;  %2739 = vmatprep.subr.bf16.mxu0 %v2929_v21 }
 0x3f2   :  { %v2886_v32 = vpop.eup %2885 }
 0x3f3   :  { %v1117_v34 = vmul.f32 %v2886_v32, %v3374_v12  ;;  %2724 = vmatmul.mubr.msk.bf16.vlgmr.msra.gmra.mrb[52].mxu1 %vm157_vm2, %v1132_v62  ;;  %v1718_v53 = vpop.permute.xlu0 %1717 }
 0x3f4   :  { %2734 = vmatpush3.bf16.msra.mxu1 %v1627_v43  ;;  %2735 = vmatprep.mubr.msk.bf16.mxu1 %vm2931_vm1, %v2929_v21  ;;  %v1723_v47 = vsel %vm1145_vm3, %v1718_v53, 0 }
 0x3f5   :  { %v1133_v8 = vpack.c.bf16 %v1117_v34, %v1117_v34  ;;  %2745 = vmatprep.subr.bf16.mxu1 %v2929_v21 }
 0x3f6   :  { %v2888_v37 = vpop.eup %2887 }
 0x3f7   :  { %v1118_v25 = vmul.f32 %v2888_v37, %v3378_v13  ;;  %2730 = vmatmul.mubr.msk.bf16.vlgmr.msra.gmra.mrb[48].mxu0 %vm157_vm2, %v1133_v8 }
 0x3f8   :  { %2740 = vmatpush3.bf16.msra.mxu0 %v1675_v40  ;;  %2741 = vmatprep.mubr.msk.bf16.mxu0 %vm2931_vm1, %v2929_v21 }
 0x3f9   :  { %v1134_v12 = vpack.c.bf16 %v1118_v25, %v1118_v25  ;;  %2751 = vmatprep.subr.bf16.mxu0 %v2929_v21 }
 0x3fa   :  { %v2890_v63 = vpop.eup %2889 }
 0x3fb   :  { %v1119_v38 = vmul.f32 %v2890_v63, %v3382_v14  ;;  %2736 = vmatmul.mubr.msk.bf16.vlgmr.msra.gmra.mrb[56].mxu1 %vm157_vm2, %v1134_v12 }
 0x3fc   :  { %2746 = vmatpush3.bf16.msra.mxu1 %v1723_v47  ;;  %2747 = vmatprep.mubr.msk.bf16.mxu1 %vm2931_vm1, %v2929_v21 }
 0x3fd   :  { %v1135_v13 = vpack.c.bf16 %v1119_v38, %v1119_v38  ;;  %2757 = vmatprep.subr.bf16.mxu1 %v2929_v21 }
 0x3ff   :  { %2742 = vmatmul.mubr.msk.bf16.vlgmr.msra.gmra.mrb[52].mxu0 %vm157_vm2, %v1135_v13 }
 0x400   :  { %2752 = vmatpush3.bf16.msra.mxu0 %v1771_v51  ;;  %2753 = vmatprep.mubr.msk.bf16.mxu0 %vm2931_vm1, %v2929_v21 }
 0x401   :  { %2763 = vmatprep.subr.bf16.mxu0 %v2929_v21 }
 0x420   :  { %v1082_v14 = vpop.xlane.xlu1 %1081 }
 0x421   :  { %2891 = vrcp.f32 %v1082_v14 }
 0x424   :  { %v1088_v52 = vpop.xlane.xlu1 %1087  ;;  %v1085_v56 = vpop.xlane.xlu0 %1084 }
 0x425   :  { %2893 = vrcp.f32 %v1088_v52 }
 0x426   :  { %2895 = vrcp.f32 %v1085_v56 }
 0x428   :  { %v1091_v54 = vpop.xlane.xlu0 %1090  ;;  %v1862_v48 = vpop.permute.xlu1 %1861 }
 0x429   :  { %2897 = vrcp.f32 %v1091_v54  ;;  %v1867_v57 = vsel %vm1145_vm3, %v1862_v48, 0 }
 0x42b   :  { %v2892_v61 = vpop.eup %2891 }
 0x42c   :  { %v1120_v58 = vmul.f32 %v2892_v61, %v3401_v33  ;;  %v1814_v59 = vpop.permute.xlu0 %1813 }
 0x42d   :  { %v1819_v5 = vsel %vm1145_vm3, %v1814_v59, 0 }
 0x42e   :  { %v1136_v60 = vpack.c.bf16 %v1120_v58, %v1120_v58 }
 0x42f   :  { %v2894_v2 = vpop.eup %2893 }
 0x430   :  { %v2896_v0 = vpop.eup %2895  ;;  %2748 = vmatmul.mubr.msk.bf16.vlgmr.msra.gmra.mrb[60].mxu1 %vm157_vm2, %v1136_v60  ;;  %v1122_v33 = vmul.f32 %v2894_v2, %v3409_v4 }
 0x431   :  { %v1121_v28 = vmul.f32 %v2896_v0, %v3403_v46  ;;  %2758 = vmatpush3.bf16.msra.mxu1 %v1819_v5  ;;  %2759 = vmatprep.mubr.msk.bf16.mxu1 %vm2931_vm1, %v2929_v21  ;;  %v1928_v46 = vsel %vm1145_vm3, %v1917_v35, 0 }
 0x432   :  { %2813 = vmatprep.subr.msk.bf16.mxu1 %vm1145_vm3, %v1917_v35  ;;  %v1138_v7 = vpack.c.bf16 %v1122_v33, %v1122_v33 }
 0x433   :  { %v1137_v16 = vpack.c.bf16 %v1121_v28, %v1121_v28  ;;  %v2898_v19 = vpop.eup %2897 }
 0x434   :  { %v1123_v9 = vmul.f32 %v2898_v19, %v3415_v45 }
 0x435   :  { %2754 = vmatmul.mubr.msk.bf16.vlgmr.msra.gmra.mrb[56].mxu0 %vm157_vm2, %v1137_v16 }
 0x436   :  { %2764 = vmatpush3.bf16.msra.mxu0 %v1867_v57  ;;  %2765 = vmatprep.mubr.msk.bf16.mxu0 %vm2931_vm1, %v2929_v21  ;;  %v1139_v4 = vpack.c.bf16 %v1123_v9, %v1123_v9  ;;  %v1919_v21 = vld [vmem:[%s3620_s3 + $0x8] sm:$0xf] }
 0x437   :  { %2814 = vmatprep.subr.msk.bf16.mxu0 %vm1145_vm3, %v1918_v44  ;;  %v2044_v42 = vsel %vm1145_vm3, %v1919_v21, 0 }
 0x438   :  { %2760 = vmatmul.mubr.msk.bf16.vlgmr.msra.gmra.mrb[64].mxu1 %vm157_vm2, %v1138_v7 }
 0x439   :  { %2770 = vmatpush3.bf16.msra.mxu1 %v1928_v46 }
 0x43a   :  { %2815 = vmatprep.subr.msk.bf16.mxu1 %vm1145_vm3, %v1919_v21 }
 0x43d   :  { %2766 = vmatmul.mubr.msk.bf16.vlgmr.msra.gmra.mrb[60].mxu0 %vm157_vm2, %v1139_v4 }
 0x43e   :  { %2776 = vmatpush3.bf16.msra.mxu0 %v1986_v10 }
 0x43f   :  { %2816 = vmatprep.subr.msk.bf16.mxu0 %vm1145_vm3, %v1920_v50 }
 0x459   :  { %v1183_v45 = vpop.f32.mrb[36].mxu1 }
 0x45a   :  { %v2677_v20 = vpop.f32.mrb[37].mxu1 }
 0x45b   :  { %v1186_v11 = vpop.f32.mrb[38].mxu1 }
 0x45c   :  { %v2678_v1 = vpop.f32.mrb[39].mxu1 }
 0x479   :  { %v1231_v17 = vpop.f32.mrb[32].mxu0 }
 0x47a   :  { %v1909_v15 = vpack.c.bf16 %v1231_v17, %v1183_v45  ;;  %v2683_v18 = vpop.f32.mrb[33].mxu0 }
 0x47b   :  { %v1234_v29 = vpop.f32.mrb[34].mxu0 }
 0x47c   :  { %v2684_v36 = vpop.f32.mrb[35].mxu0  ;;  %2771 = vmatprep.mubr.msk.bf16.mxu1 %vm157_vm2, %v1909_v15 }
 0x481   :  { %v1327_v41 = vpop.f32.mrb[36].mxu0 }
 0x482   :  { %v2695_v39 = vpop.f32.mrb[37].mxu0 }
 0x483   :  { %v1330_v22 = vpop.f32.mrb[38].mxu0 }
 0x484   :  { %v2696_v3 = vpop.f32.mrb[39].mxu0 }
 0x492   :  { %v1279_v23 = vpop.f32.mrb[40].mxu1 }
 0x493   :  { %v1910_v24 = vpack.c.bf16 %v1327_v41, %v1279_v23  ;;  %v2689_v26 = vpop.f32.mrb[41].mxu1 }
 0x494   :  { %v1282_v55 = vpop.f32.mrb[42].mxu1  ;;  %v2830_v26 = vld [vmem:[%s3622_s5 + $0x8] sm:$0xff]  }
 0x495   :  { %v2690_v30 = vpop.f32.mrb[43].mxu1  ;;  %2772 = vmatmul.mubr.msk.bf16.vlgmr.msra.gmra.mrb[68].mxu1 %vm157_vm2, %v1910_v24  ;;  %v2829_v24 = vld [vmem:[%s3622_s5] sm:$0xff]   ;;  %v2832_v55 = vld [vmem:[%s3624_s7 + $0x8] sm:$0xff]  }
 0x496   :  { %2782 = vmatpush3.bf16.msra.mxu1 %v2044_v42  ;;  %v2831_v42 = vld [vmem:[%s3624_s7] sm:$0xff]  }
 0x497   :  { %2793 = vmatprep.subr.bf16.mxu1 %v2829_v24 }
 0x4b6   :  { %v1375_v27 = vpop.f32.mrb[44].mxu1 }
 0x4b7   :  { %v2701_v31 = vpop.f32.mrb[45].mxu1 }
 0x4b8   :  { %v1378_v6 = vpop.f32.mrb[46].mxu1 }
 0x4b9   :  { %v2702_v62 = vpop.f32.mrb[47].mxu1 }
 0x4ba   :  { %v1423_v32 = vpop.f32.mrb[40].mxu0 }
 0x4bb   :  { %v1911_v43 = vpack.c.bf16 %v1423_v32, %v1375_v27  ;;  %v2707_v34 = vpop.f32.mrb[41].mxu0 }
 0x4bc   :  { %v1426_v8 = vpop.f32.mrb[42].mxu0 }
 0x4bd   :  { %v2708_v37 = vpop.f32.mrb[43].mxu0  ;;  %2777 = vmatprep.mubr.msk.bf16.mxu0 %vm157_vm2, %v1911_v43 }
 0x4be   :  { %v1471_v40 = vpop.f32.mrb[48].mxu1 }
 0x4bf   :  { %v2713_v25 = vpop.f32.mrb[49].mxu1 }
 0x4c0   :  { %v1474_v53 = vpop.f32.mrb[50].mxu1 }
 0x4c1   :  { %v2714_v12 = vpop.f32.mrb[51].mxu1 }
 0x4c2   :  { %v1519_v63 = vpop.f32.mrb[44].mxu0 }
 0x4c3   :  { %v1912_v38 = vpack.c.bf16 %v1519_v63, %v1471_v40  ;;  %v2719_v47 = vpop.f32.mrb[45].mxu0 }
 0x4c4   :  { %v1522_v13 = vpop.f32.mrb[46].mxu0 }
 0x4c5   :  { %v2720_v51 = vpop.f32.mrb[47].mxu0  ;;  %2778 = vmatmul.mubr.msk.bf16.vlgmr.msra.gmra.mrb[64].mxu0 %vm157_vm2, %v1912_v38 }
 0x4c6   :  { %v1567_v14 = vpop.f32.mrb[52].mxu1  ;;  %2788 = vmatpush3.bf16.msra.mxu0 %v2102_v49 }
 0x4c7   :  { %v2725_v52 = vpop.f32.mrb[53].mxu1  ;;  %2801 = vmatprep.subr.bf16.mxu0 %v2831_v42 }
 0x4c8   :  { %v1570_v56 = vpop.f32.mrb[54].mxu1 }
 0x4c9   :  { %v2726_v54 = vpop.f32.mrb[55].mxu1 }
 0x4ca   :  { %v1615_v61 = vpop.f32.mrb[48].mxu0 }
 0x4cb   :  { %v1913_v58 = vpack.c.bf16 %v1615_v61, %v1567_v14  ;;  %v2731_v59 = vpop.f32.mrb[49].mxu0 }
 0x4cc   :  { %v1618_v60 = vpop.f32.mrb[50].mxu0 }
 0x4cd   :  { %v2732_v2 = vpop.f32.mrb[51].mxu0  ;;  %2783 = vmatprep.mubr.msk.bf16.mxu1 %vm157_vm2, %v1913_v58 }
 0x4ce   :  { %v1663_v35 = vpop.f32.mrb[56].mxu1 }
 0x4cf   :  { %v2737_v0 = vpop.f32.mrb[57].mxu1 }
 0x4d0   :  { %v1666_v5 = vpop.f32.mrb[58].mxu1 }
 0x4d1   :  { %v2738_v28 = vpop.f32.mrb[59].mxu1 }
 0x4d2   :  { %v1711_v33 = vpop.f32.mrb[52].mxu0  ;;  %v2462_v28 = vld [vmem:[%s3621_s4] ss:$0 sm:$0xff] }
 0x4d3   :  { %v1914_v48 = vpack.c.bf16 %v1711_v33, %v1663_v35  ;;  %v2743_v16 = vpop.f32.mrb[53].mxu0 }
 0x4d4   :  { %v1714_v19 = vpop.f32.mrb[54].mxu0 }
 0x4d5   :  { %v2744_v57 = vpop.f32.mrb[55].mxu0  ;;  %2784 = vmatmul.mubr.msk.bf16.vlgmr.msra.gmra.mrb[72].mxu1 %vm157_vm2, %v1914_v48 }
 0x4d6   :  { %2794 = vmatpush3.bf16.msra.mxu1 %v2829_v24 }
 0x4d7   :  { %2795 = vmatprep.subr.bf16.mxu1 %v2830_v26 }
 0x4da   :  { %2796 = vmatpush3.bf16.msra.mxu1 %v2830_v26 }
 0x503   :  { %v1759_v7 = vpop.f32.mrb[60].mxu1 }
 0x504   :  { %v2749_v46 = vpop.f32.mrb[61].mxu1 }
 0x505   :  { %v1762_v9 = vpop.f32.mrb[62].mxu1 }
 0x506   :  { %v2750_v4 = vpop.f32.mrb[63].mxu1 }
 0x508   :  { %v1807_v44 = vpop.f32.mrb[56].mxu0 }
 0x509   :  { %v1915_v10 = vpack.c.bf16 %v1807_v44, %v1759_v7  ;;  %v2755_v21 = vpop.f32.mrb[57].mxu0 }
 0x50a   :  { %v1810_v45 = vpop.f32.mrb[58].mxu0 }
 0x50b   :  { %v2756_v20 = vpop.f32.mrb[59].mxu0  ;;  %2789 = vmatprep.mubr.msk.bf16.mxu0 %vm157_vm2, %v1915_v10  ;;  %v1855_v11 = vpop.f32.mrb[64].mxu1  ;;  %v2899_v45 = vld [vmem:[%s3617_s0 + $0x18] sm:$0xff] }
 0x50c   :  { %v2761_v1 = vpop.f32.mrb[65].mxu1 }
 0x50d   :  { %v1858_v17 = vpop.f32.mrb[66].mxu1 }
 0x50e   :  { %v2762_v15 = vpop.f32.mrb[67].mxu1  ;;  %v2901_v17 = vld [vmem:[%s3617_s0 + $0x8] sm:$0xff] }
 0x510   :  { %v1903_v18 = vpop.f32.mrb[60].mxu0 }
 0x511   :  { %v1916_v29 = vpack.c.bf16 %v1903_v18, %v1855_v11  ;;  %v2767_v36 = vpop.f32.mrb[61].mxu0  ;;  %v2900_v11 = vld [vmem:[%s3617_s0] sm:$0xff]  ;;  %v2902_v18 = vld [vmem:[%s3617_s0 + $0x10] sm:$0xff] }
 0x512   :  { %v1906_v41 = vpop.f32.mrb[62].mxu0 }
 0x513   :  { %v2768_v39 = vpop.f32.mrb[63].mxu0  ;;  %2790 = vmatmul.mubr.msk.bf16.vlgmr.msra.gmra.mrb[68].mxu0 %vm157_vm2, %v1916_v29 }
 0x514   :  { %2802 = vmatpush3.bf16.msra.mxu0 %v2831_v42  ;;  %v2833_v39 = vld [vmem:[%s3624_s7 + $0x10] sm:$0xff]  }
 0x515   :  { %2803 = vmatprep.subr.bf16.mxu0 %v2832_v55 }
 0x518   :  { %2804 = vmatpush3.bf16.msra.mxu0 %v2832_v55 }
 0x519   :  { %2805 = vmatprep.subr.bf16.mxu0 %v2833_v39 }
 0x51c   :  { %2806 = vmatpush3.bf16.msra.mxu0 %v2833_v39 }
 0x568   :  { %v2773_v22 = vpop.f32.mrb[68].mxu1 }
 0x569   :  { %v1964_v3 = vpop.f32.mrb[69].mxu1  ;;  %v2167_v27 = vsel %vm63_vm0, %v2773_v22, 0.0  ;;  %v2834_v22 = vld [vmem:[%s3624_s7 + $0x18] sm:$0xff]  }
 0x56a   :  { %v2774_v50 = vpop.f32.mrb[70].mxu1  ;;  %v2153_v62 = vsel %vm63_vm0, %v1964_v3, 0.0  ;;  %2807 = vmatprep.subr.bf16.mxu0 %v2834_v22  ;;  %v2463_v3 = vld [vmem:[%s3623_s6] ss:$0 sm:$0xff]  ;;  %s2934_s6 = smov [#allocation2]  }
 0x56b   :  { %v1967_v23 = vpop.f32.mrb[71].mxu1  ;;  %v2174_v8 = vsel %vm63_vm0, %v2774_v50, 0.0  ;;  %2808 = vmatpush3.bf16.msra.mxu0 %v2834_v22  ;;  %s2390_s11 = sshll.u32 %s2934_s6, 4  ;;  %s2391_s11 = int_to_ptr.vmem [resolvable:$true] %s2390_s11 }
 0x56c   :  { %v2160_v53 = vsel %vm63_vm0, %v1967_v23, 0.0  ;;  %p2908_p1 = scmp.lt.s32.totalorder %s2391_s11, %s2391_s11 }
 0x598   :  { %v2779_v30 = vpop.f32.mrb[64].mxu0 }
 0x599   :  { %v2168_v31 = vsel %vm63_vm0, %v2779_v30, 0.0  ;;  %v2022_v6 = vpop.f32.mrb[65].mxu0 }
 0x59a   :  { %v2169_v32 = vadd.f32 %v2168_v31, %v2167_v27  ;;  %v2154_v43 = vsel %vm63_vm0, %v2022_v6, 0.0  ;;  %v2780_v34 = vpop.f32.mrb[66].mxu0 }
 0x59b   :  { %v2155_v37 = vadd.f32 %v2154_v43, %v2153_v62  ;;  %v2175_v40 = vsel %vm63_vm0, %v2780_v34, 0.0  ;;  %v2025_v25 = vpop.f32.mrb[67].mxu0 }
 0x59c   :  { %v2176_v12 = vadd.f32 %v2175_v40, %v2174_v8  ;;  %v2161_v63 = vsel %vm63_vm0, %v2025_v25, 0.0  ;;  %v2468_v8 = vld [vmem:[%s3625_s8] ss:$0 sm:$0xff]  ;;  %s2903_s8 = scalar_lea.vmem %s2391_s11, 512 }
 0x59d   :  { %v2162_v38 = vadd.f32 %v2161_v63, %v2160_v53  ;;  %p2904_p0 = scmp.ne.s32.totalorder %s2391_s11, %s2903_s8  ;;  %p2909_p2 = scmp.lt.s32.totalorder %s2903_s8, %s2903_s8 }
 0x59f   :  { %p2910_p3 = por %p2909_p2, %p2908_p1 }
 0x5a1   :  { %p2911_p4 = pnand %p2910_p3, %p2904_p0 }
 0x5a8   :  { %v2785_v47 = vpop.f32.mrb[72].mxu1 }
 0x5a9   :  { %v2170_v49 = vsel %vm63_vm0, %v2785_v47, 0.0  ;;  %v2080_v13 = vpop.f32.mrb[73].mxu1 }
 0x5aa   :  { %v2171_v51 = vadd.f32 %v2170_v49, %v2169_v32  ;;  %v2156_v14 = vsel %vm63_vm0, %v2080_v13, 0.0  ;;  %v2786_v52 = vpop.f32.mrb[74].mxu1 }
 0x5ab   :  { %v2157_v56 = vadd.f32 %v2156_v14, %v2155_v37  ;;  %v2177_v54 = vsel %vm63_vm0, %v2786_v52, 0.0  ;;  %v2083_v61 = vpop.f32.mrb[75].mxu1 }
 0x5ac   :  { %v2178_v58 = vadd.f32 %v2177_v54, %v2176_v12  ;;  %v2163_v59 = vsel %vm63_vm0, %v2083_v61, 0.0 }
 0x5ad   :  { %v2164_v60 = vadd.f32 %v2163_v59, %v2162_v38 }
 0x5e6   :  { %v2791_v2 = vpop.f32.mrb[68].mxu0 }
 0x5e7   :  { %v2172_v35 = vsel %vm63_vm0, %v2791_v2, 0.0  ;;  %v2138_v0 = vpop.f32.mrb[69].mxu0 }
 0x5e8   :  { %v2173_v5 = vadd.f32 %v2172_v35, %v2171_v51  ;;  %v2158_v33 = vsel %vm63_vm0, %v2138_v0, 0.0  ;;  %v2792_v48 = vpop.f32.mrb[70].mxu0 }
 0x5e9   :  { %v2159_v16 = vadd.f32 %v2158_v33, %v2157_v56  ;;  %v2179_v19 = vsel %vm63_vm0, %v2792_v48, 0.0  ;;  %v2141_v57 = vpop.f32.mrb[71].mxu0 }
 0x5ea   :  { %v2180_v7 = vadd.f32 %v2179_v19, %v2178_v58  ;;  %v2165_v46 = vsel %vm63_vm0, %v2141_v57, 0.0  ;;  %v2190_v44 = vadd.f32 %v2462_v28, %v2173_v5 }
 0x5eb   :  { %v2188_v9 = vadd.f32 %v2462_v28, %v2159_v16  ;;  %v2166_v4 = vadd.f32 %v2165_v46, %v2164_v60 }
 0x5ec   :  { %v2191_v10 = vadd.f32 %v2462_v28, %v2180_v7  ;;  %v2194_v29 = vadd.f32 %v2902_v18, %v2190_v44 }
 0x5ed   :  { %v2189_v21 = vadd.f32 %v2462_v28, %v2166_v4  ;;  %v2192_v1 = vadd.f32 %v2900_v11, %v2188_v9 }
 0x5ee   :  { %v2195_v20 = vadd.f32 %v2899_v45, %v2191_v10 }
 0x5ef   :  { %v2193_v15 = vadd.f32 %v2901_v17, %v2189_v21 }
 0x5f0   :  { %v2197_v41 = vpack.c.bf16 %v2195_v20, %v2194_v29 }
 0x5f1   :  { %v2196_v36 = vpack.c.bf16 %v2193_v15, %v2192_v1 }
 0x5f3   :  { %2797 = vmatprep.mubr.msk.bf16.mxu1 %vm63_vm0, %v2196_v36 }
 0x5f4   :  { %2798 = vmatmul.mubr.msk.bf16.vlgmr.msra.gmra.mrb[76].mxu1 %vm63_vm0, %v2197_v41 }
 0x6c7   :  { %v2799_v50 = vpop.f32.mrb[76].mxu1 }
 0x6c8   :  { %v2270_v23 = vadd.f32 %v2799_v50, %v2463_v3  ;;  %v2261_v24 = vpop.f32.mrb[77].mxu1 }
 0x6c9   :  { %v2262_v26 = vadd.f32 %v2463_v3, %v2261_v24  ;;  %v2800_v42 = vpop.f32.mrb[78].mxu1 }
 0x6ca   :  { %v2273_v55 = vadd.f32 %v2800_v42, %v2463_v3  ;;  %v2264_v30 = vpop.f32.mrb[79].mxu1  ;;  %v2278_v31 = vmax.f32 %v2270_v23, 0.0 }
 0x6cb   :  { %v2265_v27 = vadd.f32 %v2463_v3, %v2264_v30  ;;  %v2276_v62 = vmax.f32 %v2262_v26, 0.0 }
 0x6cc   :  { %v2279_v6 = vmax.f32 %v2273_v55, 0.0 }
 0x6cd   :  { %v2277_v32 = vmax.f32 %v2265_v27, 0.0 }
 0x6ce   :  { %v2281_v43 = vpack.c.bf16 %v2279_v6, %v2278_v31 }
 0x6cf   :  { %v2280_v34 = vpack.c.bf16 %v2277_v32, %v2276_v62 }
 0x6d1   :  { %2809 = vmatprep.mubr.msk.bf16.mxu0 %vm2321_vm4, %v2280_v34 }
 0x6d2   :  { %2810 = vmatmul.mubr.msk.bf16.vlgmr.msra.gmra.mrb[72].mxu0 %vm2321_vm4, %v2281_v43 }
 0x7a5   :  { %v2811_v37 = vpop.f32.mrb[72].mxu0 }
 0x7a6   :  { %v2371_v40 = vadd.f32 %v2811_v37, %v2468_v8  ;;  %v2362_v25 = vpop.f32.mrb[73].mxu0 }
 0x7a7   :  { %v2363_v53 = vadd.f32 %v2468_v8, %v2362_v25  ;;  %v2812_v12 = vpop.f32.mrb[74].mxu0 }
 0x7a8   :  { %v2379_v63 = vadd.f32 %v2371_v40, %v2194_v29  ;;  %v2374_v38 = vadd.f32 %v2812_v12, %v2468_v8  ;;  %v2365_v47 = vpop.f32.mrb[75].mxu0 }
 0x7a9   :  { %v2377_v49 = vadd.f32 %v2363_v53, %v2192_v1  ;;  %v2366_v13 = vadd.f32 %v2468_v8, %v2365_v47 }
 0x7aa   :  { %2383 = vst.msk [vmem:[#allocation2 + $0x10] sm:$0xff] %vm63_vm0, %v2379_v63  ;;  %v2380_v51 = vadd.f32 %v2374_v38, %v2195_v20 }
 0x7ab   :  { %2381 = vst.msk [vmem:[#allocation2] sm:$0xff] %vm63_vm0, %v2377_v49  ;;  %v2378_v14 = vadd.f32 %v2366_v13, %v2193_v15 }
 0x7ac   :  { %2384 = vst.msk [vmem:[#allocation2 + $0x18] sm:$0xff] %vm63_vm0, %v2380_v51 }
 0x7ad   :  { %2382 = vst.msk [vmem:[#allocation2 + $0x8] sm:$0xff] %vm63_vm0, %v2378_v14 }
 0x7ae   :  { %2914 = shalt.err (!%p2911_p4)
}
 0x7af   :  { %s2915_s13 = scalar_lea.hbm %s3626_s9, 512 }
 0x7b0   :  { %p2916_p5 = scmp.ne.s32.totalorder %s3626_s9, %s2915_s13  ;;  %p2919_p6 = scmp.lt.u32.totalorder %s2915_s13, %s3626_s9 }
 0x7b2   :  { %p2921_p7 = pnand %p2919_p6, %p2916_p5 }
 0x7b4   :  { %2924 = shalt.err (!%p2921_p7)
}
 0x7b5   :  { %s2935_s18 = smov 128   ;;  %s2936_s19 = smov 8  }
 0x7b6   :  { %2396 = dma.vmem_to_hbm [thread:$0]  %s2391_s11, 512, %s3626_s9, [#allocation3], %s2935_s18, %s2935_s18, %s2936_s19  }
 0x7b7   :  { %2925 = dma.done.wait [#allocation3], 512  }
 0x7b8   :  { %2926 = vsyncadd [#allocation3], 4294966784 }
 0x7b9   :  { %2400 = vsyncpa [#allocation3], 1 }

// kernel: _run_block.1
= control target key start
LH: loop header
LB: loop body
LE: loop exit
PB: predicated region body
PF: predicated region fallthrough
CT: control target
= control target key end

     0   :  { %vm63_vm0 = vcmask 261120   ;;  %s3617_s0 = inlined_call_operand.vmem [shape: f32[4,8,32], index: 0, kind: input, shape index: {}]   ;;  %s3618_s1 = inlined_call_operand.vmem [shape: bf16[32,96], index: 1, kind: input, shape index: {}]   ;;  %s3619_s2 = inlined_call_operand.vmem [shape: f32[1,96], index: 2, kind: input, shape index: {}]   ;;  %s3620_s3 = inlined_call_operand.vmem [shape: bf16[4,8,32], index: 3, kind: input, shape index: {}]   ;;  %s3621_s4 = inlined_call_operand.vmem [shape: f32[1,32], index: 4, kind: input, shape index: {}]   ;;  %s3622_s5 = inlined_call_operand.vmem [shape: bf16[32,64], index: 5, kind: input, shape index: {}]   ;;  %s3623_s6 = inlined_call_operand.vmem [shape: f32[1,64], index: 6, kind: input, shape index: {}]   ;;  %s3624_s7 = inlined_call_operand.vmem [shape: bf16[64,32], index: 7, kind: input, shape index: {}]   ;;  %s3625_s8 = inlined_call_operand.vmem [shape: f32[1,32], index: 8, kind: input, shape index: {}]   ;;  %s3626_s9 = inlined_call_operand.hbm [shape: f32[4,8,32], index: 9, kind: output, shape index: {}]  }
   0x1   :  { %v2827_v0 = vld [vmem:[%s3618_s1] sm:$0xff]   ;;  %v2828_v1 = vld [vmem:[%s3618_s1 + $0x8] sm:$0xff]   ;;  %v36_v4 = vld [vmem:[%s3617_s0 + $0x10] sm:$0xff] }
   0x2   :  { %2569 = vmatprep.subr.bf16.mxu1 %v2827_v0  ;;  %v34_v2 = vld [vmem:[%s3617_s0] sm:$0xff]  ;;  %v35_v3 = vld [vmem:[%s3617_s0 + $0x8] sm:$0xff]  ;;  %v37_v6 = vld [vmem:[%s3617_s0 + $0x18] sm:$0xff] }
   0x3   :  { %2570 = vmatpush3.bf16.msra.mxu1 %v2827_v0  ;;  %v38_v5 = vpack.c.bf16 %v35_v3, %v34_v2  ;;  %v39_v7 = vpack.c.bf16 %v37_v6, %v36_v4 }
   0x4   :  { %2571 = vmatprep.subr.bf16.mxu1 %v2828_v1 }
   0x5   :  { %2573 = vmatprep.mubr.msk.bf16.mxu1 %vm63_vm0, %v38_v5 }
   0x7   :  { %2572 = vmatpush3.bf16.msra.mxu1 %v2828_v1 }
   0x8   :  { %14 = vsyncpa [#allocation3], 0  ;;  %v2401_v8 = vld [vmem:[%s3619_s2] ss:$0 sm:$0xff]  ;;  %s2927_s22 = smov 120   ;;  %s2928_s2 = smov 112  }
   0x9   :  { %v2929_v21 = vmov 0.0   ;;  %s2930_s23 = smov 104   ;;  %vm2931_vm1 = vmmov 0   ;;  %s2932_s24 = smov 96   ;;  %vm157_vm2 = vcmask 64512   ;;  %vm1145_vm3 = vcmask 1043456  }
   0xa   :  { %2574 = vmatmul.mubr.msk.bf16.vlgmr.msra.gmra.mrb[0].mxu1 %vm63_vm0, %v39_v7  ;;  %2583 = vmatprep.subr.bf16.mxu0 %v2929_v21  ;;  %s2933_s25 = smov 64   ;;  %vm2321_vm4 = vcmask 523264  }
   0xb   :  { %2577 = vmatprep.subr.bf16.mxu1 %v2929_v21  ;;  %2585 = vmatprep.mubr.msk.bf16.mxu0 %vm2931_vm1, %v2929_v21 }
   0xc   :  { %2579 = vmatprep.mubr.msk.bf16.mxu1 %vm2931_vm1, %v2929_v21 }
  0xdd   :  { %v2575_v9 = vpop.f32.mrb[0].mxu1 }
  0xde   :  { %v113_v10 = vadd.f32 %v2575_v9, %v2401_v8  ;;  %v104_v11 = vpop.f32.mrb[1].mxu1 }
  0xdf   :  { %v105_v12 = vadd.f32 %v2401_v8, %v104_v11  ;;  %v2576_v13 = vpop.f32.mrb[2].mxu1 }
  0xe0   :  { %v3010_v14 = vpack.c.bf16 %v113_v10, %v113_v10  ;;  %v116_v15 = vadd.f32 %v2576_v13, %v2401_v8  ;;  %v107_v16 = vpop.f32.mrb[3].mxu1 }
  0xe1   :  { %v3012_v17 = vpack.c.bf16 %v105_v12, %v105_v12  ;;  %v108_v18 = vadd.f32 %v2401_v8, %v107_v16 }
  0xe2   :  { %135 = vrot.lane.b32.xlu1 %v3010_v14, %s2927_s22  ;;  %v3016_v19 = vpack.c.bf16 %v116_v15, %v116_v15 }
  0xe3   :  { %131 = vrot.lane.b32.xlu0 %v3012_v17, %s2927_s22  ;;  %v3018_v20 = vpack.c.bf16 %v108_v18, %v108_v18 }
  0xe6   :  { %137 = vrot.lane.b32.xlu1 %v3016_v19, %s2927_s22 }
  0xe7   :  { %133 = vrot.lane.b32.xlu0 %v3018_v20, %s2927_s22 }
  0xea   :  { %141 = vrot.lane.b32.xlu1 %v3018_v20, %s2928_s2 }
  0xeb   :  { %139 = vrot.lane.b32.xlu0 %v3012_v17, %s2928_s2 }
  0xee   :  { %145 = vrot.lane.b32.xlu1 %v3016_v19, %s2928_s2 }
  0xef   :  { %143 = vrot.lane.b32.xlu0 %v3010_v14, %s2928_s2 }
  0xf2   :  { %149 = vrot.lane.b32.xlu1 %v3018_v20, %s2930_s23 }
  0xf3   :  { %147 = vrot.lane.b32.xlu0 %v3012_v17, %s2930_s23 }
  0xf6   :  { %153 = vrot.lane.b32.xlu1 %v3016_v19, %s2930_s23 }
  0xf7   :  { %151 = vrot.lane.b32.xlu0 %v3010_v14, %s2930_s23 }
  0xfa   :  { %204 = vrot.lane.b32.xlu1 %v3018_v20, %s2932_s24 }
  0xfb   :  { %155 = vrot.lane.b32.xlu0 %v3012_v17, %s2932_s24 }
  0xfe   :  { %300 = vrot.lane.b32.xlu1 %v3016_v19, %s2932_s24 }
  0xff   :  { %252 = vrot.lane.b32.xlu0 %v3010_v14, %s2932_s24 }
 0x154   :  { %v3044_v22 = vpop.permute.xlu1 %135 }
 0x155   :  { %v3046_v23 = vpop.permute.xlu0 %131  ;;  %v3057_v27 = vcombine.low %v3044_v22, %v3044_v22 }
 0x156   :  { %v2414_v24 = vcombine.low %v3046_v23, %v3046_v23 }
 0x158   :  { %v3050_v25 = vpop.permute.xlu1 %137  ;;  %350 = vrot.lane.b32.xlu0 %v2414_v24, %s2932_s24 }
 0x159   :  { %v3053_v26 = vpop.permute.xlu0 %133  ;;  %v2420_v31 = vcombine.low %v3050_v25, %v3050_v25 }
 0x15a   :  { %v2416_v28 = vcombine.low %v3053_v26, %v3053_v26 }
 0x15c   :  { %v3061_v29 = vpop.permute.xlu1 %141  ;;  %450 = vrot.lane.b32.xlu0 %v3057_v27, %s2932_s24  ;;  %400 = vrot.lane.b32.xlu1 %v2416_v28, %s2932_s24 }
 0x15d   :  { %v3066_v30 = vpop.permute.xlu0 %139  ;;  %v3080_v35 = vcombine.low %v3061_v29, %v3061_v29 }
 0x15e   :  { %v2422_v32 = vcombine.low %v3066_v30, %v3066_v30 }
 0x160   :  { %v3072_v33 = vpop.permute.xlu1 %145  ;;  %500 = vrot.lane.b32.xlu1 %v2420_v31, %s2932_s24  ;;  %550 = vrot.lane.b32.xlu0 %v2422_v32, %s2932_s24 }
 0x161   :  { %v3076_v34 = vpop.permute.xlu0 %143  ;;  %v3096_v39 = vcombine.low %v3072_v33, %v3072_v33 }
 0x162   :  { %v3084_v36 = vcombine.low %v3076_v34, %v3076_v34 }
 0x164   :  { %v3086_v37 = vpop.permute.xlu1 %149  ;;  %600 = vrot.lane.b32.xlu1 %v3080_v35, %s2932_s24  ;;  %650 = vrot.lane.b32.xlu0 %v3084_v36, %s2932_s24 }
 0x165   :  { %v3092_v38 = vpop.permute.xlu0 %147  ;;  %v3112_v43 = vcombine.low %v3086_v37, %v3086_v37 }
 0x166   :  { %v3100_v40 = vcombine.low %v3092_v38, %v3092_v38 }
 0x168   :  { %v3102_v41 = vpop.permute.xlu1 %153  ;;  %700 = vrot.lane.b32.xlu1 %v3096_v39, %s2932_s24  ;;  %750 = vrot.lane.b32.xlu0 %v3100_v40, %s2932_s24 }
 0x169   :  { %v3108_v42 = vpop.permute.xlu0 %151  ;;  %v3125_v48 = vcombine.low %v3102_v41, %v3102_v41 }
 0x16a   :  { %v3116_v44 = vcombine.low %v3108_v42, %v3108_v42 }
 0x16c   :  { %v205_v45 = vpop.permute.xlu1 %204  ;;  %800 = vrot.lane.b32.xlu1 %v3112_v43, %s2932_s24  ;;  %850 = vrot.lane.b32.xlu0 %v3116_v44, %s2932_s24 }
 0x16d   :  { %v156_v46 = vpop.permute.xlu0 %155  ;;  %v210_v47 = vsel %vm157_vm2, %v205_v45, 0 }
 0x16e   :  { %v162_v49 = vsel %vm157_vm2, %v156_v46, 0  ;;  %2584 = vmatpush3.bf16.xpose.msra.mxu0 %v210_v47 }
 0x16f   :  { %2578 = vmatpush3.bf16.xpose.msra.mxu1 %v162_v49  ;;  %2595 = vmatprep.subr.bf16.mxu0 %v2929_v21 }
 0x170   :  { %900 = vrot.lane.b32.xlu1 %v3125_v48, %s2932_s24  ;;  %1189 = vrot.lane.b32.xlu0 %v3018_v20, %s2933_s25  ;;  %v301_v50 = vpop.permute.xlu1 %300 }
 0x171   :  { %2589 = vmatprep.subr.bf16.mxu1 %v2929_v21  ;;  %v253_v51 = vpop.permute.xlu0 %252  ;;  %v306_v52 = vsel %vm157_vm2, %v301_v50, 0 }
 0x172   :  { %v258_v53 = vsel %vm157_vm2, %v253_v51, 0 }
 0x174   :  { %1140 = vrot.lane.b32.xlu1 %v3012_v17, %s2933_s25  ;;  %1285 = vrot.lane.b32.xlu0 %v3016_v19, %s2933_s25 }
 0x175   :  { %2586 = vmatmul.mubr.msk.bf16.vlgmr.msra.gmra.mrb[0].mxu0 %vm157_vm2, %v3018_v20 }
 0x176   :  { %2580 = vmatmul.mubr.msk.bf16.vlgmr.msra.gmra.mrb[4].mxu1 %vm157_vm2, %v3012_v17  ;;  %2596 = vmatpush3.bf16.xpose.msra.mxu0 %v306_v52 }
 0x177   :  { %2590 = vmatpush3.bf16.xpose.msra.mxu1 %v258_v53  ;;  %2597 = vmatprep.mubr.msk.bf16.mxu0 %vm2931_vm1, %v2929_v21 }
 0x178   :  { %1237 = vrot.lane.b32.xlu1 %v3010_v14, %s2933_s25  ;;  %1477 = vrot.lane.b32.xlu0 %v2420_v31, %s2933_s25 }
 0x179   :  { %2591 = vmatprep.mubr.msk.bf16.mxu1 %vm2931_vm1, %v2929_v21  ;;  %2601 = vmatprep.subr.bf16.mxu1 %v2929_v21 }
 0x17a   :  { %2607 = vmatprep.subr.bf16.mxu0 %v2929_v21 }
 0x17c   :  { %1333 = vrot.lane.b32.xlu1 %v2414_v24, %s2933_s25  ;;  %1381 = vrot.lane.b32.xlu0 %v2416_v28, %s2933_s25 }
 0x17d   :  { %2598 = vmatmul.mubr.msk.bf16.vlgmr.msra.gmra.mrb[4].mxu0 %vm157_vm2, %v3016_v19 }
 0x17e   :  { %2592 = vmatmul.mubr.msk.bf16.vlgmr.msra.gmra.mrb[8].mxu1 %vm157_vm2, %v3010_v14  ;;  %2609 = vmatprep.mubr.msk.bf16.mxu0 %vm2931_vm1, %v2929_v21 }
 0x17f   :  { %2603 = vmatprep.mubr.msk.bf16.mxu1 %vm2931_vm1, %v2929_v21 }
 0x180   :  { %1429 = vrot.lane.b32.xlu1 %v3057_v27, %s2933_s25 }
 0x184   :  { %1525 = vrot.lane.b32.xlu1 %v2422_v32, %s2933_s25 }
 0x1ca   :  { %v351_v54 = vpop.permute.xlu0 %350 }
 0x1cb   :  { %v356_v55 = vsel %vm157_vm2, %v351_v54, 0 }
 0x1cc   :  { %2602 = vmatpush3.bf16.xpose.msra.mxu1 %v356_v55 }
 0x1cd   :  { %2613 = vmatprep.subr.bf16.mxu1 %v2929_v21 }
 0x1ce   :  { %v401_v56 = vpop.permute.xlu1 %400  ;;  %v451_v58 = vpop.permute.xlu0 %450 }
 0x1cf   :  { %v406_v57 = vsel %vm157_vm2, %v401_v56, 0  ;;  %v456_v59 = vsel %vm157_vm2, %v451_v58, 0 }
 0x1d0   :  { %2608 = vmatpush3.bf16.xpose.msra.mxu0 %v406_v57 }
 0x1d1   :  { %2619 = vmatprep.subr.bf16.mxu0 %v2929_v21 }
 0x1d2   :  { %v501_v60 = vpop.permute.xlu1 %500  ;;  %v551_v62 = vpop.permute.xlu0 %550 }
 0x1d3   :  { %2604 = vmatmul.mubr.msk.bf16.vlgmr.msra.gmra.mrb[12].mxu1 %vm157_vm2, %v3046_v23  ;;  %v506_v61 = vsel %vm157_vm2, %v501_v60, 0  ;;  %v556_v63 = vsel %vm157_vm2, %v551_v62, 0 }
 0x1d4   :  { %2614 = vmatpush3.bf16.xpose.msra.mxu1 %v456_v59  ;;  %2615 = vmatprep.mubr.msk.bf16.mxu1 %vm2931_vm1, %v2929_v21 }
 0x1d5   :  { %2625 = vmatprep.subr.bf16.mxu1 %v2929_v21 }
 0x1d6   :  { %v601_v0 = vpop.permute.xlu1 %600  ;;  %v651_v2 = vpop.permute.xlu0 %650 }
 0x1d7   :  { %2610 = vmatmul.mubr.msk.bf16.vlgmr.msra.gmra.mrb[8].mxu0 %vm157_vm2, %v3053_v26  ;;  %v606_v1 = vsel %vm157_vm2, %v601_v0, 0  ;;  %v656_v3 = vsel %vm157_vm2, %v651_v2, 0 }
 0x1d8   :  { %2620 = vmatpush3.bf16.xpose.msra.mxu0 %v506_v61  ;;  %2621 = vmatprep.mubr.msk.bf16.mxu0 %vm2931_vm1, %v2929_v21 }
 0x1d9   :  { %2631 = vmatprep.subr.bf16.mxu0 %v2929_v21 }
 0x1da   :  { %v701_v4 = vpop.permute.xlu1 %700  ;;  %v751_v6 = vpop.permute.xlu0 %750 }
 0x1db   :  { %2616 = vmatmul.mubr.msk.bf16.vlgmr.msra.gmra.mrb[16].mxu1 %vm157_vm2, %v3044_v22  ;;  %v706_v5 = vsel %vm157_vm2, %v701_v4, 0  ;;  %v756_v7 = vsel %vm157_vm2, %v751_v6, 0 }
 0x1dc   :  { %2626 = vmatpush3.bf16.xpose.msra.mxu1 %v556_v63  ;;  %2627 = vmatprep.mubr.msk.bf16.mxu1 %vm2931_vm1, %v2929_v21 }
 0x1dd   :  { %2637 = vmatprep.subr.bf16.mxu1 %v2929_v21 }
 0x1de   :  { %v801_v8 = vpop.permute.xlu1 %800  ;;  %v851_v10 = vpop.permute.xlu0 %850 }
 0x1df   :  { %2622 = vmatmul.mubr.msk.bf16.vlgmr.msra.gmra.mrb[12].mxu0 %vm157_vm2, %v3050_v25  ;;  %v806_v9 = vsel %vm157_vm2, %v801_v8, 0  ;;  %v856_v12 = vsel %vm157_vm2, %v851_v10, 0 }
 0x1e0   :  { %2632 = vmatpush3.bf16.xpose.msra.mxu0 %v606_v1  ;;  %2633 = vmatprep.mubr.msk.bf16.mxu0 %vm2931_vm1, %v2929_v21 }
 0x1e1   :  { %2643 = vmatprep.subr.bf16.mxu0 %v2929_v21 }
 0x1e2   :  { %v901_v11 = vpop.permute.xlu1 %900  ;;  %v1190_v16 = vpop.permute.xlu0 %1189 }
 0x1e3   :  { %2628 = vmatmul.mubr.msk.bf16.vlgmr.msra.gmra.mrb[20].mxu1 %vm157_vm2, %v3066_v30  ;;  %v906_v13 = vsel %vm157_vm2, %v901_v11, 0  ;;  %v1195_v17 = vsel %vm1145_vm3, %v1190_v16, 0 }
 0x1e4   :  { %2638 = vmatpush3.bf16.xpose.msra.mxu1 %v656_v3  ;;  %2639 = vmatprep.mubr.msk.bf16.mxu1 %vm2931_vm1, %v2929_v21 }
 0x1e5   :  { %2649 = vmatprep.subr.bf16.mxu1 %v2929_v21 }
 0x1e6   :  { %v1141_v14 = vpop.permute.xlu1 %1140 }
 0x1e7   :  { %2634 = vmatmul.mubr.msk.bf16.vlgmr.msra.gmra.mrb[16].mxu0 %vm157_vm2, %v3061_v29  ;;  %v1147_v15 = vsel %vm1145_vm3, %v1141_v14, 0 }
 0x1e8   :  { %2644 = vmatpush3.bf16.xpose.msra.mxu0 %v706_v5  ;;  %2645 = vmatprep.mubr.msk.bf16.mxu0 %vm2931_vm1, %v2929_v21 }
 0x1e9   :  { %2655 = vmatprep.subr.bf16.mxu0 %v2929_v21 }
 0x1eb   :  { %2640 = vmatmul.mubr.msk.bf16.vlgmr.msra.gmra.mrb[24].mxu1 %vm157_vm2, %v3076_v34 }
 0x1ec   :  { %2650 = vmatpush3.bf16.xpose.msra.mxu1 %v756_v7  ;;  %2651 = vmatprep.mubr.msk.bf16.mxu1 %vm2931_vm1, %v2929_v21 }
 0x1ed   :  { %2661 = vmatprep.subr.bf16.mxu1 %v2929_v21 }
 0x1ef   :  { %2646 = vmatmul.mubr.msk.bf16.vlgmr.msra.gmra.mrb[20].mxu0 %vm157_vm2, %v3072_v33 }
 0x1f0   :  { %2656 = vmatpush3.bf16.xpose.msra.mxu0 %v806_v9  ;;  %2657 = vmatprep.mubr.msk.bf16.mxu0 %vm2931_vm1, %v2929_v21 }
 0x1f1   :  { %2667 = vmatprep.subr.bf16.mxu0 %v2929_v21 }
 0x1f3   :  { %2652 = vmatmul.mubr.msk.bf16.vlgmr.msra.gmra.mrb[28].mxu1 %vm157_vm2, %v3092_v38 }
 0x1f4   :  { %2662 = vmatpush3.bf16.xpose.msra.mxu1 %v856_v12  ;;  %2663 = vmatprep.mubr.msk.bf16.mxu1 %vm2931_vm1, %v2929_v21 }
 0x1f5   :  { %2673 = vmatprep.subr.bf16.mxu1 %v2929_v21 }
 0x1f7   :  { %2658 = vmatmul.mubr.msk.bf16.vlgmr.msra.gmra.mrb[24].mxu0 %vm157_vm2, %v3086_v37 }
 0x1f8   :  { %2668 = vmatpush3.bf16.xpose.msra.mxu0 %v906_v13  ;;  %2669 = vmatprep.mubr.msk.bf16.mxu0 %vm2931_vm1, %v2929_v21 }
 0x1f9   :  { %2679 = vmatprep.subr.bf16.mxu0 %v2929_v21 }
 0x1fb   :  { %2664 = vmatmul.mubr.msk.bf16.vlgmr.msra.gmra.mrb[32].mxu1 %vm157_vm2, %v3108_v42 }
 0x1fc   :  { %2674 = vmatpush3.bf16.msra.mxu1 %v1147_v15  ;;  %2675 = vmatprep.mubr.msk.bf16.mxu1 %vm2931_vm1, %v2929_v21 }
 0x1fd   :  { %2685 = vmatprep.subr.bf16.mxu1 %v2929_v21 }
 0x1ff   :  { %2670 = vmatmul.mubr.msk.bf16.vlgmr.msra.gmra.mrb[28].mxu0 %vm157_vm2, %v3102_v41 }
 0x200   :  { %2680 = vmatpush3.bf16.msra.mxu0 %v1195_v17  ;;  %2681 = vmatprep.mubr.msk.bf16.mxu0 %vm2931_vm1, %v2929_v21 }
 0x201   :  { %2691 = vmatprep.subr.bf16.mxu0 %v2929_v21 }
 0x248   :  { %v3242_v18 = vpop.f32.mrb[0].mxu0 }
 0x249   :  { %v3244_v19 = vpop.f32.mrb[4].mxu1  ;;  %v2587_v20 = vpop.f32.mrb[1].mxu0  ;;  %v951_v22 = vsel %vm157_vm2, %v3242_v18, -inf }
 0x24a   :  { %v249_v23 = vpop.f32.mrb[2].mxu0  ;;  %952 = vmax.xlane.f32.xlu1 %v951_v22  ;;  %v2581_v24 = vpop.f32.mrb[5].mxu1  ;;  %v948_v25 = vsel %vm157_vm2, %v3244_v19, -inf }
 0x24b   :  { %v2588_v26 = vpop.f32.mrb[3].mxu0  ;;  %949 = vmax.xlane.f32.xlu0 %v948_v25  ;;  %v201_v27 = vpop.f32.mrb[6].mxu1 }
 0x24c   :  { %v2582_v28 = vpop.f32.mrb[7].mxu1 }
 0x24d   :  { %v3294_v28 = vpop.permute.xlu0 %1285 }
 0x250   :  { %v3250_v29 = vpop.f32.mrb[4].mxu0 }
 0x251   :  { %v3252_v30 = vpop.f32.mrb[8].mxu1  ;;  %v2599_v31 = vpop.f32.mrb[5].mxu0  ;;  %v957_v42 = vsel %vm157_vm2, %v3250_v29, -inf }
 0x252   :  { %v2593_v32 = vpop.f32.mrb[9].mxu1  ;;  %v345_v33 = vpop.f32.mrb[6].mxu0  ;;  %v954_v34 = vsel %vm157_vm2, %v3252_v30, -inf }
 0x253   :  { %v2600_v37 = vpop.f32.mrb[7].mxu0  ;;  %955 = vmax.xlane.f32.xlu0 %v954_v34  ;;  %v297_v38 = vpop.f32.mrb[10].mxu1 }
 0x254   :  { %v2594_v41 = vpop.f32.mrb[11].mxu1 }
 0x257   :  { %958 = vmax.xlane.f32.xlu0 %v957_v42  ;;  %v3300_v42 = vpop.permute.xlu0 %1477 }
 0x2a6   :  { %v3258_v45 = vpop.f32.mrb[12].mxu1 }
 0x2a7   :  { %v2605_v46 = vpop.f32.mrb[13].mxu1  ;;  %v960_v47 = vsel %vm157_vm2, %v3258_v45, -inf }
 0x2a8   :  { %961 = vmax.xlane.f32.xlu1 %v960_v47  ;;  %v395_v49 = vpop.f32.mrb[14].mxu1 }
 0x2a9   :  { %v2606_v50 = vpop.f32.mrb[15].mxu1 }
 0x2aa   :  { %v3262_v51 = vpop.f32.mrb[8].mxu0 }
 0x2ab   :  { %v2611_v52 = vpop.f32.mrb[9].mxu0  ;;  %v963_v53 = vsel %vm157_vm2, %v3262_v51, -inf }
 0x2ac   :  { %v445_v54 = vpop.f32.mrb[10].mxu0  ;;  %964 = vmax.xlane.f32.xlu0 %v963_v53 }
 0x2ad   :  { %v2612_v55 = vpop.f32.mrb[11].mxu0 }
 0x2ae   :  { %v3266_v56 = vpop.f32.mrb[16].mxu1 }
 0x2af   :  { %v2617_v57 = vpop.f32.mrb[17].mxu1  ;;  %v966_v58 = vsel %vm157_vm2, %v3266_v56, -inf }
 0x2b0   :  { %967 = vmax.xlane.f32.xlu1 %v966_v58  ;;  %v495_v59 = vpop.f32.mrb[18].mxu1  ;;  %v3310_v57 = vpop.permute.xlu0 %1381 }
 0x2b1   :  { %v2618_v60 = vpop.f32.mrb[19].mxu1 }
 0x2b2   :  { %v3270_v61 = vpop.f32.mrb[12].mxu0 }
 0x2b3   :  { %v2623_v62 = vpop.f32.mrb[13].mxu0  ;;  %v969_v63 = vsel %vm157_vm2, %v3270_v61, -inf }
 0x2b4   :  { %v545_v0 = vpop.f32.mrb[14].mxu0  ;;  %970 = vmax.xlane.f32.xlu0 %v969_v63  ;;  %v3313_v63 = vpop.permute.xlu1 %1237 }
 0x2b5   :  { %v2624_v1 = vpop.f32.mrb[15].mxu0 }
 0x2b6   :  { %v3274_v2 = vpop.f32.mrb[20].mxu1 }
 0x2b7   :  { %v2629_v3 = vpop.f32.mrb[21].mxu1  ;;  %v972_v4 = vsel %vm157_vm2, %v3274_v2, -inf }
 0x2b8   :  { %973 = vmax.xlane.f32.xlu1 %v972_v4  ;;  %v595_v5 = vpop.f32.mrb[22].mxu1  ;;  %v3315_v1 = vpop.permute.xlu1 %1333 }
 0x2b9   :  { %v2630_v6 = vpop.f32.mrb[23].mxu1 }
 0x2ba   :  { %v3278_v7 = vpop.f32.mrb[16].mxu0 }
 0x2bb   :  { %v2635_v8 = vpop.f32.mrb[17].mxu0  ;;  %v975_v9 = vsel %vm157_vm2, %v3278_v7, -inf }
 0x2bc   :  { %v645_v10 = vpop.f32.mrb[18].mxu0  ;;  %976 = vmax.xlane.f32.xlu0 %v975_v9  ;;  %v3317_v3 = vpop.permute.xlu1 %1429 }
 0x2bd   :  { %v2636_v11 = vpop.f32.mrb[19].mxu0 }
 0x2be   :  { %v3282_v12 = vpop.f32.mrb[24].mxu1 }
 0x2bf   :  { %v2641_v13 = vpop.f32.mrb[25].mxu1  ;;  %v978_v14 = vsel %vm157_vm2, %v3282_v12, -inf }
 0x2c0   :  { %979 = vmax.xlane.f32.xlu1 %v978_v14  ;;  %v695_v15 = vpop.f32.mrb[26].mxu1  ;;  %v3325_v6 = vpop.permute.xlu1 %1525 }
 0x2c1   :  { %v2642_v16 = vpop.f32.mrb[27].mxu1 }
 0x2c2   :  { %v3286_v17 = vpop.f32.mrb[20].mxu0 }
 0x2c3   :  { %v2647_v20 = vpop.f32.mrb[21].mxu0  ;;  %v981_v22 = vsel %vm157_vm2, %v3286_v17, -inf }
 0x2c4   :  { %v745_v23 = vpop.f32.mrb[22].mxu0  ;;  %982 = vmax.xlane.f32.xlu0 %v981_v22 }
 0x2c5   :  { %v2648_v24 = vpop.f32.mrb[23].mxu0 }
 0x2c6   :  { %v3290_v25 = vpop.f32.mrb[28].mxu1 }
 0x2c7   :  { %v2653_v26 = vpop.f32.mrb[29].mxu1  ;;  %v984_v27 = vsel %vm157_vm2, %v3290_v25, -inf }
 0x2c8   :  { %985 = vmax.xlane.f32.xlu1 %v984_v27  ;;  %v795_v31 = vpop.f32.mrb[30].mxu1 }
 0x2c9   :  { %v2654_v32 = vpop.f32.mrb[31].mxu1 }
 0x2ca   :  { %v3296_v33 = vpop.f32.mrb[24].mxu0 }
 0x2cb   :  { %v2659_v34 = vpop.f32.mrb[25].mxu0  ;;  %v987_v37 = vsel %vm157_vm2, %v3296_v33, -inf }
 0x2cc   :  { %v845_v38 = vpop.f32.mrb[26].mxu0  ;;  %988 = vmax.xlane.f32.xlu0 %v987_v37 }
 0x2cd   :  { %v2660_v41 = vpop.f32.mrb[27].mxu0 }
 0x2ce   :  { %v3302_v46 = vpop.f32.mrb[32].mxu1 }
 0x2cf   :  { %v2665_v47 = vpop.f32.mrb[33].mxu1  ;;  %v990_v49 = vsel %vm157_vm2, %v3302_v46, -inf }
 0x2d0   :  { %991 = vmax.xlane.f32.xlu1 %v990_v49  ;;  %v895_v50 = vpop.f32.mrb[34].mxu1 }
 0x2d1   :  { %v2666_v52 = vpop.f32.mrb[35].mxu1 }
 0x2d2   :  { %v3306_v53 = vpop.f32.mrb[28].mxu0 }
 0x2d3   :  { %v2671_v54 = vpop.f32.mrb[29].mxu0  ;;  %v993_v55 = vsel %vm157_vm2, %v3306_v53, -inf }
 0x2d4   :  { %v945_v58 = vpop.f32.mrb[30].mxu0  ;;  %994 = vmax.xlane.f32.xlu0 %v993_v55 }
 0x2d5   :  { %v2672_v59 = vpop.f32.mrb[31].mxu0 }
 0x2d7   :  { %v953_v8 = vpop.xlane.xlu1 %952 }
 0x2d8   :  { %v950_v60 = vpop.xlane.xlu0 %949  ;;  %v997_v9 = vsub.f32 %v3242_v18, %v953_v8 }
 0x2d9   :  { %v996_v62 = vsub.f32 %v3244_v19, %v950_v60 }
 0x2da   :  { %v1014_v11 = vmul.f32 1.442695, %v997_v9 }
 0x2db   :  { %v1012_v0 = vmul.f32 1.442695, %v996_v62 }
 0x2dd   :  { %2835 = vpow2.f32 %v1012_v0 }
 0x2de   :  { %2837 = vpow2.f32 %v1014_v11 }
 0x2e0   :  { %v956_v19 = vpop.xlane.xlu0 %955 }
 0x2e1   :  { %v998_v18 = vsub.f32 %v3252_v30, %v956_v19 }
 0x2e4   :  { %v959_v10 = vpop.xlane.xlu0 %958 }
 0x2e5   :  { %v999_v13 = vsub.f32 %v3250_v29, %v959_v10 }
 0x2e7   :  { %v3319_v4 = vpop.eup %2835  ;;  %v1018_v14 = vmul.f32 1.442695, %v999_v13 }
 0x2e8   :  { %v1044_v5 = vsel %vm157_vm2, %v3319_v4, 0.0 }
 0x2e9   :  { %1045 = vadd.xlane.f32.xlu1 %v1044_v5  ;;  %2839 = vpow2.f32 %v1018_v14 }
 0x2ea   :  { %1573 = vrot.lane.b32.xlu0 %v3080_v35, %s2933_s25  ;;  %v3333_v35 = vpop.eup %2837 }
 0x2eb   :  { %v1047_v15 = vsel %vm157_vm2, %v3333_v35, 0.0 }
 0x2f3   :  { %v3337_v16 = vpop.eup %2839 }
 0x2f4   :  { %v1053_v29 = vsel %vm157_vm2, %v3337_v16, 0.0 }
 0x2fa   :  { %1621 = vrot.lane.b32.xlu1 %v3084_v36, %s2933_s25  ;;  %v1016_v36 = vmul.f32 1.442695, %v998_v18 }
 0x2fc   :  { %2841 = vpow2.f32 %v1016_v36 }
 0x2fe   :  { %1669 = vrot.lane.b32.xlu1 %v3096_v39, %s2933_s25 }
 0x306   :  { %v3342_v20 = vpop.eup %2841 }
 0x307   :  { %v1050_v39 = vsel %vm157_vm2, %v3342_v20, 0.0 }
 0x309   :  { %1048 = vadd.xlane.f32.xlu0 %v1047_v15 }
 0x30d   :  { %1054 = vadd.xlane.f32.xlu0 %v1053_v29 }
 0x322   :  { %1051 = vadd.xlane.f32.xlu1 %v1050_v39 }
 0x335   :  { %v962_v22 = vpop.xlane.xlu1 %961 }
 0x336   :  { %v1000_v23 = vsub.f32 %v3258_v45, %v962_v22 }
 0x338   :  { %v1020_v24 = vmul.f32 1.442695, %v1000_v23 }
 0x339   :  { %v965_v26 = vpop.xlane.xlu0 %964 }
 0x33a   :  { %2843 = vpow2.f32 %v1020_v24  ;;  %v1001_v30 = vsub.f32 %v3262_v51, %v965_v26 }
 0x33c   :  { %v1022_v27 = vmul.f32 1.442695, %v1001_v30 }
 0x33d   :  { %v968_v31 = vpop.xlane.xlu1 %967 }
 0x33e   :  { %2845 = vpow2.f32 %v1022_v27  ;;  %v1002_v32 = vsub.f32 %v3266_v56, %v968_v31 }
 0x340   :  { %v1024_v34 = vmul.f32 1.442695, %v1002_v32 }
 0x341   :  { %v971_v37 = vpop.xlane.xlu0 %970 }
 0x342   :  { %2847 = vpow2.f32 %v1024_v34  ;;  %v1003_v38 = vsub.f32 %v3270_v61, %v971_v37 }
 0x344   :  { %v3350_v41 = vpop.eup %2843  ;;  %v1026_v47 = vmul.f32 1.442695, %v1003_v38 }
 0x345   :  { %v974_v49 = vpop.xlane.xlu1 %973  ;;  %v1056_v45 = vsel %vm157_vm2, %v3350_v41, 0.0 }
 0x346   :  { %2849 = vpow2.f32 %v1026_v47  ;;  %v1004_v51 = vsub.f32 %v3274_v2, %v974_v49  ;;  %1057 = vadd.xlane.f32.xlu1 %v1056_v45 }
 0x348   :  { %v3355_v50 = vpop.eup %2845  ;;  %v1028_v52 = vmul.f32 1.442695, %v1004_v51 }
 0x349   :  { %v977_v56 = vpop.xlane.xlu0 %976  ;;  %v1059_v54 = vsel %vm157_vm2, %v3355_v50, 0.0 }
 0x34a   :  { %2851 = vpow2.f32 %v1028_v52  ;;  %v1005_v61 = vsub.f32 %v3278_v7, %v977_v56  ;;  %1060 = vadd.xlane.f32.xlu0 %v1059_v54 }
 0x34c   :  { %v3360_v55 = vpop.eup %2847  ;;  %v1030_v58 = vmul.f32 1.442695, %v1005_v61 }
 0x34d   :  { %v980_v59 = vpop.xlane.xlu1 %979  ;;  %v1062_v60 = vsel %vm157_vm2, %v3360_v55, 0.0 }
 0x34e   :  { %2853 = vpow2.f32 %v1030_v58  ;;  %v1006_v2 = vsub.f32 %v3282_v12, %v980_v59  ;;  %1063 = vadd.xlane.f32.xlu1 %v1062_v60  ;;  %v1291_v60 = vsel %vm1145_vm3, %v3294_v28, 0 }
 0x350   :  { %v3365_v62 = vpop.eup %2849  ;;  %v1032_v0 = vmul.f32 1.442695, %v1006_v2 }
 0x351   :  { %v983_v5 = vpop.xlane.xlu0 %982  ;;  %v1065_v19 = vsel %vm157_vm2, %v3365_v62, 0.0 }
 0x352   :  { %2855 = vpow2.f32 %v1032_v0  ;;  %v1007_v7 = vsub.f32 %v3286_v17, %v983_v5  ;;  %1066 = vadd.xlane.f32.xlu0 %v1065_v19  ;;  %v1387_v5 = vsel %vm1145_vm3, %v3310_v57, 0  ;;  %v1339_v57 = vsel %vm1145_vm3, %v3315_v1, 0 }
 0x354   :  { %v3370_v8 = vpop.eup %2851  ;;  %v1034_v9 = vmul.f32 1.442695, %v1007_v7 }
 0x355   :  { %v1068_v10 = vsel %vm157_vm2, %v3370_v8, 0.0  ;;  %v986_v18 = vpop.xlane.xlu1 %985 }
 0x356   :  { %2857 = vpow2.f32 %v1034_v9  ;;  %1069 = vadd.xlane.f32.xlu1 %v1068_v10  ;;  %v1008_v39 = vsub.f32 %v3290_v25, %v986_v18 }
 0x358   :  { %v3374_v12 = vpop.eup %2853  ;;  %v1036_v26 = vmul.f32 1.442695, %v1008_v39  ;;  %v1483_v39 = vsel %vm1145_vm3, %v3300_v42, 0 }
 0x359   :  { %v1071_v11 = vsel %vm157_vm2, %v3374_v12, 0.0  ;;  %v989_v22 = vpop.xlane.xlu0 %988 }
 0x35a   :  { %1072 = vadd.xlane.f32.xlu0 %v1071_v11  ;;  %v1009_v23 = vsub.f32 %v3296_v33, %v989_v22 }
 0x35c   :  { %v3378_v13 = vpop.eup %2855  ;;  %v1038_v32 = vmul.f32 1.442695, %v1009_v23 }
 0x35d   :  { %v1074_v17 = vsel %vm157_vm2, %v3378_v13, 0.0  ;;  %v992_v29 = vpop.xlane.xlu1 %991 }
 0x35e   :  { %1075 = vadd.xlane.f32.xlu1 %v1074_v17  ;;  %v1010_v30 = vsub.f32 %v3302_v46, %v992_v29 }
 0x360   :  { %v3382_v14 = vpop.eup %2857  ;;  %v1040_v34 = vmul.f32 1.442695, %v1010_v30 }
 0x361   :  { %v1077_v15 = vsel %vm157_vm2, %v3382_v14, 0.0  ;;  %v995_v27 = vpop.xlane.xlu0 %994 }
 0x362   :  { %1078 = vadd.xlane.f32.xlu0 %v1077_v15  ;;  %v1011_v37 = vsub.f32 %v3306_v53, %v995_v27  ;;  %v1435_v15 = vsel %vm1145_vm3, %v3317_v3, 0 }
 0x364   :  { %v1042_v25 = vmul.f32 1.442695, %v1011_v37 }
 0x365   :  { %v3405_v53 = vpop.permute.xlu0 %1573 }
 0x366   :  { %v1579_v27 = vsel %vm1145_vm3, %v3405_v53, 0 }
 0x36f   :  { %1765 = vrot.lane.b32.xlu1 %v3112_v43, %s2933_s25 }
 0x376   :  { %v1046_v36 = vpop.xlane.xlu1 %1045 }
 0x377   :  { %2859 = vrcp.f32 %v1046_v36 }
 0x378   :  { %1717 = vrot.lane.b32.xlu0 %v3100_v40, %s2933_s25  ;;  %2861 = vpow2.f32 %v1036_v26  ;;  %v1243_v40 = vsel %vm1145_vm3, %v3313_v63, 0 }
 0x379   :  { %2863 = vpow2.f32 %v1038_v32 }
 0x37a   :  { %2865 = vpow2.f32 %v1040_v34  ;;  %v3420_v59 = vpop.permute.xlu1 %1621 }
 0x37b   :  { %2867 = vpow2.f32 %v1042_v25 }
 0x381   :  { %v2860_v24 = vpop.eup %2859 }
 0x382   :  { %v1108_v31 = vmul.f32 %v2860_v24, %v3319_v4  ;;  %v3401_v33 = vpop.eup %2861  ;;  %v1531_v24 = vsel %vm1145_vm3, %v3325_v6, 0 }
 0x383   :  { %v3403_v46 = vpop.eup %2863  ;;  %v1080_v63 = vsel %vm157_vm2, %v3401_v33, 0.0 }
 0x384   :  { %v1124_v43 = vpack.c.bf16 %v1108_v31, %v1108_v31  ;;  %v3409_v4 = vpop.eup %2865  ;;  %v1083_v49 = vsel %vm157_vm2, %v3403_v46, 0.0 }
 0x385   :  { %v1086_v47 = vsel %vm157_vm2, %v3409_v4, 0.0  ;;  %v3415_v45 = vpop.eup %2867 }
 0x386   :  { %2676 = vmatmul.mubr.msk.bf16.vlgmr.msra.gmra.mrb[36].mxu1 %vm157_vm2, %v1124_v43  ;;  %v1089_v52 = vsel %vm157_vm2, %v3415_v45, 0.0  ;;  %v1627_v43 = vsel %vm1145_vm3, %v3420_v59, 0 }
 0x387   :  { %2686 = vmatpush3.bf16.msra.mxu1 %v1243_v40  ;;  %2687 = vmatprep.mubr.msk.bf16.mxu1 %vm2931_vm1, %v2929_v21 }
 0x388   :  { %2697 = vmatprep.subr.bf16.mxu1 %v2929_v21 }
 0x393   :  { %1081 = vadd.xlane.f32.xlu1 %v1080_v63 }
 0x396   :  { %v1049_v38 = vpop.xlane.xlu0 %1048 }
 0x397   :  { %2869 = vrcp.f32 %v1049_v38  ;;  %1087 = vadd.xlane.f32.xlu1 %v1086_v47  ;;  %1084 = vadd.xlane.f32.xlu0 %v1083_v49 }
 0x39a   :  { %v1055_v51 = vpop.xlane.xlu0 %1054 }
 0x39b   :  { %2871 = vrcp.f32 %v1055_v51  ;;  %1090 = vadd.xlane.f32.xlu0 %v1089_v52 }
 0x3a1   :  { %v2870_v56 = vpop.eup %2869 }
 0x3a2   :  { %v1109_v54 = vmul.f32 %v2870_v56, %v3333_v35  ;;  %v3431_v35 = vpop.permute.xlu1 %1669 }
 0x3a3   :  { %v1675_v40 = vsel %vm1145_vm3, %v3431_v35, 0  ;;  %v1917_v35 = vld [vmem:[%s3620_s3] sm:$0xf] }
 0x3a4   :  { %v1125_v61 = vpack.c.bf16 %v1109_v54, %v1109_v54 }
 0x3a5   :  { %v2872_v58 = vpop.eup %2871 }
 0x3a6   :  { %2682 = vmatmul.mubr.msk.bf16.vlgmr.msra.gmra.mrb[32].mxu0 %vm157_vm2, %v1125_v61  ;;  %v1111_v2 = vmul.f32 %v2872_v58, %v3337_v16 }
 0x3a7   :  { %2692 = vmatpush3.bf16.msra.mxu0 %v1291_v60  ;;  %2693 = vmatprep.mubr.msk.bf16.mxu0 %vm2931_vm1, %v2929_v21 }
 0x3a8   :  { %1861 = vrot.lane.b32.xlu1 %v3125_v48, %s2933_s25  ;;  %2703 = vmatprep.subr.bf16.mxu0 %v2929_v21  ;;  %v1127_v0 = vpack.c.bf16 %v1111_v2, %v1111_v2 }
 0x3ae   :  { %2694 = vmatmul.mubr.msk.bf16.vlgmr.msra.gmra.mrb[36].mxu0 %vm157_vm2, %v1127_v0 }
 0x3af   :  { %2704 = vmatpush3.bf16.msra.mxu0 %v1387_v5  ;;  %v1052_v28 = vpop.xlane.xlu1 %1051  ;;  %2705 = vmatprep.mubr.msk.bf16.mxu0 %vm2931_vm1, %v2929_v21 }
 0x3b0   :  { %2873 = vrcp.f32 %v1052_v28  ;;  %2715 = vmatprep.subr.bf16.mxu0 %v2929_v21 }
 0x3b1   :  { %1813 = vrot.lane.b32.xlu0 %v3116_v44, %s2933_s25 }
 0x3ba   :  { %v2874_v48 = vpop.eup %2873 }
 0x3bb   :  { %v1110_v16 = vmul.f32 %v2874_v48, %v3342_v20 }
 0x3bd   :  { %v1126_v19 = vpack.c.bf16 %v1110_v16, %v1110_v16 }
 0x3bf   :  { %2688 = vmatmul.mubr.msk.bf16.vlgmr.msra.gmra.mrb[40].mxu1 %vm157_vm2, %v1126_v19 }
 0x3c0   :  { %2698 = vmatpush3.bf16.msra.mxu1 %v1339_v57  ;;  %2699 = vmatprep.mubr.msk.bf16.mxu1 %vm2931_vm1, %v2929_v21 }
 0x3c1   :  { %2709 = vmatprep.subr.bf16.mxu1 %v2929_v21 }
 0x3d3   :  { %v1058_v7 = vpop.xlane.xlu1 %1057 }
 0x3d4   :  { %2875 = vrcp.f32 %v1058_v7 }
 0x3d7   :  { %v1061_v9 = vpop.xlane.xlu0 %1060 }
 0x3d8   :  { %2877 = vrcp.f32 %v1061_v9 }
 0x3db   :  { %v1064_v44 = vpop.xlane.xlu1 %1063 }
 0x3dc   :  { %2879 = vrcp.f32 %v1064_v44  ;;  %v1918_v44 = vld [vmem:[%s3620_s3 + $0x4] sm:$0xf] }
 0x3de   :  { %v2876_v10 = vpop.eup %2875 }
 0x3df   :  { %v1112_v20 = vmul.f32 %v2876_v10, %v3350_v41  ;;  %v1067_v11 = vpop.xlane.xlu0 %1066  ;;  %v1986_v10 = vsel %vm1145_vm3, %v1918_v44, 0 }
 0x3e0   :  { %2881 = vrcp.f32 %v1067_v11 }
 0x3e1   :  { %v1128_v1 = vpack.c.bf16 %v1112_v20, %v1112_v20 }
 0x3e2   :  { %v2878_v17 = vpop.eup %2877 }
 0x3e3   :  { %v1113_v18 = vmul.f32 %v2878_v17, %v3355_v50  ;;  %2700 = vmatmul.mubr.msk.bf16.vlgmr.msra.gmra.mrb[44].mxu1 %vm157_vm2, %v1128_v1  ;;  %v1070_v29 = vpop.xlane.xlu1 %1069 }
 0x3e4   :  { %2710 = vmatpush3.bf16.msra.mxu1 %v1435_v15  ;;  %2883 = vrcp.f32 %v1070_v29  ;;  %2711 = vmatprep.mubr.msk.bf16.mxu1 %vm2931_vm1, %v2929_v21 }
 0x3e5   :  { %v1129_v36 = vpack.c.bf16 %v1113_v18, %v1113_v18  ;;  %2721 = vmatprep.subr.bf16.mxu1 %v2929_v21 }
 0x3e6   :  { %v2880_v41 = vpop.eup %2879 }
 0x3e7   :  { %v1114_v22 = vmul.f32 %v2880_v41, %v3360_v55  ;;  %2706 = vmatmul.mubr.msk.bf16.vlgmr.msra.gmra.mrb[40].mxu0 %vm157_vm2, %v1129_v36  ;;  %v1073_v3 = vpop.xlane.xlu0 %1072 }
 0x3e8   :  { %2716 = vmatpush3.bf16.msra.mxu0 %v1483_v39  ;;  %2885 = vrcp.f32 %v1073_v3  ;;  %2717 = vmatprep.mubr.msk.bf16.mxu0 %vm2931_vm1, %v2929_v21 }
 0x3e9   :  { %v1130_v50 = vpack.c.bf16 %v1114_v22, %v1114_v22  ;;  %2727 = vmatprep.subr.bf16.mxu0 %v2929_v21 }
 0x3ea   :  { %v2882_v23 = vpop.eup %2881 }
 0x3eb   :  { %v1115_v26 = vmul.f32 %v2882_v23, %v3365_v62  ;;  %2712 = vmatmul.mubr.msk.bf16.vlgmr.msra.gmra.mrb[48].mxu1 %vm157_vm2, %v1130_v50  ;;  %v1076_v42 = vpop.xlane.xlu1 %1075  ;;  %v1920_v50 = vld [vmem:[%s3620_s3 + $0xc] sm:$0xf] }
 0x3ec   :  { %2722 = vmatpush3.bf16.msra.mxu1 %v1531_v24  ;;  %2887 = vrcp.f32 %v1076_v42  ;;  %2723 = vmatprep.mubr.msk.bf16.mxu1 %vm2931_vm1, %v2929_v21 }
 0x3ed   :  { %v1131_v55 = vpack.c.bf16 %v1115_v26, %v1115_v26  ;;  %2733 = vmatprep.subr.bf16.mxu1 %v2929_v21 }
 0x3ee   :  { %v2884_v30 = vpop.eup %2883 }
 0x3ef   :  { %v1116_v31 = vmul.f32 %v2884_v30, %v3370_v8  ;;  %2718 = vmatmul.mubr.msk.bf16.vlgmr.msra.gmra.mrb[44].mxu0 %vm157_vm2, %v1131_v55  ;;  %v1079_v6 = vpop.xlane.xlu0 %1078  ;;  %v1766_v49 = vpop.permute.xlu1 %1765 }
 0x3f0   :  { %2728 = vmatpush3.bf16.msra.mxu0 %v1579_v27  ;;  %2889 = vrcp.f32 %v1079_v6  ;;  %2729 = vmatprep.mubr.msk.bf16.mxu0 %vm2931_vm1, %v2929_v21  ;;  %v1771_v51 = vsel %vm1145_vm3, %v1766_v49, 0  ;;  %v2102_v49 = vsel %vm1145_vm3, %v1920_v50, 0 }
 0x3f1   :  { %v1132_v62 = vpack.c.bf16 %v1116_v31, %v1116_v31  ;;  %2739 = vmatprep.subr.bf16.mxu0 %v2929_v21 }
 0x3f2   :  { %v2886_v32 = vpop.eup %2885 }
 0x3f3   :  { %v1117_v34 = vmul.f32 %v2886_v32, %v3374_v12  ;;  %2724 = vmatmul.mubr.msk.bf16.vlgmr.msra.gmra.mrb[52].mxu1 %vm157_vm2, %v1132_v62  ;;  %v1718_v53 = vpop.permute.xlu0 %1717 }
 0x3f4   :  { %2734 = vmatpush3.bf16.msra.mxu1 %v1627_v43  ;;  %2735 = vmatprep.mubr.msk.bf16.mxu1 %vm2931_vm1, %v2929_v21  ;;  %v1723_v47 = vsel %vm1145_vm3, %v1718_v53, 0 }
 0x3f5   :  { %v1133_v8 = vpack.c.bf16 %v1117_v34, %v1117_v34  ;;  %2745 = vmatprep.subr.bf16.mxu1 %v2929_v21 }
 0x3f6   :  { %v2888_v37 = vpop.eup %2887 }
 0x3f7   :  { %v1118_v25 = vmul.f32 %v2888_v37, %v3378_v13  ;;  %2730 = vmatmul.mubr.msk.bf16.vlgmr.msra.gmra.mrb[48].mxu0 %vm157_vm2, %v1133_v8 }
 0x3f8   :  { %2740 = vmatpush3.bf16.msra.mxu0 %v1675_v40  ;;  %2741 = vmatprep.mubr.msk.bf16.mxu0 %vm2931_vm1, %v2929_v21 }
 0x3f9   :  { %v1134_v12 = vpack.c.bf16 %v1118_v25, %v1118_v25  ;;  %2751 = vmatprep.subr.bf16.mxu0 %v2929_v21 }
 0x3fa   :  { %v2890_v63 = vpop.eup %2889 }
 0x3fb   :  { %v1119_v38 = vmul.f32 %v2890_v63, %v3382_v14  ;;  %2736 = vmatmul.mubr.msk.bf16.vlgmr.msra.gmra.mrb[56].mxu1 %vm157_vm2, %v1134_v12 }
 0x3fc   :  { %2746 = vmatpush3.bf16.msra.mxu1 %v1723_v47  ;;  %2747 = vmatprep.mubr.msk.bf16.mxu1 %vm2931_vm1, %v2929_v21 }
 0x3fd   :  { %v1135_v13 = vpack.c.bf16 %v1119_v38, %v1119_v38  ;;  %2757 = vmatprep.subr.bf16.mxu1 %v2929_v21 }
 0x3ff   :  { %2742 = vmatmul.mubr.msk.bf16.vlgmr.msra.gmra.mrb[52].mxu0 %vm157_vm2, %v1135_v13 }
 0x400   :  { %2752 = vmatpush3.bf16.msra.mxu0 %v1771_v51  ;;  %2753 = vmatprep.mubr.msk.bf16.mxu0 %vm2931_vm1, %v2929_v21 }
 0x401   :  { %2763 = vmatprep.subr.bf16.mxu0 %v2929_v21 }
 0x420   :  { %v1082_v14 = vpop.xlane.xlu1 %1081 }
 0x421   :  { %2891 = vrcp.f32 %v1082_v14 }
 0x424   :  { %v1088_v52 = vpop.xlane.xlu1 %1087  ;;  %v1085_v56 = vpop.xlane.xlu0 %1084 }
 0x425   :  { %2893 = vrcp.f32 %v1088_v52 }
 0x426   :  { %2895 = vrcp.f32 %v1085_v56 }
 0x428   :  { %v1091_v54 = vpop.xlane.xlu0 %1090  ;;  %v1862_v48 = vpop.permute.xlu1 %1861 }
 0x429   :  { %2897 = vrcp.f32 %v1091_v54  ;;  %v1867_v57 = vsel %vm1145_vm3, %v1862_v48, 0 }
 0x42b   :  { %v2892_v61 = vpop.eup %2891 }
 0x42c   :  { %v1120_v58 = vmul.f32 %v2892_v61, %v3401_v33  ;;  %v1814_v59 = vpop.permute.xlu0 %1813 }
 0x42d   :  { %v1819_v5 = vsel %vm1145_vm3, %v1814_v59, 0 }
 0x42e   :  { %v1136_v60 = vpack.c.bf16 %v1120_v58, %v1120_v58 }
 0x42f   :  { %v2894_v2 = vpop.eup %2893 }
 0x430   :  { %v2896_v0 = vpop.eup %2895  ;;  %2748 = vmatmul.mubr.msk.bf16.vlgmr.msra.gmra.mrb[60].mxu1 %vm157_vm2, %v1136_v60  ;;  %v1122_v33 = vmul.f32 %v2894_v2, %v3409_v4 }
 0x431   :  { %v1121_v28 = vmul.f32 %v2896_v0, %v3403_v46  ;;  %2758 = vmatpush3.bf16.msra.mxu1 %v1819_v5  ;;  %2759 = vmatprep.mubr.msk.bf16.mxu1 %vm2931_vm1, %v2929_v21  ;;  %v1928_v46 = vsel %vm1145_vm3, %v1917_v35, 0 }
 0x432   :  { %2813 = vmatprep.subr.msk.bf16.mxu1 %vm1145_vm3, %v1917_v35  ;;  %v1138_v7 = vpack.c.bf16 %v1122_v33, %v1122_v33 }
 0x433   :  { %v1137_v16 = vpack.c.bf16 %v1121_v28, %v1121_v28  ;;  %v2898_v19 = vpop.eup %2897 }
 0x434   :  { %v1123_v9 = vmul.f32 %v2898_v19, %v3415_v45 }
 0x435   :  { %2754 = vmatmul.mubr.msk.bf16.vlgmr.msra.gmra.mrb[56].mxu0 %vm157_vm2, %v1137_v16 }
 0x436   :  { %2764 = vmatpush3.bf16.msra.mxu0 %v1867_v57  ;;  %2765 = vmatprep.mubr.msk.bf16.mxu0 %vm2931_vm1, %v2929_v21  ;;  %v1139_v4 = vpack.c.bf16 %v1123_v9, %v1123_v9  ;;  %v1919_v21 = vld [vmem:[%s3620_s3 + $0x8] sm:$0xf] }
 0x437   :  { %2814 = vmatprep.subr.msk.bf16.mxu0 %vm1145_vm3, %v1918_v44  ;;  %v2044_v42 = vsel %vm1145_vm3, %v1919_v21, 0 }
 0x438   :  { %2760 = vmatmul.mubr.msk.bf16.vlgmr.msra.gmra.mrb[64].mxu1 %vm157_vm2, %v1138_v7 }
 0x439   :  { %2770 = vmatpush3.bf16.msra.mxu1 %v1928_v46 }
 0x43a   :  { %2815 = vmatprep.subr.msk.bf16.mxu1 %vm1145_vm3, %v1919_v21 }
 0x43d   :  { %2766 = vmatmul.mubr.msk.bf16.vlgmr.msra.gmra.mrb[60].mxu0 %vm157_vm2, %v1139_v4 }
 0x43e   :  { %2776 = vmatpush3.bf16.msra.mxu0 %v1986_v10 }
 0x43f   :  { %2816 = vmatprep.subr.msk.bf16.mxu0 %vm1145_vm3, %v1920_v50 }
 0x459   :  { %v1183_v45 = vpop.f32.mrb[36].mxu1 }
 0x45a   :  { %v2677_v20 = vpop.f32.mrb[37].mxu1 }
 0x45b   :  { %v1186_v11 = vpop.f32.mrb[38].mxu1 }
 0x45c   :  { %v2678_v1 = vpop.f32.mrb[39].mxu1 }
 0x479   :  { %v1231_v17 = vpop.f32.mrb[32].mxu0 }
 0x47a   :  { %v1909_v15 = vpack.c.bf16 %v1231_v17, %v1183_v45  ;;  %v2683_v18 = vpop.f32.mrb[33].mxu0 }
 0x47b   :  { %v1234_v29 = vpop.f32.mrb[34].mxu0 }
 0x47c   :  { %v2684_v36 = vpop.f32.mrb[35].mxu0  ;;  %2771 = vmatprep.mubr.msk.bf16.mxu1 %vm157_vm2, %v1909_v15 }
 0x481   :  { %v1327_v41 = vpop.f32.mrb[36].mxu0 }
 0x482   :  { %v2695_v39 = vpop.f32.mrb[37].mxu0 }
 0x483   :  { %v1330_v22 = vpop.f32.mrb[38].mxu0 }
 0x484   :  { %v2696_v3 = vpop.f32.mrb[39].mxu0 }
 0x492   :  { %v1279_v23 = vpop.f32.mrb[40].mxu1 }
 0x493   :  { %v1910_v24 = vpack.c.bf16 %v1327_v41, %v1279_v23  ;;  %v2689_v26 = vpop.f32.mrb[41].mxu1 }
 0x494   :  { %v1282_v55 = vpop.f32.mrb[42].mxu1  ;;  %v2830_v26 = vld [vmem:[%s3622_s5 + $0x8] sm:$0xff]  }
 0x495   :  { %v2690_v30 = vpop.f32.mrb[43].mxu1  ;;  %2772 = vmatmul.mubr.msk.bf16.vlgmr.msra.gmra.mrb[68].mxu1 %vm157_vm2, %v1910_v24  ;;  %v2829_v24 = vld [vmem:[%s3622_s5] sm:$0xff]   ;;  %v2832_v55 = vld [vmem:[%s3624_s7 + $0x8] sm:$0xff]  }
 0x496   :  { %2782 = vmatpush3.bf16.msra.mxu1 %v2044_v42  ;;  %v2831_v42 = vld [vmem:[%s3624_s7] sm:$0xff]  }
 0x497   :  { %2793 = vmatprep.subr.bf16.mxu1 %v2829_v24 }
 0x4b6   :  { %v1375_v27 = vpop.f32.mrb[44].mxu1 }
 0x4b7   :  { %v2701_v31 = vpop.f32.mrb[45].mxu1 }
 0x4b8   :  { %v1378_v6 = vpop.f32.mrb[46].mxu1 }
 0x4b9   :  { %v2702_v62 = vpop.f32.mrb[47].mxu1 }
 0x4ba   :  { %v1423_v32 = vpop.f32.mrb[40].mxu0 }
 0x4bb   :  { %v1911_v43 = vpack.c.bf16 %v1423_v32, %v1375_v27  ;;  %v2707_v34 = vpop.f32.mrb[41].mxu0 }
 0x4bc   :  { %v1426_v8 = vpop.f32.mrb[42].mxu0 }
 0x4bd   :  { %v2708_v37 = vpop.f32.mrb[43].mxu0  ;;  %2777 = vmatprep.mubr.msk.bf16.mxu0 %vm157_vm2, %v1911_v43 }
 0x4be   :  { %v1471_v40 = vpop.f32.mrb[48].mxu1 }
 0x4bf   :  { %v2713_v25 = vpop.f32.mrb[49].mxu1 }
 0x4c0   :  { %v1474_v53 = vpop.f32.mrb[50].mxu1 }
 0x4c1   :  { %v2714_v12 = vpop.f32.mrb[51].mxu1 }
 0x4c2   :  { %v1519_v63 = vpop.f32.mrb[44].mxu0 }
 0x4c3   :  { %v1912_v38 = vpack.c.bf16 %v1519_v63, %v1471_v40  ;;  %v2719_v47 = vpop.f32.mrb[45].mxu0 }
 0x4c4   :  { %v1522_v13 = vpop.f32.mrb[46].mxu0 }
 0x4c5   :  { %v2720_v51 = vpop.f32.mrb[47].mxu0  ;;  %2778 = vmatmul.mubr.msk.bf16.vlgmr.msra.gmra.mrb[64].mxu0 %vm157_vm2, %v1912_v38 }
 0x4c6   :  { %v1567_v14 = vpop.f32.mrb[52].mxu1  ;;  %2788 = vmatpush3.bf16.msra.mxu0 %v2102_v49 }
 0x4c7   :  { %v2725_v52 = vpop.f32.mrb[53].mxu1  ;;  %2801 = vmatprep.subr.bf16.mxu0 %v2831_v42 }
 0x4c8   :  { %v1570_v56 = vpop.f32.mrb[54].mxu1 }
 0x4c9   :  { %v2726_v54 = vpop.f32.mrb[55].mxu1 }
 0x4ca   :  { %v1615_v61 = vpop.f32.mrb[48].mxu0 }
 0x4cb   :  { %v1913_v58 = vpack.c.bf16 %v1615_v61, %v1567_v14  ;;  %v2731_v59 = vpop.f32.mrb[49].mxu0 }
 0x4cc   :  { %v1618_v60 = vpop.f32.mrb[50].mxu0 }
 0x4cd   :  { %v2732_v2 = vpop.f32.mrb[51].mxu0  ;;  %2783 = vmatprep.mubr.msk.bf16.mxu1 %vm157_vm2, %v1913_v58 }
 0x4ce   :  { %v1663_v35 = vpop.f32.mrb[56].mxu1 }
 0x4cf   :  { %v2737_v0 = vpop.f32.mrb[57].mxu1 }
 0x4d0   :  { %v1666_v5 = vpop.f32.mrb[58].mxu1 }
 0x4d1   :  { %v2738_v28 = vpop.f32.mrb[59].mxu1 }
 0x4d2   :  { %v1711_v33 = vpop.f32.mrb[52].mxu0  ;;  %v2462_v28 = vld [vmem:[%s3621_s4] ss:$0 sm:$0xff] }
 0x4d3   :  { %v1914_v48 = vpack.c.bf16 %v1711_v33, %v1663_v35  ;;  %v2743_v16 = vpop.f32.mrb[53].mxu0 }
 0x4d4   :  { %v1714_v19 = vpop.f32.mrb[54].mxu0 }
 0x4d5   :  { %v2744_v57 = vpop.f32.mrb[55].mxu0  ;;  %2784 = vmatmul.mubr.msk.bf16.vlgmr.msra.gmra.mrb[72].mxu1 %vm157_vm2, %v1914_v48 }
 0x4d6   :  { %2794 = vmatpush3.bf16.msra.mxu1 %v2829_v24 }
 0x4d7   :  { %2795 = vmatprep.subr.bf16.mxu1 %v2830_v26 }
 0x4da   :  { %2796 = vmatpush3.bf16.msra.mxu1 %v2830_v26 }
 0x503   :  { %v1759_v7 = vpop.f32.mrb[60].mxu1 }
 0x504   :  { %v2749_v46 = vpop.f32.mrb[61].mxu1 }
 0x505   :  { %v1762_v9 = vpop.f32.mrb[62].mxu1 }
 0x506   :  { %v2750_v4 = vpop.f32.mrb[63].mxu1 }
 0x508   :  { %v1807_v44 = vpop.f32.mrb[56].mxu0 }
 0x509   :  { %v1915_v10 = vpack.c.bf16 %v1807_v44, %v1759_v7  ;;  %v2755_v21 = vpop.f32.mrb[57].mxu0 }
 0x50a   :  { %v1810_v45 = vpop.f32.mrb[58].mxu0 }
 0x50b   :  { %v2756_v20 = vpop.f32.mrb[59].mxu0  ;;  %2789 = vmatprep.mubr.msk.bf16.mxu0 %vm157_vm2, %v1915_v10  ;;  %v1855_v11 = vpop.f32.mrb[64].mxu1  ;;  %v2899_v45 = vld [vmem:[%s3617_s0 + $0x18] sm:$0xff] }
 0x50c   :  { %v2761_v1 = vpop.f32.mrb[65].mxu1 }
 0x50d   :  { %v1858_v17 = vpop.f32.mrb[66].mxu1 }
 0x50e   :  { %v2762_v15 = vpop.f32.mrb[67].mxu1  ;;  %v2901_v17 = vld [vmem:[%s3617_s0 + $0x8] sm:$0xff] }
 0x510   :  { %v1903_v18 = vpop.f32.mrb[60].mxu0 }
 0x511   :  { %v1916_v29 = vpack.c.bf16 %v1903_v18, %v1855_v11  ;;  %v2767_v36 = vpop.f32.mrb[61].mxu0  ;;  %v2900_v11 = vld [vmem:[%s3617_s0] sm:$0xff]  ;;  %v2902_v18 = vld [vmem:[%s3617_s0 + $0x10] sm:$0xff] }
 0x512   :  { %v1906_v41 = vpop.f32.mrb[62].mxu0 }
 0x513   :  { %v2768_v39 = vpop.f32.mrb[63].mxu0  ;;  %2790 = vmatmul.mubr.msk.bf16.vlgmr.msra.gmra.mrb[68].mxu0 %vm157_vm2, %v1916_v29 }
 0x514   :  { %2802 = vmatpush3.bf16.msra.mxu0 %v2831_v42  ;;  %v2833_v39 = vld [vmem:[%s3624_s7 + $0x10] sm:$0xff]  }
 0x515   :  { %2803 = vmatprep.subr.bf16.mxu0 %v2832_v55 }
 0x518   :  { %2804 = vmatpush3.bf16.msra.mxu0 %v2832_v55 }
 0x519   :  { %2805 = vmatprep.subr.bf16.mxu0 %v2833_v39 }
 0x51c   :  { %2806 = vmatpush3.bf16.msra.mxu0 %v2833_v39 }
 0x568   :  { %v2773_v22 = vpop.f32.mrb[68].mxu1 }
 0x569   :  { %v1964_v3 = vpop.f32.mrb[69].mxu1  ;;  %v2167_v27 = vsel %vm63_vm0, %v2773_v22, 0.0  ;;  %v2834_v22 = vld [vmem:[%s3624_s7 + $0x18] sm:$0xff]  }
 0x56a   :  { %v2774_v50 = vpop.f32.mrb[70].mxu1  ;;  %v2153_v62 = vsel %vm63_vm0, %v1964_v3, 0.0  ;;  %2807 = vmatprep.subr.bf16.mxu0 %v2834_v22  ;;  %v2463_v3 = vld [vmem:[%s3623_s6] ss:$0 sm:$0xff]  ;;  %s2934_s6 = smov [#allocation2]  }
 0x56b   :  { %v1967_v23 = vpop.f32.mrb[71].mxu1  ;;  %v2174_v8 = vsel %vm63_vm0, %v2774_v50, 0.0  ;;  %2808 = vmatpush3.bf16.msra.mxu0 %v2834_v22  ;;  %s2390_s11 = sshll.u32 %s2934_s6, 4  ;;  %s2391_s11 = int_to_ptr.vmem [resolvable:$true] %s2390_s11 }
 0x56c   :  { %v2160_v53 = vsel %vm63_vm0, %v1967_v23, 0.0  ;;  %p2908_p1 = scmp.lt.s32.totalorder %s2391_s11, %s2391_s11 }
 0x598   :  { %v2779_v30 = vpop.f32.mrb[64].mxu0 }
 0x599   :  { %v2168_v31 = vsel %vm63_vm0, %v2779_v30, 0.0  ;;  %v2022_v6 = vpop.f32.mrb[65].mxu0 }
 0x59a   :  { %v2169_v32 = vadd.f32 %v2168_v31, %v2167_v27  ;;  %v2154_v43 = vsel %vm63_vm0, %v2022_v6, 0.0  ;;  %v2780_v34 = vpop.f32.mrb[66].mxu0 }
 0x59b   :  { %v2155_v37 = vadd.f32 %v2154_v43, %v2153_v62  ;;  %v2175_v40 = vsel %vm63_vm0, %v2780_v34, 0.0  ;;  %v2025_v25 = vpop.f32.mrb[67].mxu0 }
 0x59c   :  { %v2176_v12 = vadd.f32 %v2175_v40, %v2174_v8  ;;  %v2161_v63 = vsel %vm63_vm0, %v2025_v25, 0.0  ;;  %v2468_v8 = vld [vmem:[%s3625_s8] ss:$0 sm:$0xff]  ;;  %s2903_s8 = scalar_lea.vmem %s2391_s11, 512 }
 0x59d   :  { %v2162_v38 = vadd.f32 %v2161_v63, %v2160_v53  ;;  %p2904_p0 = scmp.ne.s32.totalorder %s2391_s11, %s2903_s8  ;;  %p2909_p2 = scmp.lt.s32.totalorder %s2903_s8, %s2903_s8 }
 0x59f   :  { %p2910_p3 = por %p2909_p2, %p2908_p1 }
 0x5a1   :  { %p2911_p4 = pnand %p2910_p3, %p2904_p0 }
 0x5a8   :  { %v2785_v47 = vpop.f32.mrb[72].mxu1 }
 0x5a9   :  { %v2170_v49 = vsel %vm63_vm0, %v2785_v47, 0.0  ;;  %v2080_v13 = vpop.f32.mrb[73].mxu1 }
 0x5aa   :  { %v2171_v51 = vadd.f32 %v2170_v49, %v2169_v32  ;;  %v2156_v14 = vsel %vm63_vm0, %v2080_v13, 0.0  ;;  %v2786_v52 = vpop.f32.mrb[74].mxu1 }
 0x5ab   :  { %v2157_v56 = vadd.f32 %v2156_v14, %v2155_v37  ;;  %v2177_v54 = vsel %vm63_vm0, %v2786_v52, 0.0  ;;  %v2083_v61 = vpop.f32.mrb[75].mxu1 }
 0x5ac   :  { %v2178_v58 = vadd.f32 %v2177_v54, %v2176_v12  ;;  %v2163_v59 = vsel %vm63_vm0, %v2083_v61, 0.0 }
 0x5ad   :  { %v2164_v60 = vadd.f32 %v2163_v59, %v2162_v38 }
 0x5e6   :  { %v2791_v2 = vpop.f32.mrb[68].mxu0 }
 0x5e7   :  { %v2172_v35 = vsel %vm63_vm0, %v2791_v2, 0.0  ;;  %v2138_v0 = vpop.f32.mrb[69].mxu0 }
 0x5e8   :  { %v2173_v5 = vadd.f32 %v2172_v35, %v2171_v51  ;;  %v2158_v33 = vsel %vm63_vm0, %v2138_v0, 0.0  ;;  %v2792_v48 = vpop.f32.mrb[70].mxu0 }
 0x5e9   :  { %v2159_v16 = vadd.f32 %v2158_v33, %v2157_v56  ;;  %v2179_v19 = vsel %vm63_vm0, %v2792_v48, 0.0  ;;  %v2141_v57 = vpop.f32.mrb[71].mxu0 }
 0x5ea   :  { %v2180_v7 = vadd.f32 %v2179_v19, %v2178_v58  ;;  %v2165_v46 = vsel %vm63_vm0, %v2141_v57, 0.0  ;;  %v2190_v44 = vadd.f32 %v2462_v28, %v2173_v5 }
 0x5eb   :  { %v2188_v9 = vadd.f32 %v2462_v28, %v2159_v16  ;;  %v2166_v4 = vadd.f32 %v2165_v46, %v2164_v60 }
 0x5ec   :  { %v2191_v10 = vadd.f32 %v2462_v28, %v2180_v7  ;;  %v2194_v29 = vadd.f32 %v2902_v18, %v2190_v44 }
 0x5ed   :  { %v2189_v21 = vadd.f32 %v2462_v28, %v2166_v4  ;;  %v2192_v1 = vadd.f32 %v2900_v11, %v2188_v9 }
 0x5ee   :  { %v2195_v20 = vadd.f32 %v2899_v45, %v2191_v10 }
 0x5ef   :  { %v2193_v15 = vadd.f32 %v2901_v17, %v2189_v21 }
 0x5f0   :  { %v2197_v41 = vpack.c.bf16 %v2195_v20, %v2194_v29 }
 0x5f1   :  { %v2196_v36 = vpack.c.bf16 %v2193_v15, %v2192_v1 }
 0x5f3   :  { %2797 = vmatprep.mubr.msk.bf16.mxu1 %vm63_vm0, %v2196_v36 }
 0x5f4   :  { %2798 = vmatmul.mubr.msk.bf16.vlgmr.msra.gmra.mrb[76].mxu1 %vm63_vm0, %v2197_v41 }
 0x6c7   :  { %v2799_v50 = vpop.f32.mrb[76].mxu1 }
 0x6c8   :  { %v2270_v23 = vadd.f32 %v2799_v50, %v2463_v3  ;;  %v2261_v24 = vpop.f32.mrb[77].mxu1 }
 0x6c9   :  { %v2262_v26 = vadd.f32 %v2463_v3, %v2261_v24  ;;  %v2800_v42 = vpop.f32.mrb[78].mxu1 }
 0x6ca   :  { %v2273_v55 = vadd.f32 %v2800_v42, %v2463_v3  ;;  %v2264_v30 = vpop.f32.mrb[79].mxu1  ;;  %v2278_v31 = vmax.f32 %v2270_v23, 0.0 }
 0x6cb   :  { %v2265_v27 = vadd.f32 %v2463_v3, %v2264_v30  ;;  %v2276_v62 = vmax.f32 %v2262_v26, 0.0 }
 0x6cc   :  { %v2279_v6 = vmax.f32 %v2273_v55, 0.0 }
 0x6cd   :  { %v2277_v32 = vmax.f32 %v2265_v27, 0.0 }
 0x6ce   :  { %v2281_v43 = vpack.c.bf16 %v2279_v6, %v2278_v31 }
 0x6cf   :  { %v2280_v34 = vpack.c.bf16 %v2277_v32, %v2276_v62 }
 0x6d1   :  { %2809 = vmatprep.mubr.msk.bf16.mxu0 %vm2321_vm4, %v2280_v34 }
 0x6d2   :  { %2810 = vmatmul.mubr.msk.bf16.vlgmr.msra.gmra.mrb[72].mxu0 %vm2321_vm4, %v2281_v43 }
 0x7a5   :  { %v2811_v37 = vpop.f32.mrb[72].mxu0 }
 0x7a6   :  { %v2371_v40 = vadd.f32 %v2811_v37, %v2468_v8  ;;  %v2362_v25 = vpop.f32.mrb[73].mxu0 }
 0x7a7   :  { %v2363_v53 = vadd.f32 %v2468_v8, %v2362_v25  ;;  %v2812_v12 = vpop.f32.mrb[74].mxu0 }
 0x7a8   :  { %v2379_v63 = vadd.f32 %v2371_v40, %v2194_v29  ;;  %v2374_v38 = vadd.f32 %v2812_v12, %v2468_v8  ;;  %v2365_v47 = vpop.f32.mrb[75].mxu0 }
 0x7a9   :  { %v2377_v49 = vadd.f32 %v2363_v53, %v2192_v1  ;;  %v2366_v13 = vadd.f32 %v2468_v8, %v2365_v47 }
 0x7aa   :  { %2383 = vst.msk [vmem:[#allocation2 + $0x10] sm:$0xff] %vm63_vm0, %v2379_v63  ;;  %v2380_v51 = vadd.f32 %v2374_v38, %v2195_v20 }
 0x7ab   :  { %2381 = vst.msk [vmem:[#allocation2] sm:$0xff] %vm63_vm0, %v2377_v49  ;;  %v2378_v14 = vadd.f32 %v2366_v13, %v2193_v15 }
 0x7ac   :  { %2384 = vst.msk [vmem:[#allocation2 + $0x18] sm:$0xff] %vm63_vm0, %v2380_v51 }
 0x7ad   :  { %2382 = vst.msk [vmem:[#allocation2 + $0x8] sm:$0xff] %vm63_vm0, %v2378_v14 }
 0x7ae   :  { %2914 = shalt.err (!%p2911_p4)
}
 0x7af   :  { %s2915_s13 = scalar_lea.hbm %s3626_s9, 512 }
 0x7b0   :  { %p2916_p5 = scmp.ne.s32.totalorder %s3626_s9, %s2915_s13  ;;  %p2919_p6 = scmp.lt.u32.totalorder %s2915_s13, %s3626_s9 }
 0x7b2   :  { %p2921_p7 = pnand %p2919_p6, %p2916_p5 }
 0x7b4   :  { %2924 = shalt.err (!%p2921_p7)
}
 0x7b5   :  { %s2935_s18 = smov 128   ;;  %s2936_s19 = smov 8  }
 0x7b6   :  { %2396 = dma.vmem_to_hbm [thread:$0]  %s2391_s11, 512, %s3626_s9, [#allocation3], %s2935_s18, %s2935_s18, %s2936_s19  }
 0x7b7   :  { %2925 = dma.done.wait [#allocation3], 512  }
 0x7b8   :  { %2926 = vsyncadd [#allocation3], 4294966784 }
 0x7b9   :  { %2400 = vsyncpa [#allocation3], 1 }

</bundles_post_ra>
